<compile_context>
chip_gen: v7x
topology: tpu7x:2x2x1
jax: 0.10.0
libtpu: 0.0.40
codegen_flags: <defaults>
</compile_context>

<pallas_src>
import functools
import math

import jax
import jax.numpy as jnp
from jax import lax
from jax.experimental import pallas as pl
from jax.experimental.pallas import tpu as pltpu

# ----- tiny MaxViT-style hyper-parameters -----
IN_CH = 3
DIM = 32          # stage channels
EXP_DIM = 64      # MBConv expansion (x2)
SE_RD = 16        # squeeze-excite reduction channels
HEADS = 2
WINDOW = 4        # block-attention window size
GRID = 4          # grid-attention grid size
MLP_HIDDEN = 64   # mlp_ratio = 2
NUM_CLASSES = 10


# ---------------------------------------------------------------------------
# Packed-parameter layout: every parameter lives in one of two VMEM slabs.
#   w_slab : (W_ROWS, 128) bf16  -- all matmul weight matrices (row-stacked,
#            each start 16-row aligned for bf16 sublane tiling, cols zero-padded)
#   v_slab : (V_ROWS, 128) f32   -- one 1-D gain/bias (or depthwise tap row) per row
# ---------------------------------------------------------------------------
def _pad_to(n, m):
    return ((n + m - 1) // m) * m


W_COLS = 128
_W_SHAPES = (
    ("stem_w", 9 * IN_CH, DIM),
    ("mb_exp_w", DIM, EXP_DIM),
    ("mb_se1_w", EXP_DIM, SE_RD),
    ("mb_se2_w", SE_RD, EXP_DIM),
    ("mb_proj_w", EXP_DIM, DIM),
    ("blk_qkv_w", DIM, 3 * DIM),
    ("blk_proj_w", DIM, DIM),
    ("blk_fc1_w", DIM, MLP_HIDDEN),
    ("blk_fc2_w", MLP_HIDDEN, DIM),
    ("grd_qkv_w", DIM, 3 * DIM),
    ("grd_proj_w", DIM, DIM),
    ("grd_fc1_w", DIM, MLP_HIDDEN),
    ("grd_fc2_w", MLP_HIDDEN, DIM),
    ("head_w", DIM, NUM_CLASSES),
)


def _build_w_layout():
    off, row = {}, 0
    for name, r, c in _W_SHAPES:
        off[name] = (row, r, c)
        row += _pad_to(r, 16)          # keep bf16 sublane-tile-aligned starts
    return off, _pad_to(row, 16)


_W_OFF, W_ROWS = _build_w_layout()

V_COLS = 128


def _attn_vec_names(prefix):
    return (
        (prefix + "ln1_g", DIM), (prefix + "ln1_b", DIM),
        (prefix + "qkv_b", 3 * DIM), (prefix + "proj_b", DIM),
        (prefix + "ln2_g", DIM), (prefix + "ln2_b", DIM),
        (prefix + "fc1_b", MLP_HIDDEN), (prefix + "fc2_b", DIM),
    )


_V_SHAPES = (
    ("stem_b", DIM),
    ("mb_bn1_g", DIM), ("mb_bn1_b", DIM),
    ("mb_exp_b", EXP_DIM), ("mb_bn2_g", EXP_DIM), ("mb_bn2_b", EXP_DIM),
) + tuple((f"mb_dw_t{k}", EXP_DIM) for k in range(9)) + (
    ("mb_dw_b", EXP_DIM), ("mb_bn3_g", EXP_DIM), ("mb_bn3_b", EXP_DIM),
    ("mb_se1_b", SE_RD), ("mb_se2_b", EXP_DIM),
    ("mb_proj_b", DIM),
) + _attn_vec_names("blk_") + _attn_vec_names("grd_") + (
    ("head_ln_g", DIM), ("head_ln_b", DIM), ("head_b", NUM_CLASSES),
)
_V_ROW = {name: i for i, (name, _) in enumerate(_V_SHAPES)}
_V_LEN = dict(_V_SHAPES)
V_ROWS = _pad_to(len(_V_SHAPES), 8)


def _pack_weights(params):
    slab = jnp.zeros((W_ROWS, W_COLS), jnp.float32)
    for name, rows, cols in _W_SHAPES:
        off = _W_OFF[name][0]
        slab = slab.at[off:off + rows, :cols].set(params[name].astype(jnp.float32))
    # bf16 weights: halves the weight DMA bytes and removes in-kernel VPU casts.
    return slab.astype(jnp.bfloat16)


def _pack_vectors(params):
    slab = jnp.zeros((V_ROWS, V_COLS), jnp.float32)
    for name, n in _V_SHAPES:
        r = _V_ROW[name]
        if name.startswith("mb_dw_t"):
            vec = params["mb_dw_w"][int(name[-1])]
        else:
            vec = params[name]
        slab = slab.at[r, :n].set(vec.astype(jnp.float32))
    return slab


# ---------------------------------------------------------------------------
# In-kernel helpers (traced jnp code; everything stays in VMEM/vregs)
# ---------------------------------------------------------------------------
def _mxu(a, w):
    """MXU matmul: bf16 operands (weights are pre-cast), f32 accumulation."""
    return jnp.dot(a.astype(jnp.bfloat16), w.astype(jnp.bfloat16),
                   preferred_element_type=jnp.float32)


def _gelu(x):
    # TODO(synk): timm's MaxViT uses exact (erf) GELU; tanh approximation here.
    return jax.nn.gelu(x, approximate=True)


def _layernorm(x, g, b, eps=1e-5):
    mu = jnp.mean(x, axis=-1, keepdims=True)
    var = jnp.mean((x - mu) ** 2, axis=-1, keepdims=True)
    return (x - mu) * lax.rsqrt(var + eps) * g + b


def _partition_mask(mode, h_img, w_img):
    """Block-diagonal attention mask from a per-token group-id vector.

    Only O(N) integer decode work (two 1-D iotas) plus one broadcast compare;
    group ids use plain arithmetic (no bit packing -> no field overflow at
    larger resolutions).
    """
    n_tok = h_img * w_img
    log_w = int(math.log2(w_img))

    def gids(shape, dim):
        idx = lax.broadcasted_iota(jnp.int32, shape, dim)
        h = idx >> log_w
        w = idx & (w_img - 1)
        if mode == "window":                       # contiguous WINDOW x WINDOW windows
            ph = h >> int(math.log2(WINDOW))
            pw = w >> int(math.log2(WINDOW))
            return ph * (w_img // WINDOW) + pw
        ph = h & (h_img // GRID - 1)               # dilated GRID x GRID groups
        pw = w & (w_img // GRID - 1)
        return ph * (w_img // GRID) + pw

    return gids((n_tok, 1), 0) == gids((1, n_tok), 1)


def _mbconv(x, W, V, h_img, w_img):
    """BN-affine -> 1x1 expand -> depthwise 3x3 (rolls) -> SE -> 1x1 project -> residual."""
    n_tok = h_img * w_img
    log_w = int(math.log2(w_img))

    shortcut = x
    t = x * V("mb_bn1_g") + V("mb_bn1_b")                    # eval-mode BN (affine)
    t = _mxu(t, W("mb_exp_w")) + V("mb_exp_b")               # 1x1 expand
    t = _gelu(t * V("mb_bn2_g") + V("mb_bn2_b"))

    # Depthwise 3x3: each tap is a sublane roll of the token axis (XLU slot)
    # gated by an O(N) edge-validity mask -- channels stay lane-resident and
    # there are no (N, N) select matrices or extra MXU passes.
    # TODO(synk): tap order is (di, dj) row-major; verify against PyTorch's
    # [C, 1, kH, kW] depthwise layout if real weights are ever loaded.
    idx = lax.broadcasted_iota(jnp.int32, (n_tok, 1), 0)
    th = idx >> log_w
    tw = idx & (w_img - 1)
    d = jnp.zeros_like(t)
    tap = 0
    for di in (-1, 0, 1):
        for dj in (-1, 0, 1):
            off = di * w_img + dj
            shift = (-off) % n_tok
            src = pltpu.roll(t, shift, 0) if shift else t    # src[i] = t[i + off]
            valid = ((th + di >= 0) & (th + di < h_img) &
                     (tw + dj >= 0) & (tw + dj < w_img))      # zero-padded edges
            d = d + jnp.where(valid, src, 0.0) * V(f"mb_dw_t{tap}")
            tap += 1
    d = d + V("mb_dw_b")
    d = _gelu(d * V("mb_bn3_g") + V("mb_bn3_b"))

    # Squeeze-and-excite: sublane mean (XLU) + two tiny MXU matmuls + VPU
    # broadcast gate (no selector matmuls).
    s = jnp.mean(d, axis=0, keepdims=True)                   # (1, EXP_DIM)
    s = _mxu(s, W("mb_se1_w")) + V("mb_se1_b")
    s = s * jax.nn.sigmoid(s)                                 # SiLU
    s = jax.nn.sigmoid(_mxu(s, W("mb_se2_w")) + V("mb_se2_b"))
    d = d * s                                                 # broadcast over tokens

    t = _mxu(d, W("mb_proj_w")) + V("mb_proj_b")              # 1x1 project
    return shortcut + t


def _attn_block(x, W, V, prefix, mask):
    """LN -> QKV -> masked attention -> fused proj -> residual -> LN -> MLP -> residual."""
    n_tok, chans = x.shape
    dh = chans // HEADS
    scale = dh ** -0.5

    n = _layernorm(x, V(prefix + "ln1_g"), V(prefix + "ln1_b"))
    qkv = _mxu(n, W(prefix + "qkv_w")) + V(prefix + "qkv_b")

    # TODO(synk): MaxViT adds a learned relative-position bias to the attention
    # logits; omitted here.
    heads = []
    for h in range(HEADS):
        q = (qkv[:, h * dh:(h + 1) * dh] * scale).astype(jnp.bfloat16)
        k = qkv[:, chans + h * dh:chans + (h + 1) * dh].astype(jnp.bfloat16)
        v = qkv[:, 2 * chans + h * dh:2 * chans + (h + 1) * dh]
        # Full (n_tok x n_tok) scores on the MXU; the block-diagonal mask keeps
        # attention inside each window / grid group.
        s = lax.dot_general(q, k, (((1,), (1,)), ((), ())),
                            preferred_element_type=jnp.float32)
        s = jnp.where(mask, s, -1e30)
        m = jnp.max(s, axis=-1, keepdims=True)
        e = jnp.exp(s - m)
        p = e * pl.reciprocal(jnp.sum(e, axis=-1, keepdims=True), approx=True)
        heads.append(_mxu(p, v))                              # (n_tok, dh)

    # Lane-concat the head outputs and run ONE K=chans output projection
    # (doubles MXU contraction depth vs per-head K=dh matmuls).
    o = jnp.concatenate(heads, axis=-1)                       # (n_tok, chans)
    x = x + _mxu(o, W(prefix + "proj_w")) + V(prefix + "proj_b")

    n2 = _layernorm(x, V(prefix + "ln2_g"), V(prefix + "ln2_b"))
    hmid = _gelu(_mxu(n2, W(prefix + "fc1_w")) + V(prefix + "fc1_b"))
    return x + _mxu(hmid, W(prefix + "fc2_w")) + V(prefix + "fc2_b")


# ---------------------------------------------------------------------------
# The fused forward kernel: one grid step == one image (all tokens in VMEM)
# ---------------------------------------------------------------------------
def _forward_kernel(patches_ref, w_ref, v_ref, out_ref, *, h_img, w_img):
    def W(name):
        off, rows, cols = _W_OFF[name]
        return w_ref[off:off + rows, 0:cols]                  # bf16 (rows, cols)

    def V(name):
        r = _V_ROW[name]
        return v_ref[r:r + 1, 0:_V_LEN[name]]                 # f32 (1, n)

    # stem conv (im2col patches built outside): matmul + bias + GELU
    x = _gelu(_mxu(patches_ref[...], W("stem_w")) + V("stem_b"))

    # MBConv block
    x = _mbconv(x, W, V, h_img, w_img)

    # window ("block") attention + MLP, then grid attention + MLP
    x = _attn_block(x, W, V, "blk_", _partition_mask("window", h_img, w_img))
    x = _attn_block(x, W, V, "grd_", _partition_mask("grid", h_img, w_img))

    # global average pool -> LayerNorm -> linear head
    pooled = jnp.mean(x, axis=0, keepdims=True)               # (1, DIM)
    n = _layernorm(pooled, V("head_ln_g"), V("head_ln_b"))
    # TODO(synk): timm's NormMlpClassifierHead has a pre-logits Linear+Tanh; omitted.
    out_ref[0] = (_mxu(n, W("head_w")) + V("head_b")).astype(out_ref.dtype)


# ---------------------------------------------------------------------------
# JAX wrapper: stem im2col + one pallas_call with a "parallel" batch grid
# ---------------------------------------------------------------------------
def _stem_patches(x_nhwc, ksize=3, stride=2):
    b, h, w, c = x_nhwc.shape
    pad = (ksize - 1) // 2
    ho, wo = h // stride, w // stride
    xp = jnp.pad(x_nhwc, ((0, 0), (pad, pad), (pad, pad), (0, 0)))
    cols = []
    for di in range(ksize):
        for dj in range(ksize):
            cols.append(xp[:, di:di + (ho - 1) * stride + 1:stride,
                           dj:dj + (wo - 1) * stride + 1:stride, :])
    patches = jnp.concatenate(cols, axis=-1)              # (B, Ho, Wo, k*k*Cin)
    return patches.reshape(b * ho * wo, ksize * ksize * c), ho, wo


@jax.jit
def maxvit_forward(params, x_nchw):
    # layout: NCHW in (PyTorch convention) -> NHWC tokens internally.
    x = jnp.transpose(x_nchw, (0, 2, 3, 1)).astype(jnp.float32)
    batch = x.shape[0]
    # TODO(synk): at real resolutions the im2col should move in-kernel (DMA raw
    # NHWC, gather taps with rolls) to avoid the 9x HBM blow-up.
    patches, h_img, w_img = _stem_patches(x, 3, 2)
    assert h_img & (h_img - 1) == 0 and w_img & (w_img - 1) == 0, \
        "spatial dims after the stem must be powers of two"
    hw = h_img * w_img
    kdim = patches.shape[1]

    w_slab = _pack_weights(params)     # (W_ROWS, 128) bf16
    v_slab = _pack_vectors(params)     # (V_ROWS, 128) f32

    mm = (kdim * DIM + DIM * EXP_DIM + EXP_DIM * DIM
          + 2 * (DIM * 3 * DIM + 2 * hw * DIM + DIM * DIM + 2 * DIM * MLP_HIDDEN))
    cost = pl.CostEstimate(
        flops=int(2 * batch * hw * mm),
        transcendentals=int(batch * (2 * HEADS * hw * hw + 6 * hw * EXP_DIM)),
        bytes_accessed=int(patches.size * 4 + w_slab.size * 2 + v_slab.size * 4
                           + batch * NUM_CLASSES * 4))

    kernel = functools.partial(_forward_kernel, h_img=h_img, w_img=w_img)
    out = pl.pallas_call(
        kernel,
        out_shape=jax.ShapeDtypeStruct((batch, 1, NUM_CLASSES), jnp.float32),
        grid=(batch,),
        in_specs=[
            pl.BlockSpec((hw, kdim), lambda b: (b, 0)),         # one image's tokens
            pl.BlockSpec((W_ROWS, W_COLS), lambda b: (0, 0)),   # weight slab (resident)
            pl.BlockSpec((V_ROWS, V_COLS), lambda b: (0, 0)),   # bias/gain slab (resident)
        ],
        out_specs=pl.BlockSpec((1, 1, NUM_CLASSES), lambda b: (b, 0, 0)),
        compiler_params=pltpu.CompilerParams(
            dimension_semantics=("parallel",),      # v7x: shard batch over both TCs
            vmem_limit_bytes=32 * 1024 * 1024),
        cost_estimate=cost,
    )(patches, w_slab, v_slab)
    return out.reshape(batch, NUM_CLASSES)


# ---------------------------------------------------------------------------
# Deterministic parameter init (synthetic weights; no checkpoint loading)
# ---------------------------------------------------------------------------
def init_params(key):
    ks = iter(jax.random.split(key, 64))

    def nrm(shape, scale=0.02):
        return (scale * jax.random.normal(next(ks), shape)).astype(jnp.float32)

    def zeros(s):
        return jnp.zeros(s, jnp.float32)

    def ones(s):
        return jnp.ones(s, jnp.float32)

    def attn_block(prefix):
        return {
            prefix + "ln1_g": ones((DIM,)), prefix + "ln1_b": zeros((DIM,)),
            prefix + "qkv_w": nrm((DIM, 3 * DIM)), prefix + "qkv_b": zeros((3 * DIM,)),
            prefix + "proj_w": nrm((DIM, DIM)), prefix + "proj_b": zeros((DIM,)),
            prefix + "ln2_g": ones((DIM,)), prefix + "ln2_b": zeros((DIM,)),
            prefix + "fc1_w": nrm((DIM, MLP_HIDDEN)), prefix + "fc1_b": zeros((MLP_HIDDEN,)),
            prefix + "fc2_w": nrm((MLP_HIDDEN, DIM)), prefix + "fc2_b": zeros((DIM,)),
        }

    params = {
        # stem conv weight stored directly as its im2col matrix [k*k*Cin, DIM]
        # (a real PyTorch [Cout, Cin, k, k] weight would be permuted/reshaped).
        "stem_w": nrm((9 * IN_CH, DIM)), "stem_b": zeros((DIM,)),
        "mb_bn1_g": ones((DIM,)), "mb_bn1_b": zeros((DIM,)),
        "mb_exp_w": nrm((DIM, EXP_DIM)), "mb_exp_b": zeros((EXP_DIM,)),
        "mb_bn2_g": ones((EXP_DIM,)), "mb_bn2_b": zeros((EXP_DIM,)),
        "mb_dw_w": nrm((9, EXP_DIM)), "mb_dw_b": zeros((EXP_DIM,)),
        "mb_bn3_g": ones((EXP_DIM,)), "mb_bn3_b": zeros((EXP_DIM,)),
        "mb_se1_w": nrm((EXP_DIM, SE_RD)), "mb_se1_b": zeros((SE_RD,)),
        "mb_se2_w": nrm((SE_RD, EXP_DIM)), "mb_se2_b": zeros((EXP_DIM,)),
        "mb_proj_w": nrm((EXP_DIM, DIM)), "mb_proj_b": zeros((DIM,)),
        "head_ln_g": ones((DIM,)), "head_ln_b": zeros((DIM,)),
        "head_w": nrm((DIM, NUM_CLASSES)), "head_b": zeros((NUM_CLASSES,)),
    }
    params.update(attn_block("blk_"))
    params.update(attn_block("grd_"))
    return params


if __name__ == "__main__":
    key = jax.random.PRNGKey(0)
    pkey, xkey = jax.random.split(key)
    params = init_params(pkey)
    x = jax.random.normal(xkey, (2, IN_CH, 16, 16), dtype=jnp.float32)  # NCHW, like PyTorch

    logits = maxvit_forward(params, x)
    jax.block_until_ready(logits)
    assert logits.shape == (2, NUM_CLASSES)
    print("KERNEL_OK")
</pallas_src>

<mosaic_0001>
module attributes {stable_mosaic.version = 11 : i64} {
  func.func @_forward_kernel(%arg0: i32, %arg1: memref<64x27xf32, #tpu.memory_space<vmem>>, %arg2: memref<560x128xbf16, #tpu.memory_space<vmem>>, %arg3: memref<40x128xf32, #tpu.memory_space<vmem>>, %arg4: memref<1x1x10xf32, #tpu.memory_space<vmem>>) attributes {dimension_semantics = [#tpu.dimension_semantics<parallel>], iteration_bounds = array<i64: 2>, scalar_prefetch = 0 : i64, scratch_operands = 0 : i64, tpu.core_type = #tpu.core_type<tc>, window_params = [{transform_indices = @transform_0, window_bounds = array<i64: 64, 27>}, {pipeline_mode = #tpu.pipeline_mode<synchronous>, transform_indices = @transform_1, window_bounds = array<i64: 560, 128>}, {pipeline_mode = #tpu.pipeline_mode<synchronous>, transform_indices = @transform_2, window_bounds = array<i64: 40, 128>}, {transform_indices = @transform_3, window_bounds = array<i64: 1, 1, 10>}]} {
    %c0 = arith.constant 0 : index
    %c0_0 = arith.constant 0 : index
    %0 = vector.load %arg1[%c0, %c0_0] : memref<64x27xf32, #tpu.memory_space<vmem>>, vector<64x27xf32>
    %c0_1 = arith.constant 0 : index
    %c0_2 = arith.constant 0 : index
    %1 = vector.load %arg2[%c0_1, %c0_2] : memref<560x128xbf16, #tpu.memory_space<vmem>>, vector<27x32xbf16>
    %2 = arith.truncf %0 : vector<64x27xf32> to vector<64x27xbf16>
    %cst = arith.constant dense<0.000000e+00> : vector<64x32xf32>
    %3 = tpu.matmul %2, %1, %cst {dimension_numbers = #tpu.dot_dimension_numbers<[1], [0], [0], [1], [0, 0, 1, 1], [], []>} : vector<64x27xbf16>, vector<27x32xbf16>, vector<64x32xf32> -> vector<64x32xf32>
    %c0_3 = arith.constant 0 : index
    %c0_4 = arith.constant 0 : index
    %4 = vector.load %arg3[%c0_3, %c0_4] : memref<40x128xf32, #tpu.memory_space<vmem>>, vector<1x32xf32>
    %5 = vector.broadcast %4 : vector<1x32xf32> to vector<64x32xf32>
    %6 = arith.addf %3, %5 : vector<64x32xf32>
    %7 = arith.mulf %6, %6 : vector<64x32xf32>
    %8 = arith.mulf %6, %7 : vector<64x32xf32>
    %cst_5 = arith.constant 4.471500e-02 : f32
    %9 = vector.broadcast %cst_5 : f32 to vector<64x32xf32>
    %10 = arith.mulf %9, %8 : vector<64x32xf32>
    %11 = arith.addf %6, %10 : vector<64x32xf32>
    %cst_6 = arith.constant 0.797884583 : f32
    %12 = vector.broadcast %cst_6 : f32 to vector<64x32xf32>
    %13 = arith.mulf %12, %11 : vector<64x32xf32>
    %14 = math.tanh %13 : vector<64x32xf32>
    %cst_7 = arith.constant 1.000000e+00 : f32
    %15 = vector.broadcast %cst_7 : f32 to vector<64x32xf32>
    %16 = arith.addf %15, %14 : vector<64x32xf32>
    %cst_8 = arith.constant 5.000000e-01 : f32
    %17 = vector.broadcast %cst_8 : f32 to vector<64x32xf32>
    %18 = arith.mulf %17, %16 : vector<64x32xf32>
    %19 = arith.mulf %6, %18 : vector<64x32xf32>
    %c1 = arith.constant 1 : index
    %c0_9 = arith.constant 0 : index
    %20 = vector.load %arg3[%c1, %c0_9] : memref<40x128xf32, #tpu.memory_space<vmem>>, vector<1x32xf32>
    %21 = vector.broadcast %20 : vector<1x32xf32> to vector<64x32xf32>
    %22 = arith.mulf %19, %21 : vector<64x32xf32>
    %c2 = arith.constant 2 : index
    %c0_10 = arith.constant 0 : index
    %23 = vector.load %arg3[%c2, %c0_10] : memref<40x128xf32, #tpu.memory_space<vmem>>, vector<1x32xf32>
    %24 = vector.broadcast %23 : vector<1x32xf32> to vector<64x32xf32>
    %25 = arith.addf %22, %24 : vector<64x32xf32>
    %c32 = arith.constant 32 : index
    %c0_11 = arith.constant 0 : index
    %26 = vector.load %arg2[%c32, %c0_11] : memref<560x128xbf16, #tpu.memory_space<vmem>>, vector<32x64xbf16>
    %27 = arith.truncf %25 : vector<64x32xf32> to vector<64x32xbf16>
    %cst_12 = arith.constant dense<0.000000e+00> : vector<64x64xf32>
    %28 = tpu.matmul %27, %26, %cst_12 {dimension_numbers = #tpu.dot_dimension_numbers<[1], [0], [0], [1], [0, 0, 1, 1], [], []>} : vector<64x32xbf16>, vector<32x64xbf16>, vector<64x64xf32> -> vector<64x64xf32>
    %c3 = arith.constant 3 : index
    %c0_13 = arith.constant 0 : index
    %29 = vector.load %arg3[%c3, %c0_13] : memref<40x128xf32, #tpu.memory_space<vmem>>, vector<1x64xf32>
    %30 = vector.broadcast %29 : vector<1x64xf32> to vector<64x64xf32>
    %31 = arith.addf %28, %30 : vector<64x64xf32>
    %c4 = arith.constant 4 : index
    %c0_14 = arith.constant 0 : index
    %32 = vector.load %arg3[%c4, %c0_14] : memref<40x128xf32, #tpu.memory_space<vmem>>, vector<1x64xf32>
    %33 = vector.broadcast %32 : vector<1x64xf32> to vector<64x64xf32>
    %34 = arith.mulf %31, %33 : vector<64x64xf32>
    %c5 = arith.constant 5 : index
    %c0_15 = arith.constant 0 : index
    %35 = vector.load %arg3[%c5, %c0_15] : memref<40x128xf32, #tpu.memory_space<vmem>>, vector<1x64xf32>
    %36 = vector.broadcast %35 : vector<1x64xf32> to vector<64x64xf32>
    %37 = arith.addf %34, %36 : vector<64x64xf32>
    %38 = arith.mulf %37, %37 : vector<64x64xf32>
    %39 = arith.mulf %37, %38 : vector<64x64xf32>
    %cst_16 = arith.constant 4.471500e-02 : f32
    %40 = vector.broadcast %cst_16 : f32 to vector<64x64xf32>
    %41 = arith.mulf %40, %39 : vector<64x64xf32>
    %42 = arith.addf %37, %41 : vector<64x64xf32>
    %cst_17 = arith.constant 0.797884583 : f32
    %43 = vector.broadcast %cst_17 : f32 to vector<64x64xf32>
    %44 = arith.mulf %43, %42 : vector<64x64xf32>
    %45 = math.tanh %44 : vector<64x64xf32>
    %cst_18 = arith.constant 1.000000e+00 : f32
    %46 = vector.broadcast %cst_18 : f32 to vector<64x64xf32>
    %47 = arith.addf %46, %45 : vector<64x64xf32>
    %cst_19 = arith.constant 5.000000e-01 : f32
    %48 = vector.broadcast %cst_19 : f32 to vector<64x64xf32>
    %49 = arith.mulf %48, %47 : vector<64x64xf32>
    %50 = arith.mulf %37, %49 : vector<64x64xf32>
    %51 = tpu.iota {dimensions = array<i32: 0>} : vector<64x1xi32>
    %c3_i32 = arith.constant 3 : i32
    %52 = vector.broadcast %c3_i32 : i32 to vector<64x1xi32>
    %53 = arith.shrsi %51, %52 : vector<64x1xi32>
    %c7_i32 = arith.constant 7 : i32
    %54 = vector.broadcast %c7_i32 : i32 to vector<64x1xi32>
    %55 = arith.andi %51, %54 : vector<64x1xi32>
    %cst_20 = arith.constant 0.000000e+00 : f32
    %56 = vector.broadcast %cst_20 : f32 to vector<64x64xf32>
    %c9_i32 = arith.constant 9 : i32
    %57 = tpu.dynamic_rotate %50 by %c9_i32 dim 0 : vector<64x64xf32>, i32 -> vector<64x64xf32>
    %c-1_i32 = arith.constant -1 : i32
    %58 = vector.broadcast %c-1_i32 : i32 to vector<64x1xi32>
    %59 = arith.addi %53, %58 : vector<64x1xi32>
    %c0_i32 = arith.constant 0 : i32
    %60 = vector.broadcast %c0_i32 : i32 to vector<64x1xi32>
    %61 = arith.cmpi sge, %59, %60 : vector<64x1xi32>
    %c-1_i32_21 = arith.constant -1 : i32
    %62 = vector.broadcast %c-1_i32_21 : i32 to vector<64x1xi32>
    %63 = arith.addi %53, %62 : vector<64x1xi32>
    %c8_i32 = arith.constant 8 : i32
    %64 = vector.broadcast %c8_i32 : i32 to vector<64x1xi32>
    %65 = arith.cmpi slt, %63, %64 : vector<64x1xi32>
    %66 = arith.andi %61, %65 : vector<64x1xi1>
    %c-1_i32_22 = arith.constant -1 : i32
    %67 = vector.broadcast %c-1_i32_22 : i32 to vector<64x1xi32>
    %68 = arith.addi %55, %67 : vector<64x1xi32>
    %c0_i32_23 = arith.constant 0 : i32
    %69 = vector.broadcast %c0_i32_23 : i32 to vector<64x1xi32>
    %70 = arith.cmpi sge, %68, %69 : vector<64x1xi32>
    %71 = arith.andi %66, %70 : vector<64x1xi1>
    %c-1_i32_24 = arith.constant -1 : i32
    %72 = vector.broadcast %c-1_i32_24 : i32 to vector<64x1xi32>
    %73 = arith.addi %55, %72 : vector<64x1xi32>
    %c8_i32_25 = arith.constant 8 : i32
    %74 = vector.broadcast %c8_i32_25 : i32 to vector<64x1xi32>
    %75 = arith.cmpi slt, %73, %74 : vector<64x1xi32>
    %76 = arith.andi %71, %75 : vector<64x1xi1>
    %cst_26 = arith.constant 0.000000e+00 : f32
    %77 = vector.shape_cast %76 : vector<64x1xi1> to vector<64x1xi1>
    %78 = vector.broadcast %77 : vector<64x1xi1> to vector<64x64xi1>
    %79 = vector.broadcast %cst_26 : f32 to vector<64x64xf32>
    %80 = arith.select %78, %57, %79 : vector<64x64xi1>, vector<64x64xf32>
    %c6 = arith.constant 6 : index
    %c0_27 = arith.constant 0 : index
    %81 = vector.load %arg3[%c6, %c0_27] : memref<40x128xf32, #tpu.memory_space<vmem>>, vector<1x64xf32>
    %82 = vector.broadcast %81 : vector<1x64xf32> to vector<64x64xf32>
    %83 = arith.mulf %80, %82 : vector<64x64xf32>
    %84 = arith.addf %56, %83 : vector<64x64xf32>
    %c8_i32_28 = arith.constant 8 : i32
    %85 = tpu.dynamic_rotate %50 by %c8_i32_28 dim 0 : vector<64x64xf32>, i32 -> vector<64x64xf32>
    %c-1_i32_29 = arith.constant -1 : i32
    %86 = vector.broadcast %c-1_i32_29 : i32 to vector<64x1xi32>
    %87 = arith.addi %53, %86 : vector<64x1xi32>
    %c0_i32_30 = arith.constant 0 : i32
    %88 = vector.broadcast %c0_i32_30 : i32 to vector<64x1xi32>
    %89 = arith.cmpi sge, %87, %88 : vector<64x1xi32>
    %c-1_i32_31 = arith.constant -1 : i32
    %90 = vector.broadcast %c-1_i32_31 : i32 to vector<64x1xi32>
    %91 = arith.addi %53, %90 : vector<64x1xi32>
    %c8_i32_32 = arith.constant 8 : i32
    %92 = vector.broadcast %c8_i32_32 : i32 to vector<64x1xi32>
    %93 = arith.cmpi slt, %91, %92 : vector<64x1xi32>
    %94 = arith.andi %89, %93 : vector<64x1xi1>
    %c0_i32_33 = arith.constant 0 : i32
    %95 = vector.broadcast %c0_i32_33 : i32 to vector<64x1xi32>
    %96 = arith.addi %55, %95 : vector<64x1xi32>
    %c0_i32_34 = arith.constant 0 : i32
    %97 = vector.broadcast %c0_i32_34 : i32 to vector<64x1xi32>
    %98 = arith.cmpi sge, %96, %97 : vector<64x1xi32>
    %99 = arith.andi %94, %98 : vector<64x1xi1>
    %c0_i32_35 = arith.constant 0 : i32
    %100 = vector.broadcast %c0_i32_35 : i32 to vector<64x1xi32>
    %101 = arith.addi %55, %100 : vector<64x1xi32>
    %c8_i32_36 = arith.constant 8 : i32
    %102 = vector.broadcast %c8_i32_36 : i32 to vector<64x1xi32>
    %103 = arith.cmpi slt, %101, %102 : vector<64x1xi32>
    %104 = arith.andi %99, %103 : vector<64x1xi1>
    %cst_37 = arith.constant 0.000000e+00 : f32
    %105 = vector.shape_cast %104 : vector<64x1xi1> to vector<64x1xi1>
    %106 = vector.broadcast %105 : vector<64x1xi1> to vector<64x64xi1>
    %107 = vector.broadcast %cst_37 : f32 to vector<64x64xf32>
    %108 = arith.select %106, %85, %107 : vector<64x64xi1>, vector<64x64xf32>
    %c7 = arith.constant 7 : index
    %c0_38 = arith.constant 0 : index
    %109 = vector.load %arg3[%c7, %c0_38] : memref<40x128xf32, #tpu.memory_space<vmem>>, vector<1x64xf32>
    %110 = vector.broadcast %109 : vector<1x64xf32> to vector<64x64xf32>
    %111 = arith.mulf %108, %110 : vector<64x64xf32>
    %112 = arith.addf %84, %111 : vector<64x64xf32>
    %c7_i32_39 = arith.constant 7 : i32
    %113 = tpu.dynamic_rotate %50 by %c7_i32_39 dim 0 : vector<64x64xf32>, i32 -> vector<64x64xf32>
    %c-1_i32_40 = arith.constant -1 : i32
    %114 = vector.broadcast %c-1_i32_40 : i32 to vector<64x1xi32>
    %115 = arith.addi %53, %114 : vector<64x1xi32>
    %c0_i32_41 = arith.constant 0 : i32
    %116 = vector.broadcast %c0_i32_41 : i32 to vector<64x1xi32>
    %117 = arith.cmpi sge, %115, %116 : vector<64x1xi32>
    %c-1_i32_42 = arith.constant -1 : i32
    %118 = vector.broadcast %c-1_i32_42 : i32 to vector<64x1xi32>
    %119 = arith.addi %53, %118 : vector<64x1xi32>
    %c8_i32_43 = arith.constant 8 : i32
    %120 = vector.broadcast %c8_i32_43 : i32 to vector<64x1xi32>
    %121 = arith.cmpi slt, %119, %120 : vector<64x1xi32>
    %122 = arith.andi %117, %121 : vector<64x1xi1>
    %c1_i32 = arith.constant 1 : i32
    %123 = vector.broadcast %c1_i32 : i32 to vector<64x1xi32>
    %124 = arith.addi %55, %123 : vector<64x1xi32>
    %c0_i32_44 = arith.constant 0 : i32
    %125 = vector.broadcast %c0_i32_44 : i32 to vector<64x1xi32>
    %126 = arith.cmpi sge, %124, %125 : vector<64x1xi32>
    %127 = arith.andi %122, %126 : vector<64x1xi1>
    %c1_i32_45 = arith.constant 1 : i32
    %128 = vector.broadcast %c1_i32_45 : i32 to vector<64x1xi32>
    %129 = arith.addi %55, %128 : vector<64x1xi32>
    %c8_i32_46 = arith.constant 8 : i32
    %130 = vector.broadcast %c8_i32_46 : i32 to vector<64x1xi32>
    %131 = arith.cmpi slt, %129, %130 : vector<64x1xi32>
    %132 = arith.andi %127, %131 : vector<64x1xi1>
    %cst_47 = arith.constant 0.000000e+00 : f32
    %133 = vector.shape_cast %132 : vector<64x1xi1> to vector<64x1xi1>
    %134 = vector.broadcast %133 : vector<64x1xi1> to vector<64x64xi1>
    %135 = vector.broadcast %cst_47 : f32 to vector<64x64xf32>
    %136 = arith.select %134, %113, %135 : vector<64x64xi1>, vector<64x64xf32>
    %c8 = arith.constant 8 : index
    %c0_48 = arith.constant 0 : index
    %137 = vector.load %arg3[%c8, %c0_48] : memref<40x128xf32, #tpu.memory_space<vmem>>, vector<1x64xf32>
    %138 = vector.broadcast %137 : vector<1x64xf32> to vector<64x64xf32>
    %139 = arith.mulf %136, %138 : vector<64x64xf32>
    %140 = arith.addf %112, %139 : vector<64x64xf32>
    %c1_i32_49 = arith.constant 1 : i32
    %141 = tpu.dynamic_rotate %50 by %c1_i32_49 dim 0 : vector<64x64xf32>, i32 -> vector<64x64xf32>
    %c0_i32_50 = arith.constant 0 : i32
    %142 = vector.broadcast %c0_i32_50 : i32 to vector<64x1xi32>
    %143 = arith.addi %53, %142 : vector<64x1xi32>
    %c0_i32_51 = arith.constant 0 : i32
    %144 = vector.broadcast %c0_i32_51 : i32 to vector<64x1xi32>
    %145 = arith.cmpi sge, %143, %144 : vector<64x1xi32>
    %c0_i32_52 = arith.constant 0 : i32
    %146 = vector.broadcast %c0_i32_52 : i32 to vector<64x1xi32>
    %147 = arith.addi %53, %146 : vector<64x1xi32>
    %c8_i32_53 = arith.constant 8 : i32
    %148 = vector.broadcast %c8_i32_53 : i32 to vector<64x1xi32>
    %149 = arith.cmpi slt, %147, %148 : vector<64x1xi32>
    %150 = arith.andi %145, %149 : vector<64x1xi1>
    %c-1_i32_54 = arith.constant -1 : i32
    %151 = vector.broadcast %c-1_i32_54 : i32 to vector<64x1xi32>
    %152 = arith.addi %55, %151 : vector<64x1xi32>
    %c0_i32_55 = arith.constant 0 : i32
    %153 = vector.broadcast %c0_i32_55 : i32 to vector<64x1xi32>
    %154 = arith.cmpi sge, %152, %153 : vector<64x1xi32>
    %155 = arith.andi %150, %154 : vector<64x1xi1>
    %c-1_i32_56 = arith.constant -1 : i32
    %156 = vector.broadcast %c-1_i32_56 : i32 to vector<64x1xi32>
    %157 = arith.addi %55, %156 : vector<64x1xi32>
    %c8_i32_57 = arith.constant 8 : i32
    %158 = vector.broadcast %c8_i32_57 : i32 to vector<64x1xi32>
    %159 = arith.cmpi slt, %157, %158 : vector<64x1xi32>
    %160 = arith.andi %155, %159 : vector<64x1xi1>
    %cst_58 = arith.constant 0.000000e+00 : f32
    %161 = vector.shape_cast %160 : vector<64x1xi1> to vector<64x1xi1>
    %162 = vector.broadcast %161 : vector<64x1xi1> to vector<64x64xi1>
    %163 = vector.broadcast %cst_58 : f32 to vector<64x64xf32>
    %164 = arith.select %162, %141, %163 : vector<64x64xi1>, vector<64x64xf32>
    %c9 = arith.constant 9 : index
    %c0_59 = arith.constant 0 : index
    %165 = vector.load %arg3[%c9, %c0_59] : memref<40x128xf32, #tpu.memory_space<vmem>>, vector<1x64xf32>
    %166 = vector.broadcast %165 : vector<1x64xf32> to vector<64x64xf32>
    %167 = arith.mulf %164, %166 : vector<64x64xf32>
    %168 = arith.addf %140, %167 : vector<64x64xf32>
    %c0_i32_60 = arith.constant 0 : i32
    %169 = vector.broadcast %c0_i32_60 : i32 to vector<64x1xi32>
    %170 = arith.addi %53, %169 : vector<64x1xi32>
    %c0_i32_61 = arith.constant 0 : i32
    %171 = vector.broadcast %c0_i32_61 : i32 to vector<64x1xi32>
    %172 = arith.cmpi sge, %170, %171 : vector<64x1xi32>
    %c0_i32_62 = arith.constant 0 : i32
    %173 = vector.broadcast %c0_i32_62 : i32 to vector<64x1xi32>
    %174 = arith.addi %53, %173 : vector<64x1xi32>
    %c8_i32_63 = arith.constant 8 : i32
    %175 = vector.broadcast %c8_i32_63 : i32 to vector<64x1xi32>
    %176 = arith.cmpi slt, %174, %175 : vector<64x1xi32>
    %177 = arith.andi %172, %176 : vector<64x1xi1>
    %c0_i32_64 = arith.constant 0 : i32
    %178 = vector.broadcast %c0_i32_64 : i32 to vector<64x1xi32>
    %179 = arith.addi %55, %178 : vector<64x1xi32>
    %c0_i32_65 = arith.constant 0 : i32
    %180 = vector.broadcast %c0_i32_65 : i32 to vector<64x1xi32>
    %181 = arith.cmpi sge, %179, %180 : vector<64x1xi32>
    %182 = arith.andi %177, %181 : vector<64x1xi1>
    %c0_i32_66 = arith.constant 0 : i32
    %183 = vector.broadcast %c0_i32_66 : i32 to vector<64x1xi32>
    %184 = arith.addi %55, %183 : vector<64x1xi32>
    %c8_i32_67 = arith.constant 8 : i32
    %185 = vector.broadcast %c8_i32_67 : i32 to vector<64x1xi32>
    %186 = arith.cmpi slt, %184, %185 : vector<64x1xi32>
    %187 = arith.andi %182, %186 : vector<64x1xi1>
    %cst_68 = arith.constant 0.000000e+00 : f32
    %188 = vector.shape_cast %187 : vector<64x1xi1> to vector<64x1xi1>
    %189 = vector.broadcast %188 : vector<64x1xi1> to vector<64x64xi1>
    %190 = vector.broadcast %cst_68 : f32 to vector<64x64xf32>
    %191 = arith.select %189, %50, %190 : vector<64x64xi1>, vector<64x64xf32>
    %c10 = arith.constant 10 : index
    %c0_69 = arith.constant 0 : index
    %192 = vector.load %arg3[%c10, %c0_69] : memref<40x128xf32, #tpu.memory_space<vmem>>, vector<1x64xf32>
    %193 = vector.broadcast %192 : vector<1x64xf32> to vector<64x64xf32>
    %194 = arith.mulf %191, %193 : vector<64x64xf32>
    %195 = arith.addf %168, %194 : vector<64x64xf32>
    %c63_i32 = arith.constant 63 : i32
    %196 = tpu.dynamic_rotate %50 by %c63_i32 dim 0 : vector<64x64xf32>, i32 -> vector<64x64xf32>
    %c0_i32_70 = arith.constant 0 : i32
    %197 = vector.broadcast %c0_i32_70 : i32 to vector<64x1xi32>
    %198 = arith.addi %53, %197 : vector<64x1xi32>
    %c0_i32_71 = arith.constant 0 : i32
    %199 = vector.broadcast %c0_i32_71 : i32 to vector<64x1xi32>
    %200 = arith.cmpi sge, %198, %199 : vector<64x1xi32>
    %c0_i32_72 = arith.constant 0 : i32
    %201 = vector.broadcast %c0_i32_72 : i32 to vector<64x1xi32>
    %202 = arith.addi %53, %201 : vector<64x1xi32>
    %c8_i32_73 = arith.constant 8 : i32
    %203 = vector.broadcast %c8_i32_73 : i32 to vector<64x1xi32>
    %204 = arith.cmpi slt, %202, %203 : vector<64x1xi32>
    %205 = arith.andi %200, %204 : vector<64x1xi1>
    %c1_i32_74 = arith.constant 1 : i32
    %206 = vector.broadcast %c1_i32_74 : i32 to vector<64x1xi32>
    %207 = arith.addi %55, %206 : vector<64x1xi32>
    %c0_i32_75 = arith.constant 0 : i32
    %208 = vector.broadcast %c0_i32_75 : i32 to vector<64x1xi32>
    %209 = arith.cmpi sge, %207, %208 : vector<64x1xi32>
    %210 = arith.andi %205, %209 : vector<64x1xi1>
    %c1_i32_76 = arith.constant 1 : i32
    %211 = vector.broadcast %c1_i32_76 : i32 to vector<64x1xi32>
    %212 = arith.addi %55, %211 : vector<64x1xi32>
    %c8_i32_77 = arith.constant 8 : i32
    %213 = vector.broadcast %c8_i32_77 : i32 to vector<64x1xi32>
    %214 = arith.cmpi slt, %212, %213 : vector<64x1xi32>
    %215 = arith.andi %210, %214 : vector<64x1xi1>
    %cst_78 = arith.constant 0.000000e+00 : f32
    %216 = vector.shape_cast %215 : vector<64x1xi1> to vector<64x1xi1>
    %217 = vector.broadcast %216 : vector<64x1xi1> to vector<64x64xi1>
    %218 = vector.broadcast %cst_78 : f32 to vector<64x64xf32>
    %219 = arith.select %217, %196, %218 : vector<64x64xi1>, vector<64x64xf32>
    %c11 = arith.constant 11 : index
    %c0_79 = arith.constant 0 : index
    %220 = vector.load %arg3[%c11, %c0_79] : memref<40x128xf32, #tpu.memory_space<vmem>>, vector<1x64xf32>
    %221 = vector.broadcast %220 : vector<1x64xf32> to vector<64x64xf32>
    %222 = arith.mulf %219, %221 : vector<64x64xf32>
    %223 = arith.addf %195, %222 : vector<64x64xf32>
    %c57_i32 = arith.constant 57 : i32
    %224 = tpu.dynamic_rotate %50 by %c57_i32 dim 0 : vector<64x64xf32>, i32 -> vector<64x64xf32>
    %c1_i32_80 = arith.constant 1 : i32
    %225 = vector.broadcast %c1_i32_80 : i32 to vector<64x1xi32>
    %226 = arith.addi %53, %225 : vector<64x1xi32>
    %c0_i32_81 = arith.constant 0 : i32
    %227 = vector.broadcast %c0_i32_81 : i32 to vector<64x1xi32>
    %228 = arith.cmpi sge, %226, %227 : vector<64x1xi32>
    %c1_i32_82 = arith.constant 1 : i32
    %229 = vector.broadcast %c1_i32_82 : i32 to vector<64x1xi32>
    %230 = arith.addi %53, %229 : vector<64x1xi32>
    %c8_i32_83 = arith.constant 8 : i32
    %231 = vector.broadcast %c8_i32_83 : i32 to vector<64x1xi32>
    %232 = arith.cmpi slt, %230, %231 : vector<64x1xi32>
    %233 = arith.andi %228, %232 : vector<64x1xi1>
    %c-1_i32_84 = arith.constant -1 : i32
    %234 = vector.broadcast %c-1_i32_84 : i32 to vector<64x1xi32>
    %235 = arith.addi %55, %234 : vector<64x1xi32>
    %c0_i32_85 = arith.constant 0 : i32
    %236 = vector.broadcast %c0_i32_85 : i32 to vector<64x1xi32>
    %237 = arith.cmpi sge, %235, %236 : vector<64x1xi32>
    %238 = arith.andi %233, %237 : vector<64x1xi1>
    %c-1_i32_86 = arith.constant -1 : i32
    %239 = vector.broadcast %c-1_i32_86 : i32 to vector<64x1xi32>
    %240 = arith.addi %55, %239 : vector<64x1xi32>
    %c8_i32_87 = arith.constant 8 : i32
    %241 = vector.broadcast %c8_i32_87 : i32 to vector<64x1xi32>
    %242 = arith.cmpi slt, %240, %241 : vector<64x1xi32>
    %243 = arith.andi %238, %242 : vector<64x1xi1>
    %cst_88 = arith.constant 0.000000e+00 : f32
    %244 = vector.shape_cast %243 : vector<64x1xi1> to vector<64x1xi1>
    %245 = vector.broadcast %244 : vector<64x1xi1> to vector<64x64xi1>
    %246 = vector.broadcast %cst_88 : f32 to vector<64x64xf32>
    %247 = arith.select %245, %224, %246 : vector<64x64xi1>, vector<64x64xf32>
    %c12 = arith.constant 12 : index
    %c0_89 = arith.constant 0 : index
    %248 = vector.load %arg3[%c12, %c0_89] : memref<40x128xf32, #tpu.memory_space<vmem>>, vector<1x64xf32>
    %249 = vector.broadcast %248 : vector<1x64xf32> to vector<64x64xf32>
    %250 = arith.mulf %247, %249 : vector<64x64xf32>
    %251 = arith.addf %223, %250 : vector<64x64xf32>
    %c56_i32 = arith.constant 56 : i32
    %252 = tpu.dynamic_rotate %50 by %c56_i32 dim 0 : vector<64x64xf32>, i32 -> vector<64x64xf32>
    %c1_i32_90 = arith.constant 1 : i32
    %253 = vector.broadcast %c1_i32_90 : i32 to vector<64x1xi32>
    %254 = arith.addi %53, %253 : vector<64x1xi32>
    %c0_i32_91 = arith.constant 0 : i32
    %255 = vector.broadcast %c0_i32_91 : i32 to vector<64x1xi32>
    %256 = arith.cmpi sge, %254, %255 : vector<64x1xi32>
    %c1_i32_92 = arith.constant 1 : i32
    %257 = vector.broadcast %c1_i32_92 : i32 to vector<64x1xi32>
    %258 = arith.addi %53, %257 : vector<64x1xi32>
    %c8_i32_93 = arith.constant 8 : i32
    %259 = vector.broadcast %c8_i32_93 : i32 to vector<64x1xi32>
    %260 = arith.cmpi slt, %258, %259 : vector<64x1xi32>
    %261 = arith.andi %256, %260 : vector<64x1xi1>
    %c0_i32_94 = arith.constant 0 : i32
    %262 = vector.broadcast %c0_i32_94 : i32 to vector<64x1xi32>
    %263 = arith.addi %55, %262 : vector<64x1xi32>
    %c0_i32_95 = arith.constant 0 : i32
    %264 = vector.broadcast %c0_i32_95 : i32 to vector<64x1xi32>
    %265 = arith.cmpi sge, %263, %264 : vector<64x1xi32>
    %266 = arith.andi %261, %265 : vector<64x1xi1>
    %c0_i32_96 = arith.constant 0 : i32
    %267 = vector.broadcast %c0_i32_96 : i32 to vector<64x1xi32>
    %268 = arith.addi %55, %267 : vector<64x1xi32>
    %c8_i32_97 = arith.constant 8 : i32
    %269 = vector.broadcast %c8_i32_97 : i32 to vector<64x1xi32>
    %270 = arith.cmpi slt, %268, %269 : vector<64x1xi32>
    %271 = arith.andi %266, %270 : vector<64x1xi1>
    %cst_98 = arith.constant 0.000000e+00 : f32
    %272 = vector.shape_cast %271 : vector<64x1xi1> to vector<64x1xi1>
    %273 = vector.broadcast %272 : vector<64x1xi1> to vector<64x64xi1>
    %274 = vector.broadcast %cst_98 : f32 to vector<64x64xf32>
    %275 = arith.select %273, %252, %274 : vector<64x64xi1>, vector<64x64xf32>
    %c13 = arith.constant 13 : index
    %c0_99 = arith.constant 0 : index
    %276 = vector.load %arg3[%c13, %c0_99] : memref<40x128xf32, #tpu.memory_space<vmem>>, vector<1x64xf32>
    %277 = vector.broadcast %276 : vector<1x64xf32> to vector<64x64xf32>
    %278 = arith.mulf %275, %277 : vector<64x64xf32>
    %279 = arith.addf %251, %278 : vector<64x64xf32>
    %c55_i32 = arith.constant 55 : i32
    %280 = tpu.dynamic_rotate %50 by %c55_i32 dim 0 : vector<64x64xf32>, i32 -> vector<64x64xf32>
    %c1_i32_100 = arith.constant 1 : i32
    %281 = vector.broadcast %c1_i32_100 : i32 to vector<64x1xi32>
    %282 = arith.addi %53, %281 : vector<64x1xi32>
    %c0_i32_101 = arith.constant 0 : i32
    %283 = vector.broadcast %c0_i32_101 : i32 to vector<64x1xi32>
    %284 = arith.cmpi sge, %282, %283 : vector<64x1xi32>
    %c1_i32_102 = arith.constant 1 : i32
    %285 = vector.broadcast %c1_i32_102 : i32 to vector<64x1xi32>
    %286 = arith.addi %53, %285 : vector<64x1xi32>
    %c8_i32_103 = arith.constant 8 : i32
    %287 = vector.broadcast %c8_i32_103 : i32 to vector<64x1xi32>
    %288 = arith.cmpi slt, %286, %287 : vector<64x1xi32>
    %289 = arith.andi %284, %288 : vector<64x1xi1>
    %c1_i32_104 = arith.constant 1 : i32
    %290 = vector.broadcast %c1_i32_104 : i32 to vector<64x1xi32>
    %291 = arith.addi %55, %290 : vector<64x1xi32>
    %c0_i32_105 = arith.constant 0 : i32
    %292 = vector.broadcast %c0_i32_105 : i32 to vector<64x1xi32>
    %293 = arith.cmpi sge, %291, %292 : vector<64x1xi32>
    %294 = arith.andi %289, %293 : vector<64x1xi1>
    %c1_i32_106 = arith.constant 1 : i32
    %295 = vector.broadcast %c1_i32_106 : i32 to vector<64x1xi32>
    %296 = arith.addi %55, %295 : vector<64x1xi32>
    %c8_i32_107 = arith.constant 8 : i32
    %297 = vector.broadcast %c8_i32_107 : i32 to vector<64x1xi32>
    %298 = arith.cmpi slt, %296, %297 : vector<64x1xi32>
    %299 = arith.andi %294, %298 : vector<64x1xi1>
    %cst_108 = arith.constant 0.000000e+00 : f32
    %300 = vector.shape_cast %299 : vector<64x1xi1> to vector<64x1xi1>
    %301 = vector.broadcast %300 : vector<64x1xi1> to vector<64x64xi1>
    %302 = vector.broadcast %cst_108 : f32 to vector<64x64xf32>
    %303 = arith.select %301, %280, %302 : vector<64x64xi1>, vector<64x64xf32>
    %c14 = arith.constant 14 : index
    %c0_109 = arith.constant 0 : index
    %304 = vector.load %arg3[%c14, %c0_109] : memref<40x128xf32, #tpu.memory_space<vmem>>, vector<1x64xf32>
    %305 = vector.broadcast %304 : vector<1x64xf32> to vector<64x64xf32>
    %306 = arith.mulf %303, %305 : vector<64x64xf32>
    %307 = arith.addf %279, %306 : vector<64x64xf32>
    %c15 = arith.constant 15 : index
    %c0_110 = arith.constant 0 : index
    %308 = vector.load %arg3[%c15, %c0_110] : memref<40x128xf32, #tpu.memory_space<vmem>>, vector<1x64xf32>
    %309 = vector.broadcast %308 : vector<1x64xf32> to vector<64x64xf32>
    %310 = arith.addf %307, %309 : vector<64x64xf32>
    %c16 = arith.constant 16 : index
    %c0_111 = arith.constant 0 : index
    %311 = vector.load %arg3[%c16, %c0_111] : memref<40x128xf32, #tpu.memory_space<vmem>>, vector<1x64xf32>
    %312 = vector.broadcast %311 : vector<1x64xf32> to vector<64x64xf32>
    %313 = arith.mulf %310, %312 : vector<64x64xf32>
    %c17 = arith.constant 17 : index
    %c0_112 = arith.constant 0 : index
    %314 = vector.load %arg3[%c17, %c0_112] : memref<40x128xf32, #tpu.memory_space<vmem>>, vector<1x64xf32>
    %315 = vector.broadcast %314 : vector<1x64xf32> to vector<64x64xf32>
    %316 = arith.addf %313, %315 : vector<64x64xf32>
    %317 = arith.mulf %316, %316 : vector<64x64xf32>
    %318 = arith.mulf %316, %317 : vector<64x64xf32>
    %cst_113 = arith.constant 4.471500e-02 : f32
    %319 = vector.broadcast %cst_113 : f32 to vector<64x64xf32>
    %320 = arith.mulf %319, %318 : vector<64x64xf32>
    %321 = arith.addf %316, %320 : vector<64x64xf32>
    %cst_114 = arith.constant 0.797884583 : f32
    %322 = vector.broadcast %cst_114 : f32 to vector<64x64xf32>
    %323 = arith.mulf %322, %321 : vector<64x64xf32>
    %324 = math.tanh %323 : vector<64x64xf32>
    %cst_115 = arith.constant 1.000000e+00 : f32
    %325 = vector.broadcast %cst_115 : f32 to vector<64x64xf32>
    %326 = arith.addf %325, %324 : vector<64x64xf32>
    %cst_116 = arith.constant 5.000000e-01 : f32
    %327 = vector.broadcast %cst_116 : f32 to vector<64x64xf32>
    %328 = arith.mulf %327, %326 : vector<64x64xf32>
    %329 = arith.mulf %316, %328 : vector<64x64xf32>
    %cst_117 = arith.constant dense<0.000000e+00> : vector<64xf32>
    %330 = vector.multi_reduction <add>, %329, %cst_117 [0] : vector<64x64xf32> to vector<64xf32>
    %331 = vector.shape_cast %330 : vector<64xf32> to vector<1x64xf32>
    %cst_118 = arith.constant 6.400000e+01 : f32
    %332 = vector.broadcast %cst_118 : f32 to vector<1x64xf32>
    %333 = arith.divf %331, %332 : vector<1x64xf32>
    %c64 = arith.constant 64 : index
    %c0_119 = arith.constant 0 : index
    %334 = vector.load %arg2[%c64, %c0_119] : memref<560x128xbf16, #tpu.memory_space<vmem>>, vector<64x16xbf16>
    %335 = arith.truncf %333 : vector<1x64xf32> to vector<1x64xbf16>
    %cst_120 = arith.constant dense<0.000000e+00> : vector<1x16xf32>
    %336 = tpu.matmul %335, %334, %cst_120 {dimension_numbers = #tpu.dot_dimension_numbers<[1], [0], [0], [1], [0, 0, 1, 1], [], []>} : vector<1x64xbf16>, vector<64x16xbf16>, vector<1x16xf32> -> vector<1x16xf32>
    %c18 = arith.constant 18 : index
    %c0_121 = arith.constant 0 : index
    %337 = vector.load %arg3[%c18, %c0_121] : memref<40x128xf32, #tpu.memory_space<vmem>>, vector<1x16xf32>
    %338 = arith.addf %336, %337 : vector<1x16xf32>
    %339 = arith.negf %338 : vector<1x16xf32>
    %340 = math.exp %339 : vector<1x16xf32>
    %cst_122 = arith.constant 1.000000e+00 : f32
    %341 = vector.broadcast %cst_122 : f32 to vector<1x16xf32>
    %342 = arith.addf %341, %340 : vector<1x16xf32>
    %343 = arith.divf %341, %342 : vector<1x16xf32>
    %344 = arith.mulf %338, %343 : vector<1x16xf32>
    %c128 = arith.constant 128 : index
    %c0_123 = arith.constant 0 : index
    %345 = vector.load %arg2[%c128, %c0_123] : memref<560x128xbf16, #tpu.memory_space<vmem>>, vector<16x64xbf16>
    %346 = arith.truncf %344 : vector<1x16xf32> to vector<1x16xbf16>
    %cst_124 = arith.constant dense<0.000000e+00> : vector<1x64xf32>
    %347 = tpu.matmul %346, %345, %cst_124 {dimension_numbers = #tpu.dot_dimension_numbers<[1], [0], [0], [1], [0, 0, 1, 1], [], []>} : vector<1x16xbf16>, vector<16x64xbf16>, vector<1x64xf32> -> vector<1x64xf32>
    %c19 = arith.constant 19 : index
    %c0_125 = arith.constant 0 : index
    %348 = vector.load %arg3[%c19, %c0_125] : memref<40x128xf32, #tpu.memory_space<vmem>>, vector<1x64xf32>
    %349 = arith.addf %347, %348 : vector<1x64xf32>
    %350 = arith.negf %349 : vector<1x64xf32>
    %351 = math.exp %350 : vector<1x64xf32>
    %cst_126 = arith.constant 1.000000e+00 : f32
    %352 = vector.broadcast %cst_126 : f32 to vector<1x64xf32>
    %353 = arith.addf %352, %351 : vector<1x64xf32>
    %354 = arith.divf %352, %353 : vector<1x64xf32>
    %355 = vector.broadcast %354 : vector<1x64xf32> to vector<64x64xf32>
    %356 = arith.mulf %329, %355 : vector<64x64xf32>
    %c144 = arith.constant 144 : index
    %c0_127 = arith.constant 0 : index
    %357 = vector.load %arg2[%c144, %c0_127] : memref<560x128xbf16, #tpu.memory_space<vmem>>, vector<64x32xbf16>
    %358 = arith.truncf %356 : vector<64x64xf32> to vector<64x64xbf16>
    %cst_128 = arith.constant dense<0.000000e+00> : vector<64x32xf32>
    %359 = tpu.matmul %358, %357, %cst_128 {dimension_numbers = #tpu.dot_dimension_numbers<[1], [0], [0], [1], [0, 0, 1, 1], [], []>} : vector<64x64xbf16>, vector<64x32xbf16>, vector<64x32xf32> -> vector<64x32xf32>
    %c20 = arith.constant 20 : index
    %c0_129 = arith.constant 0 : index
    %360 = vector.load %arg3[%c20, %c0_129] : memref<40x128xf32, #tpu.memory_space<vmem>>, vector<1x32xf32>
    %361 = vector.broadcast %360 : vector<1x32xf32> to vector<64x32xf32>
    %362 = arith.addf %359, %361 : vector<64x32xf32>
    %363 = arith.addf %19, %362 : vector<64x32xf32>
    %364 = tpu.iota {dimensions = array<i32: 0>} : vector<64x1xi32>
    %c3_i32_130 = arith.constant 3 : i32
    %365 = vector.broadcast %c3_i32_130 : i32 to vector<64x1xi32>
    %366 = arith.shrsi %364, %365 : vector<64x1xi32>
    %c7_i32_131 = arith.constant 7 : i32
    %367 = vector.broadcast %c7_i32_131 : i32 to vector<64x1xi32>
    %368 = arith.andi %364, %367 : vector<64x1xi32>
    %c2_i32 = arith.constant 2 : i32
    %369 = vector.broadcast %c2_i32 : i32 to vector<64x1xi32>
    %370 = arith.shrsi %366, %369 : vector<64x1xi32>
    %c2_i32_132 = arith.constant 2 : i32
    %371 = vector.broadcast %c2_i32_132 : i32 to vector<64x1xi32>
    %372 = arith.shrsi %368, %371 : vector<64x1xi32>
    %c2_i32_133 = arith.constant 2 : i32
    %373 = vector.broadcast %c2_i32_133 : i32 to vector<64x1xi32>
    %374 = arith.muli %370, %373 : vector<64x1xi32>
    %375 = arith.addi %374, %372 : vector<64x1xi32>
    %376 = tpu.iota {dimensions = array<i32: 1>} : vector<1x64xi32>
    %c3_i32_134 = arith.constant 3 : i32
    %377 = vector.broadcast %c3_i32_134 : i32 to vector<1x64xi32>
    %378 = arith.shrsi %376, %377 : vector<1x64xi32>
    %c7_i32_135 = arith.constant 7 : i32
    %379 = vector.broadcast %c7_i32_135 : i32 to vector<1x64xi32>
    %380 = arith.andi %376, %379 : vector<1x64xi32>
    %c2_i32_136 = arith.constant 2 : i32
    %381 = vector.broadcast %c2_i32_136 : i32 to vector<1x64xi32>
    %382 = arith.shrsi %378, %381 : vector<1x64xi32>
    %c2_i32_137 = arith.constant 2 : i32
    %383 = vector.broadcast %c2_i32_137 : i32 to vector<1x64xi32>
    %384 = arith.shrsi %380, %383 : vector<1x64xi32>
    %c2_i32_138 = arith.constant 2 : i32
    %385 = vector.broadcast %c2_i32_138 : i32 to vector<1x64xi32>
    %386 = arith.muli %382, %385 : vector<1x64xi32>
    %387 = arith.addi %386, %384 : vector<1x64xi32>
    %388 = vector.broadcast %375 : vector<64x1xi32> to vector<64x64xi32>
    %389 = vector.broadcast %387 : vector<1x64xi32> to vector<64x64xi32>
    %390 = arith.cmpi eq, %388, %389 : vector<64x64xi32>
    %c21 = arith.constant 21 : index
    %c0_139 = arith.constant 0 : index
    %391 = vector.load %arg3[%c21, %c0_139] : memref<40x128xf32, #tpu.memory_space<vmem>>, vector<1x32xf32>
    %c22 = arith.constant 22 : index
    %c0_140 = arith.constant 0 : index
    %392 = vector.load %arg3[%c22, %c0_140] : memref<40x128xf32, #tpu.memory_space<vmem>>, vector<1x32xf32>
    %cst_141 = arith.constant dense<0.000000e+00> : vector<64xf32>
    %393 = vector.multi_reduction <add>, %363, %cst_141 [1] : vector<64x32xf32> to vector<64xf32>
    %394 = vector.shape_cast %393 : vector<64xf32> to vector<64x1xf32>
    %cst_142 = arith.constant 3.200000e+01 : f32
    %395 = vector.broadcast %cst_142 : f32 to vector<64x1xf32>
    %396 = arith.divf %394, %395 : vector<64x1xf32>
    %397 = vector.broadcast %396 : vector<64x1xf32> to vector<64x32xf32>
    %398 = arith.subf %363, %397 : vector<64x32xf32>
    %399 = arith.mulf %398, %398 : vector<64x32xf32>
    %cst_143 = arith.constant dense<0.000000e+00> : vector<64xf32>
    %400 = vector.multi_reduction <add>, %399, %cst_143 [1] : vector<64x32xf32> to vector<64xf32>
    %401 = vector.shape_cast %400 : vector<64xf32> to vector<64x1xf32>
    %cst_144 = arith.constant 3.200000e+01 : f32
    %402 = vector.broadcast %cst_144 : f32 to vector<64x1xf32>
    %403 = arith.divf %401, %402 : vector<64x1xf32>
    %404 = vector.broadcast %396 : vector<64x1xf32> to vector<64x32xf32>
    %405 = arith.subf %363, %404 : vector<64x32xf32>
    %cst_145 = arith.constant 9.99999974E-6 : f32
    %406 = vector.broadcast %cst_145 : f32 to vector<64x1xf32>
    %407 = arith.addf %403, %406 : vector<64x1xf32>
    %408 = math.rsqrt %407 : vector<64x1xf32>
    %409 = vector.broadcast %408 : vector<64x1xf32> to vector<64x32xf32>
    %410 = arith.mulf %405, %409 : vector<64x32xf32>
    %411 = vector.broadcast %391 : vector<1x32xf32> to vector<64x32xf32>
    %412 = arith.mulf %410, %411 : vector<64x32xf32>
    %413 = vector.broadcast %392 : vector<1x32xf32> to vector<64x32xf32>
    %414 = arith.addf %412, %413 : vector<64x32xf32>
    %c208 = arith.constant 208 : index
    %c0_146 = arith.constant 0 : index
    %415 = vector.load %arg2[%c208, %c0_146] : memref<560x128xbf16, #tpu.memory_space<vmem>>, vector<32x96xbf16>
    %416 = arith.truncf %414 : vector<64x32xf32> to vector<64x32xbf16>
    %cst_147 = arith.constant dense<0.000000e+00> : vector<64x96xf32>
    %417 = tpu.matmul %416, %415, %cst_147 {dimension_numbers = #tpu.dot_dimension_numbers<[1], [0], [0], [1], [0, 0, 1, 1], [], []>} : vector<64x32xbf16>, vector<32x96xbf16>, vector<64x96xf32> -> vector<64x96xf32>
    %c23 = arith.constant 23 : index
    %c0_148 = arith.constant 0 : index
    %418 = vector.load %arg3[%c23, %c0_148] : memref<40x128xf32, #tpu.memory_space<vmem>>, vector<1x96xf32>
    %419 = vector.broadcast %418 : vector<1x96xf32> to vector<64x96xf32>
    %420 = arith.addf %417, %419 : vector<64x96xf32>
    %421 = vector.extract_strided_slice %420 {offsets = [0, 0], sizes = [64, 16], strides = [1, 1]} : vector<64x96xf32> to vector<64x16xf32>
    %cst_149 = arith.constant 2.500000e-01 : f32
    %422 = vector.broadcast %cst_149 : f32 to vector<64x16xf32>
    %423 = arith.mulf %421, %422 : vector<64x16xf32>
    %424 = arith.truncf %423 : vector<64x16xf32> to vector<64x16xbf16>
    %425 = vector.extract_strided_slice %420 {offsets = [0, 32], sizes = [64, 16], strides = [1, 1]} : vector<64x96xf32> to vector<64x16xf32>
    %426 = arith.truncf %425 : vector<64x16xf32> to vector<64x16xbf16>
    %427 = vector.extract_strided_slice %420 {offsets = [0, 64], sizes = [64, 16], strides = [1, 1]} : vector<64x96xf32> to vector<64x16xf32>
    %cst_150 = arith.constant dense<0.000000e+00> : vector<64x64xf32>
    %428 = tpu.matmul %424, %426, %cst_150 {dimension_numbers = #tpu.dot_dimension_numbers<[1], [1], [0], [0], [0, 0, 1, 0], [], []>} : vector<64x16xbf16>, vector<64x16xbf16>, vector<64x64xf32> -> vector<64x64xf32>
    %cst_151 = arith.constant -1.000000e+30 : f32
    %429 = vector.broadcast %cst_151 : f32 to vector<64x64xf32>
    %430 = arith.select %390, %428, %429 : vector<64x64xi1>, vector<64x64xf32>
    %cst_152 = arith.constant dense<0xFF800000> : vector<64xf32>
    %431 = vector.multi_reduction <maximumf>, %430, %cst_152 [1] : vector<64x64xf32> to vector<64xf32>
    %432 = vector.shape_cast %431 : vector<64xf32> to vector<64x1xf32>
    %433 = vector.broadcast %432 : vector<64x1xf32> to vector<64x64xf32>
    %434 = arith.subf %430, %433 : vector<64x64xf32>
    %435 = math.exp %434 : vector<64x64xf32>
    %cst_153 = arith.constant dense<0.000000e+00> : vector<64xf32>
    %436 = vector.multi_reduction <add>, %435, %cst_153 [1] : vector<64x64xf32> to vector<64xf32>
    %437 = vector.shape_cast %436 : vector<64xf32> to vector<64x1xf32>
    %438 = tpu.reciprocal %437 {approx = true} : vector<64x1xf32> -> vector<64x1xf32>
    %439 = vector.broadcast %438 : vector<64x1xf32> to vector<64x64xf32>
    %440 = arith.mulf %435, %439 : vector<64x64xf32>
    %441 = arith.truncf %440 : vector<64x64xf32> to vector<64x64xbf16>
    %442 = arith.truncf %427 : vector<64x16xf32> to vector<64x16xbf16>
    %cst_154 = arith.constant dense<0.000000e+00> : vector<64x16xf32>
    %443 = tpu.matmul %441, %442, %cst_154 {dimension_numbers = #tpu.dot_dimension_numbers<[1], [0], [0], [1], [0, 0, 1, 1], [], []>} : vector<64x64xbf16>, vector<64x16xbf16>, vector<64x16xf32> -> vector<64x16xf32>
    %444 = vector.extract_strided_slice %420 {offsets = [0, 16], sizes = [64, 16], strides = [1, 1]} : vector<64x96xf32> to vector<64x16xf32>
    %cst_155 = arith.constant 2.500000e-01 : f32
    %445 = vector.broadcast %cst_155 : f32 to vector<64x16xf32>
    %446 = arith.mulf %444, %445 : vector<64x16xf32>
    %447 = arith.truncf %446 : vector<64x16xf32> to vector<64x16xbf16>
    %448 = vector.extract_strided_slice %420 {offsets = [0, 48], sizes = [64, 16], strides = [1, 1]} : vector<64x96xf32> to vector<64x16xf32>
    %449 = arith.truncf %448 : vector<64x16xf32> to vector<64x16xbf16>
    %450 = vector.extract_strided_slice %420 {offsets = [0, 80], sizes = [64, 16], strides = [1, 1]} : vector<64x96xf32> to vector<64x16xf32>
    %cst_156 = arith.constant dense<0.000000e+00> : vector<64x64xf32>
    %451 = tpu.matmul %447, %449, %cst_156 {dimension_numbers = #tpu.dot_dimension_numbers<[1], [1], [0], [0], [0, 0, 1, 0], [], []>} : vector<64x16xbf16>, vector<64x16xbf16>, vector<64x64xf32> -> vector<64x64xf32>
    %cst_157 = arith.constant -1.000000e+30 : f32
    %452 = vector.broadcast %cst_157 : f32 to vector<64x64xf32>
    %453 = arith.select %390, %451, %452 : vector<64x64xi1>, vector<64x64xf32>
    %cst_158 = arith.constant dense<0xFF800000> : vector<64xf32>
    %454 = vector.multi_reduction <maximumf>, %453, %cst_158 [1] : vector<64x64xf32> to vector<64xf32>
    %455 = vector.shape_cast %454 : vector<64xf32> to vector<64x1xf32>
    %456 = vector.broadcast %455 : vector<64x1xf32> to vector<64x64xf32>
    %457 = arith.subf %453, %456 : vector<64x64xf32>
    %458 = math.exp %457 : vector<64x64xf32>
    %cst_159 = arith.constant dense<0.000000e+00> : vector<64xf32>
    %459 = vector.multi_reduction <add>, %458, %cst_159 [1] : vector<64x64xf32> to vector<64xf32>
    %460 = vector.shape_cast %459 : vector<64xf32> to vector<64x1xf32>
    %461 = tpu.reciprocal %460 {approx = true} : vector<64x1xf32> -> vector<64x1xf32>
    %462 = vector.broadcast %461 : vector<64x1xf32> to vector<64x64xf32>
    %463 = arith.mulf %458, %462 : vector<64x64xf32>
    %464 = arith.truncf %463 : vector<64x64xf32> to vector<64x64xbf16>
    %465 = arith.truncf %450 : vector<64x16xf32> to vector<64x16xbf16>
    %cst_160 = arith.constant dense<0.000000e+00> : vector<64x16xf32>
    %466 = tpu.matmul %464, %465, %cst_160 {dimension_numbers = #tpu.dot_dimension_numbers<[1], [0], [0], [1], [0, 0, 1, 1], [], []>} : vector<64x64xbf16>, vector<64x16xbf16>, vector<64x16xf32> -> vector<64x16xf32>
    %467 = tpu.concatenate %443, %466 in 1 : vector<64x16xf32>, vector<64x16xf32> -> vector<64x32xf32>
    %c240 = arith.constant 240 : index
    %c0_161 = arith.constant 0 : index
    %468 = vector.load %arg2[%c240, %c0_161] : memref<560x128xbf16, #tpu.memory_space<vmem>>, vector<32x32xbf16>
    %469 = arith.truncf %467 : vector<64x32xf32> to vector<64x32xbf16>
    %cst_162 = arith.constant dense<0.000000e+00> : vector<64x32xf32>
    %470 = tpu.matmul %469, %468, %cst_162 {dimension_numbers = #tpu.dot_dimension_numbers<[1], [0], [0], [1], [0, 0, 1, 1], [], []>} : vector<64x32xbf16>, vector<32x32xbf16>, vector<64x32xf32> -> vector<64x32xf32>
    %471 = arith.addf %363, %470 : vector<64x32xf32>
    %c24 = arith.constant 24 : index
    %c0_163 = arith.constant 0 : index
    %472 = vector.load %arg3[%c24, %c0_163] : memref<40x128xf32, #tpu.memory_space<vmem>>, vector<1x32xf32>
    %473 = vector.broadcast %472 : vector<1x32xf32> to vector<64x32xf32>
    %474 = arith.addf %471, %473 : vector<64x32xf32>
    %c25 = arith.constant 25 : index
    %c0_164 = arith.constant 0 : index
    %475 = vector.load %arg3[%c25, %c0_164] : memref<40x128xf32, #tpu.memory_space<vmem>>, vector<1x32xf32>
    %c26 = arith.constant 26 : index
    %c0_165 = arith.constant 0 : index
    %476 = vector.load %arg3[%c26, %c0_165] : memref<40x128xf32, #tpu.memory_space<vmem>>, vector<1x32xf32>
    %cst_166 = arith.constant dense<0.000000e+00> : vector<64xf32>
    %477 = vector.multi_reduction <add>, %474, %cst_166 [1] : vector<64x32xf32> to vector<64xf32>
    %478 = vector.shape_cast %477 : vector<64xf32> to vector<64x1xf32>
    %cst_167 = arith.constant 3.200000e+01 : f32
    %479 = vector.broadcast %cst_167 : f32 to vector<64x1xf32>
    %480 = arith.divf %478, %479 : vector<64x1xf32>
    %481 = vector.broadcast %480 : vector<64x1xf32> to vector<64x32xf32>
    %482 = arith.subf %474, %481 : vector<64x32xf32>
    %483 = arith.mulf %482, %482 : vector<64x32xf32>
    %cst_168 = arith.constant dense<0.000000e+00> : vector<64xf32>
    %484 = vector.multi_reduction <add>, %483, %cst_168 [1] : vector<64x32xf32> to vector<64xf32>
    %485 = vector.shape_cast %484 : vector<64xf32> to vector<64x1xf32>
    %cst_169 = arith.constant 3.200000e+01 : f32
    %486 = vector.broadcast %cst_169 : f32 to vector<64x1xf32>
    %487 = arith.divf %485, %486 : vector<64x1xf32>
    %488 = vector.broadcast %480 : vector<64x1xf32> to vector<64x32xf32>
    %489 = arith.subf %474, %488 : vector<64x32xf32>
    %cst_170 = arith.constant 9.99999974E-6 : f32
    %490 = vector.broadcast %cst_170 : f32 to vector<64x1xf32>
    %491 = arith.addf %487, %490 : vector<64x1xf32>
    %492 = math.rsqrt %491 : vector<64x1xf32>
    %493 = vector.broadcast %492 : vector<64x1xf32> to vector<64x32xf32>
    %494 = arith.mulf %489, %493 : vector<64x32xf32>
    %495 = vector.broadcast %475 : vector<1x32xf32> to vector<64x32xf32>
    %496 = arith.mulf %494, %495 : vector<64x32xf32>
    %497 = vector.broadcast %476 : vector<1x32xf32> to vector<64x32xf32>
    %498 = arith.addf %496, %497 : vector<64x32xf32>
    %c272 = arith.constant 272 : index
    %c0_171 = arith.constant 0 : index
    %499 = vector.load %arg2[%c272, %c0_171] : memref<560x128xbf16, #tpu.memory_space<vmem>>, vector<32x64xbf16>
    %500 = arith.truncf %498 : vector<64x32xf32> to vector<64x32xbf16>
    %cst_172 = arith.constant dense<0.000000e+00> : vector<64x64xf32>
    %501 = tpu.matmul %500, %499, %cst_172 {dimension_numbers = #tpu.dot_dimension_numbers<[1], [0], [0], [1], [0, 0, 1, 1], [], []>} : vector<64x32xbf16>, vector<32x64xbf16>, vector<64x64xf32> -> vector<64x64xf32>
    %c27 = arith.constant 27 : index
    %c0_173 = arith.constant 0 : index
    %502 = vector.load %arg3[%c27, %c0_173] : memref<40x128xf32, #tpu.memory_space<vmem>>, vector<1x64xf32>
    %503 = vector.broadcast %502 : vector<1x64xf32> to vector<64x64xf32>
    %504 = arith.addf %501, %503 : vector<64x64xf32>
    %505 = arith.mulf %504, %504 : vector<64x64xf32>
    %506 = arith.mulf %504, %505 : vector<64x64xf32>
    %cst_174 = arith.constant 4.471500e-02 : f32
    %507 = vector.broadcast %cst_174 : f32 to vector<64x64xf32>
    %508 = arith.mulf %507, %506 : vector<64x64xf32>
    %509 = arith.addf %504, %508 : vector<64x64xf32>
    %cst_175 = arith.constant 0.797884583 : f32
    %510 = vector.broadcast %cst_175 : f32 to vector<64x64xf32>
    %511 = arith.mulf %510, %509 : vector<64x64xf32>
    %512 = math.tanh %511 : vector<64x64xf32>
    %cst_176 = arith.constant 1.000000e+00 : f32
    %513 = vector.broadcast %cst_176 : f32 to vector<64x64xf32>
    %514 = arith.addf %513, %512 : vector<64x64xf32>
    %cst_177 = arith.constant 5.000000e-01 : f32
    %515 = vector.broadcast %cst_177 : f32 to vector<64x64xf32>
    %516 = arith.mulf %515, %514 : vector<64x64xf32>
    %517 = arith.mulf %504, %516 : vector<64x64xf32>
    %c304 = arith.constant 304 : index
    %c0_178 = arith.constant 0 : index
    %518 = vector.load %arg2[%c304, %c0_178] : memref<560x128xbf16, #tpu.memory_space<vmem>>, vector<64x32xbf16>
    %519 = arith.truncf %517 : vector<64x64xf32> to vector<64x64xbf16>
    %cst_179 = arith.constant dense<0.000000e+00> : vector<64x32xf32>
    %520 = tpu.matmul %519, %518, %cst_179 {dimension_numbers = #tpu.dot_dimension_numbers<[1], [0], [0], [1], [0, 0, 1, 1], [], []>} : vector<64x64xbf16>, vector<64x32xbf16>, vector<64x32xf32> -> vector<64x32xf32>
    %521 = arith.addf %474, %520 : vector<64x32xf32>
    %c28 = arith.constant 28 : index
    %c0_180 = arith.constant 0 : index
    %522 = vector.load %arg3[%c28, %c0_180] : memref<40x128xf32, #tpu.memory_space<vmem>>, vector<1x32xf32>
    %523 = vector.broadcast %522 : vector<1x32xf32> to vector<64x32xf32>
    %524 = arith.addf %521, %523 : vector<64x32xf32>
    %525 = tpu.iota {dimensions = array<i32: 0>} : vector<64x1xi32>
    %c3_i32_181 = arith.constant 3 : i32
    %526 = vector.broadcast %c3_i32_181 : i32 to vector<64x1xi32>
    %527 = arith.shrsi %525, %526 : vector<64x1xi32>
    %c7_i32_182 = arith.constant 7 : i32
    %528 = vector.broadcast %c7_i32_182 : i32 to vector<64x1xi32>
    %529 = arith.andi %525, %528 : vector<64x1xi32>
    %c1_i32_183 = arith.constant 1 : i32
    %530 = vector.broadcast %c1_i32_183 : i32 to vector<64x1xi32>
    %531 = arith.andi %527, %530 : vector<64x1xi32>
    %c1_i32_184 = arith.constant 1 : i32
    %532 = vector.broadcast %c1_i32_184 : i32 to vector<64x1xi32>
    %533 = arith.andi %529, %532 : vector<64x1xi32>
    %c2_i32_185 = arith.constant 2 : i32
    %534 = vector.broadcast %c2_i32_185 : i32 to vector<64x1xi32>
    %535 = arith.muli %531, %534 : vector<64x1xi32>
    %536 = arith.addi %535, %533 : vector<64x1xi32>
    %537 = tpu.iota {dimensions = array<i32: 1>} : vector<1x64xi32>
    %c3_i32_186 = arith.constant 3 : i32
    %538 = vector.broadcast %c3_i32_186 : i32 to vector<1x64xi32>
    %539 = arith.shrsi %537, %538 : vector<1x64xi32>
    %c7_i32_187 = arith.constant 7 : i32
    %540 = vector.broadcast %c7_i32_187 : i32 to vector<1x64xi32>
    %541 = arith.andi %537, %540 : vector<1x64xi32>
    %c1_i32_188 = arith.constant 1 : i32
    %542 = vector.broadcast %c1_i32_188 : i32 to vector<1x64xi32>
    %543 = arith.andi %539, %542 : vector<1x64xi32>
    %c1_i32_189 = arith.constant 1 : i32
    %544 = vector.broadcast %c1_i32_189 : i32 to vector<1x64xi32>
    %545 = arith.andi %541, %544 : vector<1x64xi32>
    %c2_i32_190 = arith.constant 2 : i32
    %546 = vector.broadcast %c2_i32_190 : i32 to vector<1x64xi32>
    %547 = arith.muli %543, %546 : vector<1x64xi32>
    %548 = arith.addi %547, %545 : vector<1x64xi32>
    %549 = vector.broadcast %536 : vector<64x1xi32> to vector<64x64xi32>
    %550 = vector.broadcast %548 : vector<1x64xi32> to vector<64x64xi32>
    %551 = arith.cmpi eq, %549, %550 : vector<64x64xi32>
    %c29 = arith.constant 29 : index
    %c0_191 = arith.constant 0 : index
    %552 = vector.load %arg3[%c29, %c0_191] : memref<40x128xf32, #tpu.memory_space<vmem>>, vector<1x32xf32>
    %c30 = arith.constant 30 : index
    %c0_192 = arith.constant 0 : index
    %553 = vector.load %arg3[%c30, %c0_192] : memref<40x128xf32, #tpu.memory_space<vmem>>, vector<1x32xf32>
    %cst_193 = arith.constant dense<0.000000e+00> : vector<64xf32>
    %554 = vector.multi_reduction <add>, %524, %cst_193 [1] : vector<64x32xf32> to vector<64xf32>
    %555 = vector.shape_cast %554 : vector<64xf32> to vector<64x1xf32>
    %cst_194 = arith.constant 3.200000e+01 : f32
    %556 = vector.broadcast %cst_194 : f32 to vector<64x1xf32>
    %557 = arith.divf %555, %556 : vector<64x1xf32>
    %558 = vector.broadcast %557 : vector<64x1xf32> to vector<64x32xf32>
    %559 = arith.subf %524, %558 : vector<64x32xf32>
    %560 = arith.mulf %559, %559 : vector<64x32xf32>
    %cst_195 = arith.constant dense<0.000000e+00> : vector<64xf32>
    %561 = vector.multi_reduction <add>, %560, %cst_195 [1] : vector<64x32xf32> to vector<64xf32>
    %562 = vector.shape_cast %561 : vector<64xf32> to vector<64x1xf32>
    %cst_196 = arith.constant 3.200000e+01 : f32
    %563 = vector.broadcast %cst_196 : f32 to vector<64x1xf32>
    %564 = arith.divf %562, %563 : vector<64x1xf32>
    %565 = vector.broadcast %557 : vector<64x1xf32> to vector<64x32xf32>
    %566 = arith.subf %524, %565 : vector<64x32xf32>
    %cst_197 = arith.constant 9.99999974E-6 : f32
    %567 = vector.broadcast %cst_197 : f32 to vector<64x1xf32>
    %568 = arith.addf %564, %567 : vector<64x1xf32>
    %569 = math.rsqrt %568 : vector<64x1xf32>
    %570 = vector.broadcast %569 : vector<64x1xf32> to vector<64x32xf32>
    %571 = arith.mulf %566, %570 : vector<64x32xf32>
    %572 = vector.broadcast %552 : vector<1x32xf32> to vector<64x32xf32>
    %573 = arith.mulf %571, %572 : vector<64x32xf32>
    %574 = vector.broadcast %553 : vector<1x32xf32> to vector<64x32xf32>
    %575 = arith.addf %573, %574 : vector<64x32xf32>
    %c368 = arith.constant 368 : index
    %c0_198 = arith.constant 0 : index
    %576 = vector.load %arg2[%c368, %c0_198] : memref<560x128xbf16, #tpu.memory_space<vmem>>, vector<32x96xbf16>
    %577 = arith.truncf %575 : vector<64x32xf32> to vector<64x32xbf16>
    %cst_199 = arith.constant dense<0.000000e+00> : vector<64x96xf32>
    %578 = tpu.matmul %577, %576, %cst_199 {dimension_numbers = #tpu.dot_dimension_numbers<[1], [0], [0], [1], [0, 0, 1, 1], [], []>} : vector<64x32xbf16>, vector<32x96xbf16>, vector<64x96xf32> -> vector<64x96xf32>
    %c31 = arith.constant 31 : index
    %c0_200 = arith.constant 0 : index
    %579 = vector.load %arg3[%c31, %c0_200] : memref<40x128xf32, #tpu.memory_space<vmem>>, vector<1x96xf32>
    %580 = vector.broadcast %579 : vector<1x96xf32> to vector<64x96xf32>
    %581 = arith.addf %578, %580 : vector<64x96xf32>
    %582 = vector.extract_strided_slice %581 {offsets = [0, 0], sizes = [64, 16], strides = [1, 1]} : vector<64x96xf32> to vector<64x16xf32>
    %cst_201 = arith.constant 2.500000e-01 : f32
    %583 = vector.broadcast %cst_201 : f32 to vector<64x16xf32>
    %584 = arith.mulf %582, %583 : vector<64x16xf32>
    %585 = arith.truncf %584 : vector<64x16xf32> to vector<64x16xbf16>
    %586 = vector.extract_strided_slice %581 {offsets = [0, 32], sizes = [64, 16], strides = [1, 1]} : vector<64x96xf32> to vector<64x16xf32>
    %587 = arith.truncf %586 : vector<64x16xf32> to vector<64x16xbf16>
    %588 = vector.extract_strided_slice %581 {offsets = [0, 64], sizes = [64, 16], strides = [1, 1]} : vector<64x96xf32> to vector<64x16xf32>
    %cst_202 = arith.constant dense<0.000000e+00> : vector<64x64xf32>
    %589 = tpu.matmul %585, %587, %cst_202 {dimension_numbers = #tpu.dot_dimension_numbers<[1], [1], [0], [0], [0, 0, 1, 0], [], []>} : vector<64x16xbf16>, vector<64x16xbf16>, vector<64x64xf32> -> vector<64x64xf32>
    %cst_203 = arith.constant -1.000000e+30 : f32
    %590 = vector.broadcast %cst_203 : f32 to vector<64x64xf32>
    %591 = arith.select %551, %589, %590 : vector<64x64xi1>, vector<64x64xf32>
    %cst_204 = arith.constant dense<0xFF800000> : vector<64xf32>
    %592 = vector.multi_reduction <maximumf>, %591, %cst_204 [1] : vector<64x64xf32> to vector<64xf32>
    %593 = vector.shape_cast %592 : vector<64xf32> to vector<64x1xf32>
    %594 = vector.broadcast %593 : vector<64x1xf32> to vector<64x64xf32>
    %595 = arith.subf %591, %594 : vector<64x64xf32>
    %596 = math.exp %595 : vector<64x64xf32>
    %cst_205 = arith.constant dense<0.000000e+00> : vector<64xf32>
    %597 = vector.multi_reduction <add>, %596, %cst_205 [1] : vector<64x64xf32> to vector<64xf32>
    %598 = vector.shape_cast %597 : vector<64xf32> to vector<64x1xf32>
    %599 = tpu.reciprocal %598 {approx = true} : vector<64x1xf32> -> vector<64x1xf32>
    %600 = vector.broadcast %599 : vector<64x1xf32> to vector<64x64xf32>
    %601 = arith.mulf %596, %600 : vector<64x64xf32>
    %602 = arith.truncf %601 : vector<64x64xf32> to vector<64x64xbf16>
    %603 = arith.truncf %588 : vector<64x16xf32> to vector<64x16xbf16>
    %cst_206 = arith.constant dense<0.000000e+00> : vector<64x16xf32>
    %604 = tpu.matmul %602, %603, %cst_206 {dimension_numbers = #tpu.dot_dimension_numbers<[1], [0], [0], [1], [0, 0, 1, 1], [], []>} : vector<64x64xbf16>, vector<64x16xbf16>, vector<64x16xf32> -> vector<64x16xf32>
    %605 = vector.extract_strided_slice %581 {offsets = [0, 16], sizes = [64, 16], strides = [1, 1]} : vector<64x96xf32> to vector<64x16xf32>
    %cst_207 = arith.constant 2.500000e-01 : f32
    %606 = vector.broadcast %cst_207 : f32 to vector<64x16xf32>
    %607 = arith.mulf %605, %606 : vector<64x16xf32>
    %608 = arith.truncf %607 : vector<64x16xf32> to vector<64x16xbf16>
    %609 = vector.extract_strided_slice %581 {offsets = [0, 48], sizes = [64, 16], strides = [1, 1]} : vector<64x96xf32> to vector<64x16xf32>
    %610 = arith.truncf %609 : vector<64x16xf32> to vector<64x16xbf16>
    %611 = vector.extract_strided_slice %581 {offsets = [0, 80], sizes = [64, 16], strides = [1, 1]} : vector<64x96xf32> to vector<64x16xf32>
    %cst_208 = arith.constant dense<0.000000e+00> : vector<64x64xf32>
    %612 = tpu.matmul %608, %610, %cst_208 {dimension_numbers = #tpu.dot_dimension_numbers<[1], [1], [0], [0], [0, 0, 1, 0], [], []>} : vector<64x16xbf16>, vector<64x16xbf16>, vector<64x64xf32> -> vector<64x64xf32>
    %cst_209 = arith.constant -1.000000e+30 : f32
    %613 = vector.broadcast %cst_209 : f32 to vector<64x64xf32>
    %614 = arith.select %551, %612, %613 : vector<64x64xi1>, vector<64x64xf32>
    %cst_210 = arith.constant dense<0xFF800000> : vector<64xf32>
    %615 = vector.multi_reduction <maximumf>, %614, %cst_210 [1] : vector<64x64xf32> to vector<64xf32>
    %616 = vector.shape_cast %615 : vector<64xf32> to vector<64x1xf32>
    %617 = vector.broadcast %616 : vector<64x1xf32> to vector<64x64xf32>
    %618 = arith.subf %614, %617 : vector<64x64xf32>
    %619 = math.exp %618 : vector<64x64xf32>
    %cst_211 = arith.constant dense<0.000000e+00> : vector<64xf32>
    %620 = vector.multi_reduction <add>, %619, %cst_211 [1] : vector<64x64xf32> to vector<64xf32>
    %621 = vector.shape_cast %620 : vector<64xf32> to vector<64x1xf32>
    %622 = tpu.reciprocal %621 {approx = true} : vector<64x1xf32> -> vector<64x1xf32>
    %623 = vector.broadcast %622 : vector<64x1xf32> to vector<64x64xf32>
    %624 = arith.mulf %619, %623 : vector<64x64xf32>
    %625 = arith.truncf %624 : vector<64x64xf32> to vector<64x64xbf16>
    %626 = arith.truncf %611 : vector<64x16xf32> to vector<64x16xbf16>
    %cst_212 = arith.constant dense<0.000000e+00> : vector<64x16xf32>
    %627 = tpu.matmul %625, %626, %cst_212 {dimension_numbers = #tpu.dot_dimension_numbers<[1], [0], [0], [1], [0, 0, 1, 1], [], []>} : vector<64x64xbf16>, vector<64x16xbf16>, vector<64x16xf32> -> vector<64x16xf32>
    %628 = tpu.concatenate %604, %627 in 1 : vector<64x16xf32>, vector<64x16xf32> -> vector<64x32xf32>
    %c400 = arith.constant 400 : index
    %c0_213 = arith.constant 0 : index
    %629 = vector.load %arg2[%c400, %c0_213] : memref<560x128xbf16, #tpu.memory_space<vmem>>, vector<32x32xbf16>
    %630 = arith.truncf %628 : vector<64x32xf32> to vector<64x32xbf16>
    %cst_214 = arith.constant dense<0.000000e+00> : vector<64x32xf32>
    %631 = tpu.matmul %630, %629, %cst_214 {dimension_numbers = #tpu.dot_dimension_numbers<[1], [0], [0], [1], [0, 0, 1, 1], [], []>} : vector<64x32xbf16>, vector<32x32xbf16>, vector<64x32xf32> -> vector<64x32xf32>
    %632 = arith.addf %524, %631 : vector<64x32xf32>
    %c32_215 = arith.constant 32 : index
    %c0_216 = arith.constant 0 : index
    %633 = vector.load %arg3[%c32_215, %c0_216] : memref<40x128xf32, #tpu.memory_space<vmem>>, vector<1x32xf32>
    %634 = vector.broadcast %633 : vector<1x32xf32> to vector<64x32xf32>
    %635 = arith.addf %632, %634 : vector<64x32xf32>
    %c33 = arith.constant 33 : index
    %c0_217 = arith.constant 0 : index
    %636 = vector.load %arg3[%c33, %c0_217] : memref<40x128xf32, #tpu.memory_space<vmem>>, vector<1x32xf32>
    %c34 = arith.constant 34 : index
    %c0_218 = arith.constant 0 : index
    %637 = vector.load %arg3[%c34, %c0_218] : memref<40x128xf32, #tpu.memory_space<vmem>>, vector<1x32xf32>
    %cst_219 = arith.constant dense<0.000000e+00> : vector<64xf32>
    %638 = vector.multi_reduction <add>, %635, %cst_219 [1] : vector<64x32xf32> to vector<64xf32>
    %639 = vector.shape_cast %638 : vector<64xf32> to vector<64x1xf32>
    %cst_220 = arith.constant 3.200000e+01 : f32
    %640 = vector.broadcast %cst_220 : f32 to vector<64x1xf32>
    %641 = arith.divf %639, %640 : vector<64x1xf32>
    %642 = vector.broadcast %641 : vector<64x1xf32> to vector<64x32xf32>
    %643 = arith.subf %635, %642 : vector<64x32xf32>
    %644 = arith.mulf %643, %643 : vector<64x32xf32>
    %cst_221 = arith.constant dense<0.000000e+00> : vector<64xf32>
    %645 = vector.multi_reduction <add>, %644, %cst_221 [1] : vector<64x32xf32> to vector<64xf32>
    %646 = vector.shape_cast %645 : vector<64xf32> to vector<64x1xf32>
    %cst_222 = arith.constant 3.200000e+01 : f32
    %647 = vector.broadcast %cst_222 : f32 to vector<64x1xf32>
    %648 = arith.divf %646, %647 : vector<64x1xf32>
    %649 = vector.broadcast %641 : vector<64x1xf32> to vector<64x32xf32>
    %650 = arith.subf %635, %649 : vector<64x32xf32>
    %cst_223 = arith.constant 9.99999974E-6 : f32
    %651 = vector.broadcast %cst_223 : f32 to vector<64x1xf32>
    %652 = arith.addf %648, %651 : vector<64x1xf32>
    %653 = math.rsqrt %652 : vector<64x1xf32>
    %654 = vector.broadcast %653 : vector<64x1xf32> to vector<64x32xf32>
    %655 = arith.mulf %650, %654 : vector<64x32xf32>
    %656 = vector.broadcast %636 : vector<1x32xf32> to vector<64x32xf32>
    %657 = arith.mulf %655, %656 : vector<64x32xf32>
    %658 = vector.broadcast %637 : vector<1x32xf32> to vector<64x32xf32>
    %659 = arith.addf %657, %658 : vector<64x32xf32>
    %c432 = arith.constant 432 : index
    %c0_224 = arith.constant 0 : index
    %660 = vector.load %arg2[%c432, %c0_224] : memref<560x128xbf16, #tpu.memory_space<vmem>>, vector<32x64xbf16>
    %661 = arith.truncf %659 : vector<64x32xf32> to vector<64x32xbf16>
    %cst_225 = arith.constant dense<0.000000e+00> : vector<64x64xf32>
    %662 = tpu.matmul %661, %660, %cst_225 {dimension_numbers = #tpu.dot_dimension_numbers<[1], [0], [0], [1], [0, 0, 1, 1], [], []>} : vector<64x32xbf16>, vector<32x64xbf16>, vector<64x64xf32> -> vector<64x64xf32>
    %c35 = arith.constant 35 : index
    %c0_226 = arith.constant 0 : index
    %663 = vector.load %arg3[%c35, %c0_226] : memref<40x128xf32, #tpu.memory_space<vmem>>, vector<1x64xf32>
    %664 = vector.broadcast %663 : vector<1x64xf32> to vector<64x64xf32>
    %665 = arith.addf %662, %664 : vector<64x64xf32>
    %666 = arith.mulf %665, %665 : vector<64x64xf32>
    %667 = arith.mulf %665, %666 : vector<64x64xf32>
    %cst_227 = arith.constant 4.471500e-02 : f32
    %668 = vector.broadcast %cst_227 : f32 to vector<64x64xf32>
    %669 = arith.mulf %668, %667 : vector<64x64xf32>
    %670 = arith.addf %665, %669 : vector<64x64xf32>
    %cst_228 = arith.constant 0.797884583 : f32
    %671 = vector.broadcast %cst_228 : f32 to vector<64x64xf32>
    %672 = arith.mulf %671, %670 : vector<64x64xf32>
    %673 = math.tanh %672 : vector<64x64xf32>
    %cst_229 = arith.constant 1.000000e+00 : f32
    %674 = vector.broadcast %cst_229 : f32 to vector<64x64xf32>
    %675 = arith.addf %674, %673 : vector<64x64xf32>
    %cst_230 = arith.constant 5.000000e-01 : f32
    %676 = vector.broadcast %cst_230 : f32 to vector<64x64xf32>
    %677 = arith.mulf %676, %675 : vector<64x64xf32>
    %678 = arith.mulf %665, %677 : vector<64x64xf32>
    %c464 = arith.constant 464 : index
    %c0_231 = arith.constant 0 : index
    %679 = vector.load %arg2[%c464, %c0_231] : memref<560x128xbf16, #tpu.memory_space<vmem>>, vector<64x32xbf16>
    %680 = arith.truncf %678 : vector<64x64xf32> to vector<64x64xbf16>
    %cst_232 = arith.constant dense<0.000000e+00> : vector<64x32xf32>
    %681 = tpu.matmul %680, %679, %cst_232 {dimension_numbers = #tpu.dot_dimension_numbers<[1], [0], [0], [1], [0, 0, 1, 1], [], []>} : vector<64x64xbf16>, vector<64x32xbf16>, vector<64x32xf32> -> vector<64x32xf32>
    %682 = arith.addf %635, %681 : vector<64x32xf32>
    %c36 = arith.constant 36 : index
    %c0_233 = arith.constant 0 : index
    %683 = vector.load %arg3[%c36, %c0_233] : memref<40x128xf32, #tpu.memory_space<vmem>>, vector<1x32xf32>
    %684 = vector.broadcast %683 : vector<1x32xf32> to vector<64x32xf32>
    %685 = arith.addf %682, %684 : vector<64x32xf32>
    %cst_234 = arith.constant dense<0.000000e+00> : vector<32xf32>
    %686 = vector.multi_reduction <add>, %685, %cst_234 [0] : vector<64x32xf32> to vector<32xf32>
    %687 = vector.shape_cast %686 : vector<32xf32> to vector<1x32xf32>
    %cst_235 = arith.constant 6.400000e+01 : f32
    %688 = vector.broadcast %cst_235 : f32 to vector<1x32xf32>
    %689 = arith.divf %687, %688 : vector<1x32xf32>
    %c37 = arith.constant 37 : index
    %c0_236 = arith.constant 0 : index
    %690 = vector.load %arg3[%c37, %c0_236] : memref<40x128xf32, #tpu.memory_space<vmem>>, vector<1x32xf32>
    %c38 = arith.constant 38 : index
    %c0_237 = arith.constant 0 : index
    %691 = vector.load %arg3[%c38, %c0_237] : memref<40x128xf32, #tpu.memory_space<vmem>>, vector<1x32xf32>
    %cst_238 = arith.constant dense<0.000000e+00> : vector<1xf32>
    %692 = vector.multi_reduction <add>, %689, %cst_238 [1] : vector<1x32xf32> to vector<1xf32>
    %693 = vector.shape_cast %692 : vector<1xf32> to vector<1x1xf32>
    %cst_239 = arith.constant 3.200000e+01 : f32
    %694 = vector.broadcast %cst_239 : f32 to vector<1x1xf32>
    %695 = arith.divf %693, %694 : vector<1x1xf32>
    %696 = vector.broadcast %695 : vector<1x1xf32> to vector<1x32xf32>
    %697 = arith.subf %689, %696 : vector<1x32xf32>
    %698 = arith.mulf %697, %697 : vector<1x32xf32>
    %cst_240 = arith.constant dense<0.000000e+00> : vector<1xf32>
    %699 = vector.multi_reduction <add>, %698, %cst_240 [1] : vector<1x32xf32> to vector<1xf32>
    %700 = vector.shape_cast %699 : vector<1xf32> to vector<1x1xf32>
    %cst_241 = arith.constant 3.200000e+01 : f32
    %701 = vector.broadcast %cst_241 : f32 to vector<1x1xf32>
    %702 = arith.divf %700, %701 : vector<1x1xf32>
    %703 = vector.broadcast %695 : vector<1x1xf32> to vector<1x32xf32>
    %704 = arith.subf %689, %703 : vector<1x32xf32>
    %cst_242 = arith.constant 9.99999974E-6 : f32
    %705 = vector.broadcast %cst_242 : f32 to vector<1x1xf32>
    %706 = arith.addf %702, %705 : vector<1x1xf32>
    %707 = math.rsqrt %706 : vector<1x1xf32>
    %708 = vector.broadcast %707 : vector<1x1xf32> to vector<1x32xf32>
    %709 = arith.mulf %704, %708 : vector<1x32xf32>
    %710 = arith.mulf %709, %690 : vector<1x32xf32>
    %711 = arith.addf %710, %691 : vector<1x32xf32>
    %c528 = arith.constant 528 : index
    %c0_243 = arith.constant 0 : index
    %712 = vector.load %arg2[%c528, %c0_243] : memref<560x128xbf16, #tpu.memory_space<vmem>>, vector<32x10xbf16>
    %713 = arith.truncf %711 : vector<1x32xf32> to vector<1x32xbf16>
    %cst_244 = arith.constant dense<0.000000e+00> : vector<1x10xf32>
    %714 = tpu.matmul %713, %712, %cst_244 {dimension_numbers = #tpu.dot_dimension_numbers<[1], [0], [0], [1], [0, 0, 1, 1], [], []>} : vector<1x32xbf16>, vector<32x10xbf16>, vector<1x10xf32> -> vector<1x10xf32>
    %c39 = arith.constant 39 : index
    %c0_245 = arith.constant 0 : index
    %715 = vector.load %arg3[%c39, %c0_245] : memref<40x128xf32, #tpu.memory_space<vmem>>, vector<1x10xf32>
    %716 = arith.addf %714, %715 : vector<1x10xf32>
    %c0_246 = arith.constant 0 : index
    %c0_247 = arith.constant 0 : index
    %c0_248 = arith.constant 0 : index
    %717 = vector.load %arg4[%c0_246, %c0_247, %c0_248] : memref<1x1x10xf32, #tpu.memory_space<vmem>>, vector<1x1x10xf32>
    %718 = vector.shape_cast %717 : vector<1x1x10xf32> to vector<1x10xf32>
    %719 = vector.shape_cast %716 : vector<1x10xf32> to vector<1x1x10xf32>
    tpu.vector_store %arg4[%c0_246, %c0_247, %c0_248], %719 {strides = array<i32>} : memref<1x1x10xf32, #tpu.memory_space<vmem>>, vector<1x1x10xf32>,
    return
  }
  func.func @transform_0(%arg0: i32) -> (i32, i32) {
    %c0_i32 = arith.constant 0 : i32
    %c0_i32_0 = arith.constant 0 : i32
    return %arg0, %c0_i32 : i32, i32
  }
  func.func @transform_1(%arg0: i32) -> (i32, i32) {
    %c0_i32 = arith.constant 0 : i32
    %c0_i32_0 = arith.constant 0 : i32
    %c0_i32_1 = arith.constant 0 : i32
    return %c0_i32, %c0_i32_0 : i32, i32
  }
  func.func @transform_2(%arg0: i32) -> (i32, i32) {
    %c0_i32 = arith.constant 0 : i32
    %c0_i32_0 = arith.constant 0 : i32
    %c0_i32_1 = arith.constant 0 : i32
    return %c0_i32, %c0_i32_0 : i32, i32
  }
  func.func @transform_3(%arg0: i32) -> (i32, i32, i32) {
    %c0_i32 = arith.constant 0 : i32
    %c0_i32_0 = arith.constant 0 : i32
    %c0_i32_1 = arith.constant 0 : i32
    return %arg0, %c0_i32, %c0_i32_0 : i32, i32, i32
  }
}

</mosaic_0001>

<bundles_post_ra>
// kernel: maxvit_forward.1
= control target key start
LH: loop header
LB: loop body
LE: loop exit
PB: predicated region body
PF: predicated region fallthrough
CT: control target
= control target key end

     0   :  { %8 = vsyncpa [#allocation3], 0  ;;  %s9059_s0 = inlined_call_operand.vmem [shape: f32[128,27], index: 0, kind: input, shape index: {}]   ;;  %s9060_s1 = inlined_call_operand.vmem [shape: bf16[560,128], index: 1, kind: input, shape index: {}]   ;;  %s9061_s2 = inlined_call_operand.vmem [shape: f32[40,128], index: 2, kind: input, shape index: {}]   ;;  %s9062_s3 = inlined_call_operand.hbm [shape: f32[2,1,10], index: 3, kind: output, shape index: {}]  }
   0x1   :  { %10 = vsyncpa [#allocation3 + $0x1], 0  ;;  %s6010_s12 = smov 0   ;;  %s6012_s13 = smov 0  }
   0x2   :  { %s6014_s14 = smov 0   ;;  %s6016_s15 = smov 0  }
   0x3 LB: > { %s6031_s16 = sadd.s32 4294967295, %s5978_s15   ;;  %s4891_s17 = sadd.s32 4294967294, %s5978_s15   ;;  %s5978_s15 = sphi %s6016_s15, %s9648_s15   ;;  %s5974_s14 = sphi %s6014_s14, %s9647_s14   ;;  %s5970_s13 = sphi %s6012_s13, %s9646_s13   ;;  %s5966_s12 = sphi %s6010_s12, %s9645_s12  }
   0x4   : > { %s6035_s18 = sadd.s32 1, %s5978_s15   ;;  %s91_s19 = sadd.s32 1, %s5974_s14 }
   0x5   : > { %s88_s20 = ssub.s32 %s5978_s15, %s6035_s18  ;;  %p101_p0 = scmp.ne.s32.totalorder %s5974_s14, %s5970_s13 }
   0x6   : > { %p89_p1 = scmp.eq.s32.totalorder %s88_s20, 0  ;;  %p102_p2 = scmp.eq.s32.totalorder %s6031_s16, 1 }
   0x7   : > { %p107_p3 = scmp.ne.s32.totalorder %s5970_s13, %s5966_s12  ;;  %p108_p4 = scmp.eq.s32.totalorder %s4891_s17, 1 }
   0x8   : > { %s6046_s21 = scalar_select %p89_p1, %s5974_s14, %s91_s19  }
   0x9   : > { %p6048_p5 = por %p102_p2, %p101_p0  ;;  %p6052_p6 = por %p108_p4, %p107_p3 }
   0xa   : > { %p4894_p7 = scmp.ge.s32.totalorder %s5978_s15, 1  ;;  %p141_p8 = scmp.lt.s32.totalorder %s5978_s15, 3 }
   0xc   : > { %p142_p9 = pnand %p4894_p7, %p141_p8 }
   0xe   : > { %145 = sbr.rel (%p142_p9) target bundleno = 8400 (0x20d0), region = 32 }
  0x15   : > { %v5599_v0 = vld [vmem:[%s9060_s1] sm:$0xff]   ;;  %vm216_vm0 = vcmask 1044480   ;;  %v5600_v1 = vld [vmem:[%s9060_s1 + $0x8] sm:$0x3f]   ;;  %vm217_vm1 = vcmask 1045504   ;;  %s4895_s28 = sshll.u32 %s6031_s16, 3 }
  0x16   : > { %5197 = vmatprep.subr.bf16.mxu0 %v5599_v0  ;;  %v5980_v2 = vmov 65535   ;;  %p165_p10 = scmp.lt.s32.totalorder %s4895_s28, 15  ;;  %vm203_vm2 = vcmask 220160   ;;  %v5601_v18 = vld [vmem:[%s9060_s1 + $0x10] sm:$0xff]   ;;  %v5602_v19 = vld [vmem:[%s9060_s1 + $0x18] sm:$0xff]   ;;  %vm9064_vm3 = vcmask 261120  }
  0x17   : > { %5198 = vmatpush3.bf16.msra.mxu0 %v5599_v0  ;;  %v218_v3 = vsel %vm216_vm0, 4294967295, %v5980_v2  ;;  %5209 = vmatprep.subr.bf16.mxu1 %v5601_v18  ;;  %v4897_v20 = vld [vmem:[%s9061_s2] ss:$0 sm:$0xff]  ;;  %vm9063_vm4 = vmmov 0   ;;  %s5983_s8 = smov 96   ;;  %s5984_s9 = smov 64  }
  0x18   : > { %v219_v4 = vsel %vm217_vm1, %v218_v3, 0  ;;  %s9650_s28 = smov (!%p165_p10, %s4895_s28), 15  ;;  %5210 = vmatpush3.bf16.msra.mxu1 %v5601_v18  ;;  %s5985_s10 = smov 80  }
  0x19   : > { %v221_v5 = vand.u32 %v5600_v1, %v219_v4  ;;  %s4896_s29 = sshll.u32 %s9650_s28, 3  ;;  %5211 = vmatprep.subr.bf16.mxu1 %v5602_v19  ;;  %s5986_s11 = smov 112  }
  0x1a   : > { %s168_s5 = scalar_lea.vmem %s9059_s0, %s4896_s29  ;;  %s5987_s17 = smov 48  }
  0x1b   : > { %5199 = vmatprep.subr.bf16.mxu0 %v221_v5  ;;  %v171_v6 = vld [vmem:[%s168_s5] sm:$0xff]  ;;  %v172_v7 = vld [vmem:[%s168_s5 + $0x8] sm:$0xff]  ;;  %v173_v8 = vld [vmem:[%s168_s5 + $0x10] sm:$0xff]  ;;  %s5988_s26 = smov 16   ;;  %s162_s6 = sand.u32 1, %s5970_s13  }
  0x1c   : > { %5200 = vmatpush3.bf16.msra.mxu0 %v221_v5  ;;  %v183_v9 = vpack.c.bf16 %v172_v7, %v171_v6  ;;  %v174_v10 = vld [vmem:[%s168_s5 + $0x18] sm:$0xff]  ;;  %v175_v11 = vld [vmem:[%s168_s5 + $0x20] sm:$0xff]  ;;  %v176_v12 = vld [vmem:[%s168_s5 + $0x28] sm:$0xff]  ;;  %5212 = vmatpush3.bf16.msra.mxu1 %v5602_v19  ;;  %s5989_s24 = smov [#allocation2]  }
  0x1d   : > { %v184_v13 = vpack.c.bf16 %v174_v10, %v173_v8  ;;  %v185_v14 = vpack.c.bf16 %v176_v12, %v175_v11  ;;  %v177_v15 = vld [vmem:[%s168_s5 + $0x30] sm:$0xff]  ;;  %v178_v16 = vld [vmem:[%s168_s5 + $0x38] sm:$0xff]  ;;  %s5920_s25 = sshll.u32 %s5989_s24, 4  ;;  %s5921_s25 = int_to_ptr.vmem [resolvable:$false] %s5920_s25 }
  0x1e   : > { %5201 = vmatprep.mubr.msk.bf16.mxu0 %vm203_vm2, %v183_v9  ;;  %v186_v17 = vpack.c.bf16 %v178_v16, %v177_v15  ;;  %s5922_s27 = scalar_lea.vmem %s5921_s25, 32 }
  0x1f   : > { %5202 = vmatmul.mubr.msk.bf16.vlgmr.msra.gmra.mrb[0].mxu0 %vm203_vm2, %v184_v13 }
  0x20   : > { %5205 = vmatprep.mubr.msk.bf16.mxu0 %vm203_vm2, %v185_v14 }
  0x27   : > { %5206 = vmatmul.mubr.msk.bf16.gmra.mrb[4].mxu0 %vm203_vm2, %v186_v17 }
  0xf2   : > { %v5203_v21 = vpop.f32.mrb[0].mxu0 }
  0xf3   : > { %v6077_v22 = vadd.f32 %v5203_v21, %v4897_v20  ;;  %v257_v23 = vpop.f32.mrb[1].mxu0 }
  0xf4   : > { %v6079_v24 = vadd.f32 %v4897_v20, %v257_v23  ;;  %v5204_v25 = vpop.f32.mrb[2].mxu0 }
  0xf5   : > { %v290_v26 = vmul.f32 %v6077_v22, %v6077_v22  ;;  %v6083_v27 = vadd.f32 %v5204_v25, %v4897_v20  ;;  %v260_v28 = vpop.f32.mrb[3].mxu0 }
  0xf6   : > { %v288_v29 = vmul.f32 %v6079_v24, %v6079_v24  ;;  %v6087_v30 = vadd.f32 %v4897_v20, %v260_v28 }
  0xf7   : > { %v298_v31 = vmul.f32 %v290_v26, %v6077_v22  ;;  %v291_v32 = vmul.f32 %v6083_v27, %v6083_v27  ;;  %v4904_v26 = vld [vmem:[%s9061_s2 + $0x1] ss:$0 sm:$0xff] }
  0xf8   : > { %v296_v33 = vmul.f32 %v288_v29, %v6079_v24  ;;  %v289_v34 = vmul.f32 %v6087_v30, %v6087_v30 }
  0xf9   : > { %v306_v35 = vmul.f32 0.044715, %v298_v31  ;;  %v299_v36 = vmul.f32 %v291_v32, %v6083_v27 }
  0xfa   : > { %v304_v37 = vmul.f32 0.044715, %v296_v33  ;;  %v297_v38 = vmul.f32 %v289_v34, %v6087_v30  ;;  %v5207_v39 = vpop.f32.mrb[4].mxu0 }
  0xfb   : > { %v314_v40 = vadd.f32 %v306_v35, %v6077_v22  ;;  %v307_v41 = vmul.f32 0.044715, %v299_v36  ;;  %v6098_v42 = vadd.f32 %v5207_v39, %v4897_v20  ;;  %v273_v43 = vpop.f32.mrb[5].mxu0 }
  0xfc   : > { %v312_v44 = vadd.f32 %v304_v37, %v6079_v24  ;;  %v305_v45 = vmul.f32 0.044715, %v297_v38  ;;  %v6101_v46 = vadd.f32 %v4897_v20, %v273_v43  ;;  %v5208_v47 = vpop.f32.mrb[6].mxu0 }
  0xfd   : > { %v322_v48 = vmul.f32 0.7978846, %v314_v40  ;;  %v315_v49 = vadd.f32 %v307_v41, %v6083_v27  ;;  %v294_v50 = vmul.f32 %v6098_v42, %v6098_v42  ;;  %v6106_v51 = vadd.f32 %v5208_v47, %v4897_v20  ;;  %v276_v52 = vpop.f32.mrb[7].mxu0 }
  0xfe   : > { %v320_v53 = vmul.f32 0.7978846, %v312_v44  ;;  %v313_v54 = vadd.f32 %v305_v45, %v6087_v30  ;;  %v292_v55 = vmul.f32 %v6101_v46, %v6101_v46  ;;  %v6111_v56 = vadd.f32 %v4897_v20, %v276_v52 }
  0xff   : > { %5634 = vtanh.f32 %v322_v48  ;;  %v323_v57 = vmul.f32 0.7978846, %v315_v49  ;;  %v302_v58 = vmul.f32 %v294_v50, %v6098_v42  ;;  %v295_v59 = vmul.f32 %v6106_v51, %v6106_v51 }
 0x100   : > { %5636 = vtanh.f32 %v320_v53  ;;  %v321_v60 = vmul.f32 0.7978846, %v313_v54  ;;  %v300_v61 = vmul.f32 %v292_v55, %v6101_v46  ;;  %v293_v62 = vmul.f32 %v6111_v56, %v6111_v56 }
 0x101   : > { %5638 = vtanh.f32 %v323_v57  ;;  %v310_v63 = vmul.f32 0.044715, %v302_v58  ;;  %v303_v0 = vmul.f32 %v295_v59, %v6106_v51 }
 0x102   : > { %5640 = vtanh.f32 %v321_v60  ;;  %v308_v1 = vmul.f32 0.044715, %v300_v61  ;;  %v301_v2 = vmul.f32 %v293_v62, %v6111_v56 }
 0x103   : > { %v318_v3 = vadd.f32 %v310_v63, %v6098_v42  ;;  %v311_v4 = vmul.f32 0.044715, %v303_v0 }
 0x104   : > { %v316_v5 = vadd.f32 %v308_v1, %v6101_v46  ;;  %v309_v6 = vmul.f32 0.044715, %v301_v2 }
 0x105   : > { %v326_v7 = vmul.f32 0.7978846, %v318_v3  ;;  %v319_v8 = vadd.f32 %v311_v4, %v6106_v51  ;;  %v9065_v4 = vmov 0.0  }
 0x106   : > { %v324_v9 = vmul.f32 0.7978846, %v316_v5  ;;  %v317_v10 = vadd.f32 %v309_v6, %v6111_v56  ;;  %5221 = vmatprep.subr.bf16.mxu0 %v9065_v4  ;;  %5229 = vmatprep.mubr.msk.bf16.mxu0 %vm9063_vm4, %v9065_v4  ;;  %v5604_v5 = vld [vmem:[%s9060_s1 + $0x28] sm:$0xff]   ;;  %v9067_v6 = vlaneseq }
 0x107   : > { %5642 = vtanh.f32 %v326_v7  ;;  %v327_v11 = vmul.f32 0.7978846, %v319_v8  ;;  %5233 = vmatprep.subr.bf16.mxu1 %v9065_v4  ;;  %v5605_v7 = vld [vmem:[%s9060_s1 + $0x30] sm:$0xff]  }
 0x108   : > { %5644 = vtanh.f32 %v324_v9  ;;  %v325_v12 = vmul.f32 0.7978846, %v317_v10  ;;  %v6185_v8 = vshrl.u32 %v9067_v6, 7  ;;  %v5606_v9 = vld [vmem:[%s9060_s1 + $0x38] sm:$0xff]  }
 0x109   : > { %v5635_v13 = vpop.eup %5634  ;;  %5646 = vtanh.f32 %v327_v11 }
 0x10a   : > { %v5637_v14 = vpop.eup %5636  ;;  %v338_v15 = vadd.f32 1.0, %v5635_v13  ;;  %5648 = vtanh.f32 %v325_v12  ;;  %v589_v10 = vadd.s32 8, %v6185_v8  ;;  %v591_v11 = vadd.s32 24, %v6185_v8 }
 0x10b   : > { %v5639_v16 = vpop.eup %5638  ;;  %v336_v17 = vadd.f32 1.0, %v5637_v14  ;;  %v590_v12 = vadd.s32 16, %v6185_v8 }
 0x10c   : > { %v5641_v18 = vpop.eup %5640  ;;  %v346_v19 = vmul.f32 0.5, %v338_v15  ;;  %v339_v20 = vadd.f32 1.0, %v5639_v16  ;;  %v6194_v13 = vshra.s32 %v589_v10, 3  ;;  %v6196_v14 = vshra.s32 %v591_v11, 3  ;;  %v4906_v15 = vld [vmem:[%s9061_s2 + $0x3] ss:$0 sm:$0xff] }
 0x10d   : > { %v337_v21 = vadd.f32 1.0, %v5641_v18  ;;  %v344_v23 = vmul.f32 0.5, %v336_v17  ;;  %v6201_v16 = vand.u32 7, %v589_v10  ;;  %v595_v17 = vadd.s32 56, %v6185_v8 }
 0x10e   : > { %v6126_v25 = vmul.f32 %v346_v19, %v6077_v22  ;;  %v347_v28 = vmul.f32 0.5, %v339_v20  ;;  %9164 = vst [vmem:[#allocation13_spill] sm:$0xff] %v6194_v13  ;;  %9165 = vst [vmem:[#allocation14_spill] sm:$0xff] %v6196_v14  ;;  %v6204_v18 = vand.u32 7, %v590_v12  ;;  %v6209_v20 = vld [vmem:[%s9061_s2 + $0x4] ss:$0 sm:$0xff] }
 0x10f   : > { %v345_v29 = vmul.f32 0.5, %v337_v21  ;;  %v6132_v31 = vmul.f32 %v344_v23, %v6079_v24  ;;  %v4905_v24 = vld [vmem:[%s9061_s2 + $0x2] ss:$0 sm:$0xff]  ;;  %9166 = vst [vmem:[#allocation15_spill] sm:$0xff] %v6201_v16  ;;  %v6211_v21 = vand.u32 7, %v591_v11 }
 0x110   : > { %9156 = vst [vmem:[#allocation5_spill] sm:$0xff] %v6126_v25  ;;  %v6135_v32 = vmul.f32 %v347_v28, %v6083_v27  ;;  %v367_v36 = vmul.f32 %v4904_v26, %v6126_v25  ;;  %9167 = vst [vmem:[#allocation16_spill] sm:$0xff] %v6204_v18  ;;  %v6216_v28 = vadd.s32 4294967295, %v6196_v14 }
 0x111   : > { %9157 = vst [vmem:[#allocation6_spill] sm:$0xff] %v6132_v31  ;;  %v5643_v33 = vpop.eup %5642  ;;  %v6138_v34 = vmul.f32 %v345_v29, %v6087_v30  ;;  %v365_v35 = vmul.f32 %v4904_v26, %v6132_v31  ;;  %9168 = vst [vmem:[#allocation17_spill] sm:$0xff] %v6211_v21  ;;  %v6219_v29 = vadd.s32 1, %v6194_v13  ;;  %v6535_v31 = vld [vmem:[%s9061_s2 + $0xd] ss:$0 sm:$0xff] }
 0x112   : > { %9158 = vst [vmem:[#allocation7_spill] sm:$0xff] %v6135_v32  ;;  %v5645_v22 = vpop.eup %5644  ;;  %v368_v37 = vmul.f32 %v4904_v26, %v6135_v32  ;;  %v342_v38 = vadd.f32 1.0, %v5643_v33  ;;  %v380_v53 = vadd.f32 %v4905_v24, %v367_v36  ;;  %vm640_vm5 = vcmp.ge.s32.totalorder %v6216_v28, 0  ;;  %9220 = vst [vmem:[#allocation45_spill] sm:$0xff] %v6535_v31 }
 0x113   : > { %9159 = vst [vmem:[#allocation8_spill] sm:$0xff] %v6138_v34  ;;  %v5647_v39 = vpop.eup %5646  ;;  %v340_v40 = vadd.f32 1.0, %v5645_v22  ;;  %v366_v27 = vmul.f32 %v4904_v26, %v6138_v34  ;;  %v378_v48 = vadd.f32 %v4905_v24, %v365_v35  ;;  %v6224_v35 = vld [vmem:[%s9061_s2 + $0x5] ss:$0 sm:$0xff]  ;;  %v6227_v22 = vadd.s32 4294967295, %v6201_v16 }
 0x114   : > { %v5649_v41 = vpop.eup %5648  ;;  %v350_v43 = vmul.f32 0.5, %v342_v38  ;;  %v343_v30 = vadd.f32 1.0, %v5647_v39  ;;  %v381_v44 = vadd.f32 %v4905_v24, %v368_v37  ;;  %v6229_v37 = vshra.s32 %v595_v17, 3 }
 0x115   : > { %v348_v45 = vmul.f32 0.5, %v340_v40  ;;  %v341_v47 = vadd.f32 1.0, %v5649_v41  ;;  %v379_v49 = vadd.f32 %v4905_v24, %v366_v27  ;;  %v6234_v40 = vadd.s32 4294967295, %v6204_v18 }
 0x116   : > { %v6148_v50 = vmul.f32 %v350_v43, %v6098_v42  ;;  %v351_v52 = vmul.f32 0.5, %v343_v30  ;;  %v391_v59 = vpack.c.bf16 %v381_v44, %v380_v53  ;;  %9170 = vst [vmem:[#allocation19_spill] sm:$0xff] %v6229_v37  ;;  %v6237_v27 = vand.u32 7, %v6185_v8 }
 0x117   : > { %v6151_v54 = vmul.f32 %v348_v45, %v6101_v46  ;;  %v349_v55 = vmul.f32 0.5, %v341_v47  ;;  %v390_v57 = vpack.c.bf16 %v379_v49, %v378_v48  ;;  %v6240_v30 = vadd.s32 4294967295, %v6211_v21 }
 0x118   : > { %9160 = vst [vmem:[#allocation9_spill] sm:$0xff] %v6148_v50  ;;  %v6154_v58 = vmul.f32 %v351_v52, %v6106_v51  ;;  %v371_v42 = vmul.f32 %v4904_v26, %v6148_v50  ;;  %9171 = vst [vmem:[#allocation20_spill] sm:$0xff] %v6237_v27  ;;  %v6243_v44 = vadd.s32 1, %v6201_v16  ;;  %v6250_v49 = vadd.s32 1, %v6204_v18 }
 0x119   : > { %9161 = vst [vmem:[#allocation10_spill] sm:$0xff] %v6151_v54  ;;  %v369_v60 = vmul.f32 %v4904_v26, %v6151_v54  ;;  %v6158_v61 = vmul.f32 %v349_v55, %v6111_v56  ;;  %5213 = vmatprep.mubr.msk.bf16.mxu1 %vm9064_vm3, %v390_v57  ;;  %v5603_v56 = vld [vmem:[%s9060_s1 + $0x20] sm:$0xff]   ;;  %9172 = vst [vmem:[#allocation21_spill] sm:$0xff] %v6240_v30  ;;  %v6253_v52 = vadd.s32 1, %v6211_v21  ;;  %v6260_v57 = vshra.s32 %v6185_v8, 3 }
 0x11a   : > { %9162 = vst [vmem:[#allocation11_spill] sm:$0xff] %v6154_v58  ;;  %v372_v62 = vmul.f32 %v4904_v26, %v6154_v58  ;;  %5214 = vmatmul.mubr.msk.bf16.vlgmr.msra.gmra.mrb[0].mxu1 %vm9064_vm3, %v391_v59  ;;  %v384_v1 = vadd.f32 %v4905_v24, %v371_v42  ;;  %5222 = vmatpush3.bf16.msra.mxu0 %v5603_v56  ;;  %v6262_v59 = vand.u32 7, %v595_v17  ;;  %vm648_vm6 = vcmp.lt.s32.totalorder %v6216_v28, 8 }
 0x11b   : > { %9163 = vst [vmem:[#allocation12_spill] sm:$0xff] %v6158_v61  ;;  %v370_v46 = vmul.f32 %v4904_v26, %v6158_v61  ;;  %v382_v0 = vadd.f32 %v4905_v24, %v369_v60  ;;  %5223 = vmatprep.subr.bf16.mxu0 %v9065_v4  ;;  %v6213_v26 = vshra.s32 %v590_v12, 3  ;;  %9173 = vst [vmem:[#allocation22_spill] sm:$0xff] %v6253_v52  ;;  %vm1141_vm9 = vcmp.ge.s32.totalorder %v6219_v29, 0 }
 0x11c   : > { %v385_v63 = vadd.f32 %v4905_v24, %v372_v62  ;;  %9174 = vst [vmem:[#allocation23_spill] sm:$0xff] %v6260_v57  ;;  %9175 = vst [vmem:[#allocation24_spill] sm:$0xff] %v6262_v59  ;;  %v6268_v62 = vadd.s32 4294967295, %v6194_v13  ;;  %vm1149_vm10 = vcmp.lt.s32.totalorder %v6219_v29, 8  ;;  %vm9085_vm11 = vcmp.lt.s32.totalorder %v6250_v49, 8 }
 0x11d   : > { %v383_v51 = vadd.f32 %v4905_v24, %v370_v46  ;;  %9169 = vst [vmem:[#allocation18_spill] sm:$0xff] %v6213_v26  ;;  %v592_v24 = vadd.s32 32, %v6185_v8  ;;  %v6271_v46 = vadd.s32 4294967295, %v6237_v27  ;;  %vm927_vm7 = vcmp.ge.s32.totalorder %v6213_v26, 0  ;;  %vm6395_vm0 = vmand %vm640_vm5, %vm648_vm6 }
 0x11e   : > { %v393_v3 = vpack.c.bf16 %v385_v63, %v384_v1  ;;  %5224 = vmatpush3.bf16.msra.mxu0 %v5604_v5  ;;  %v6282_v1 = vadd.s32 1, %v6237_v27  ;;  %vm935_vm8 = vcmp.lt.s32.totalorder %v6213_v26, 8  ;;  %vm9083_vm12 = vcmp.lt.s32.totalorder %v6253_v52, 8 }
 0x11f   : > { %v392_v2 = vpack.c.bf16 %v383_v51, %v382_v0  ;;  %5225 = vmatprep.subr.bf16.mxu0 %v9065_v4  ;;  %v6279_v51 = vadd.s32 4294967295, %v6262_v59  ;;  %v6293_v12 = vand.u32 7, %v592_v24  ;;  %vm646_vm14 = vcmp.lt.s32.totalorder %v6268_v62, 8  ;;  %vm6409_vm15 = vmand %vm927_vm7, %vm935_vm8 }
 0x120   : > { %vm9107_vm2 = vcmp.ge.s32.totalorder %v6234_v40, 0  ;;  %v6403_v6 = vadd.s32 4294967295, %v6229_v37  ;;  %vm6428_vm7 = vmand %vm1141_vm9, %vm1149_vm10  ;;  %vm9200_vm10 = vcmp.ge.s32.totalorder %v6268_v62, 0  ;;  %v9201_v61 = vmov 0  ;;  %v6482_v62 = vld [vmem:[%s9061_s2 + $0x7] ss:$0 sm:$0xff] }
 0x121   : > { %5217 = vmatprep.mubr.msk.bf16.mxu1 %vm9064_vm3, %v392_v2  ;;  %9177 = vst [vmem:[#allocation26_spill] sm:$0xff] %v6293_v12  ;;  %vm6441_vm6 = vmand %vm6395_vm0, %vm9083_vm12  ;;  %vm9217_vm5 = vcmp.ge.s32.totalorder %v6240_v30, 0 }
 0x122   : > { %5218 = vmatmul.mubr.msk.bf16.gmra.mrb[4].mxu1 %vm9064_vm3, %v393_v3  ;;  %5226 = vmatpush3.bf16.msra.mxu0 %v5605_v7  ;;  %v6290_v7 = vshra.s32 %v592_v24, 3  ;;  %vm6449_vm9 = vmand %vm6409_vm15, %vm9085_vm11 }
 0x123   : > { %5235 = vmatprep.mubr.msk.bf16.mxu1 %vm9063_vm4, %v9065_v4  ;;  %5227 = vmatprep.subr.bf16.mxu0 %v9065_v4  ;;  %vm6463_vm12 = vmand %vm9200_vm10, %vm646_vm14  ;;  %vm9206_vm14 = vcmp.lt.s32.totalorder %v6260_v57, 8  ;;  %vm9207_vm10 = vcmp.ge.s32.totalorder %v6260_v57, 0 }
 0x124   : > { %9176 = vst [vmem:[#allocation25_spill] sm:$0xff] %v6290_v7  ;;  %v9202_v61 = vsel %vm6463_vm12, 4294967295, %v9201_v61  ;;  %vm6491_vm11 = vmand %vm9207_vm10, %vm9206_vm14  ;;  %v6546_v4 = vadd.s32 1, %v6290_v7 }
 0x125   : > { %9203 = vst [vmem:[#allocation39_spill] sm:$0xff] %v9202_v61  ;;  %vm6525_vm3 = vmand %vm6395_vm0, %vm9217_vm5 }
 0x126   : > { %5228 = vmatpush3.bf16.msra.mxu0 %v5606_v9  ;;  %9224 = vst [vmem:[#allocation46_spill] sm:$0xff] %v6546_v4  ;;  %vm6580_vm13 = vmand %vm6409_vm15, %vm9107_vm2 }
 0x1ed   : > { %v5215_v19 = vpop.f32.mrb[0].mxu1 }
 0x1ee   : > { %v467_v23 = vadd.f32 %v5215_v19, %v4906_v15  ;;  %v458_v33 = vpop.f32.mrb[1].mxu1 }
 0x1ef   : > { %v459_v36 = vadd.f32 %v4906_v15, %v458_v33  ;;  %v5216_v38 = vpop.f32.mrb[2].mxu1 }
 0x1f0   : > { %v496_v39 = vmul.f32 %v6209_v20, %v467_v23  ;;  %v470_v41 = vadd.f32 %v5216_v38, %v4906_v15  ;;  %v461_v43 = vpop.f32.mrb[3].mxu1 }
 0x1f1   : > { %v494_v45 = vmul.f32 %v6209_v20, %v459_v36  ;;  %v462_v47 = vadd.f32 %v4906_v15, %v461_v43 }
 0x1f2   : > { %v6247_v48 = vadd.f32 %v6224_v35, %v496_v39  ;;  %v497_v53 = vmul.f32 %v6209_v20, %v470_v41 }
 0x1f3   : > { %v6257_v55 = vadd.f32 %v6224_v35, %v494_v45  ;;  %v495_v60 = vmul.f32 %v6209_v20, %v462_v47 }
 0x1f4   : > { %v517_v42 = vmul.f32 %v6247_v48, %v6247_v48  ;;  %v6274_v63 = vadd.f32 %v6224_v35, %v497_v53 }
 0x1f5   : > { %v515_v0 = vmul.f32 %v6257_v55, %v6257_v55  ;;  %v6285_v2 = vadd.f32 %v6224_v35, %v495_v60  ;;  %v5219_v3 = vpop.f32.mrb[4].mxu1 }
 0x1f6   : > { %v525_v56 = vmul.f32 %v517_v42, %v6247_v48  ;;  %v518_v5 = vmul.f32 %v6274_v63, %v6274_v63  ;;  %v483_v9 = vadd.f32 %v5219_v3, %v4906_v15  ;;  %v474_v10 = vpop.f32.mrb[5].mxu1 }
 0x1f7   : > { %v523_v11 = vmul.f32 %v515_v0, %v6257_v55  ;;  %v516_v17 = vmul.f32 %v6285_v2, %v6285_v2  ;;  %v475_v19 = vadd.f32 %v4906_v15, %v474_v10  ;;  %v5220_v23 = vpop.f32.mrb[6].mxu1 }
 0x1f8   : > { %v533_v33 = vmul.f32 0.044715, %v525_v56  ;;  %v526_v36 = vmul.f32 %v518_v5, %v6274_v63  ;;  %v500_v38 = vmul.f32 %v6209_v20, %v483_v9  ;;  %v486_v39 = vadd.f32 %v5220_v23, %v4906_v15  ;;  %v477_v41 = vpop.f32.mrb[7].mxu1 }
 0x1f9   : > { %v531_v43 = vmul.f32 0.044715, %v523_v11  ;;  %v524_v45 = vmul.f32 %v516_v17, %v6285_v2  ;;  %v498_v47 = vmul.f32 %v6209_v20, %v475_v19  ;;  %v478_v53 = vadd.f32 %v4906_v15, %v477_v41 }
 0x1fa   : > { %v541_v24 = vadd.f32 %v533_v33, %v6247_v48  ;;  %v534_v60 = vmul.f32 0.044715, %v526_v36  ;;  %v6303_v42 = vadd.f32 %v6224_v35, %v500_v38  ;;  %v501_v0 = vmul.f32 %v6209_v20, %v486_v39 }
 0x1fb   : > { %v539_v3 = vadd.f32 %v531_v43, %v6257_v55  ;;  %v532_v56 = vmul.f32 0.044715, %v524_v45  ;;  %v6308_v5 = vadd.f32 %v6224_v35, %v498_v47  ;;  %v499_v9 = vmul.f32 %v6209_v20, %v478_v53 }
 0x1fc   : > { %9178 = vst [vmem:[#allocation27_spill] sm:$0xff] %v6303_v42  ;;  %v549_v10 = vmul.f32 0.7978846, %v541_v24  ;;  %v542_v11 = vadd.f32 %v534_v60, %v6274_v63  ;;  %v521_v15 = vmul.f32 %v6303_v42, %v6303_v42  ;;  %v6315_v17 = vadd.f32 %v6224_v35, %v501_v0 }
 0x1fd   : > { %9179 = vst [vmem:[#allocation28_spill] sm:$0xff] %v6308_v5  ;;  %v547_v19 = vmul.f32 0.7978846, %v539_v3  ;;  %v540_v23 = vadd.f32 %v532_v56, %v6285_v2  ;;  %v519_v33 = vmul.f32 %v6308_v5, %v6308_v5  ;;  %v6321_v36 = vadd.f32 %v6224_v35, %v499_v9 }
 0x1fe   : > { %9180 = vst [vmem:[#allocation29_spill] sm:$0xff] %v6315_v17  ;;  %5650 = vtanh.f32 %v549_v10  ;;  %v550_v20 = vmul.f32 0.7978846, %v542_v11  ;;  %v529_v38 = vmul.f32 %v521_v15, %v6303_v42  ;;  %v522_v39 = vmul.f32 %v6315_v17, %v6315_v17 }
 0x1ff   : > { %9181 = vst [vmem:[#allocation30_spill] sm:$0xff] %v6321_v36  ;;  %5652 = vtanh.f32 %v547_v19  ;;  %v548_v41 = vmul.f32 0.7978846, %v540_v23  ;;  %v527_v35 = vmul.f32 %v519_v33, %v6308_v5  ;;  %v520_v43 = vmul.f32 %v6321_v36, %v6321_v36 }
 0x200   : > { %v6336_v45 = vadd.s32 1, %v6229_v37  ;;  %5654 = vtanh.f32 %v550_v20  ;;  %v537_v47 = vmul.f32 0.044715, %v529_v38  ;;  %v530_v53 = vmul.f32 %v522_v39, %v6315_v17 }
 0x201   : > { %v6342_v24 = vadd.s32 1, %v6262_v59  ;;  %5656 = vtanh.f32 %v548_v41  ;;  %v535_v60 = vmul.f32 0.044715, %v527_v35  ;;  %v528_v0 = vmul.f32 %v520_v43, %v6321_v36 }
 0x202   : > { %v6347_v3 = vadd.s32 4294967295, %v6290_v7  ;;  %v545_v56 = vadd.f32 %v537_v47, %v6303_v42  ;;  %v593_v9 = vadd.s32 40, %v6185_v8  ;;  %v6355_v10 = vadd.s32 4294967295, %v6293_v12 }
 0x203   : > { %9182 = vst [vmem:[#allocation31_spill] sm:$0xff] %v6342_v24  ;;  %v543_v11 = vadd.f32 %v535_v60, %v6308_v5  ;;  %v538_v15 = vmul.f32 0.044715, %v530_v53  ;;  %v6360_v19 = vadd.s32 1, %v6213_v26  ;;  %v536_v33 = vmul.f32 0.044715, %v528_v0 }
 0x204   : > { %9183 = vst [vmem:[#allocation32_spill] sm:$0xff] %v6355_v10  ;;  %v553_v23 = vmul.f32 0.7978846, %v545_v56  ;;  %v6365_v20 = vadd.s32 4294967295, %v6213_v26  ;;  %v594_v38 = vadd.s32 48, %v6185_v8  ;;  %v6371_v41 = vadd.s32 1, %v6293_v12 }
 0x205   : > { %v551_v39 = vmul.f32 0.7978846, %v543_v11  ;;  %v6373_v35 = vshra.s32 %v593_v9, 3  ;;  %v6375_v43 = vand.u32 7, %v593_v9  ;;  %vm649_vm1 = vcmp.lt.s32.totalorder %v6347_v3, 8 }
 0x206   : > { %vm9102_vm4 = vcmp.ge.s32.totalorder %v6355_v10, 0  ;;  %v6382_v47 = vand.u32 7, %v594_v38  ;;  %v546_v53 = vadd.f32 %v538_v15, %v6315_v17  ;;  %v6388_v0 = vadd.s32 1, %v6260_v57  ;;  %v6700_v10 = vld [vmem:[%s9061_s2 + $0x9] ss:$0 sm:$0xff] }
 0x207   : > { %9184 = vst [vmem:[#allocation33_spill] sm:$0xff] %v6373_v35  ;;  %9185 = vst [vmem:[#allocation34_spill] sm:$0xff] %v6375_v43  ;;  %5658 = vtanh.f32 %v553_v23  ;;  %v544_v56 = vadd.f32 %v536_v33, %v6321_v36  ;;  %v6400_v15 = vshra.s32 %v594_v38, 3  ;;  %v6416_v38 = vadd.s32 4294967295, %v6375_v43 }
 0x208   : > { %9186 = vst [vmem:[#allocation35_spill] sm:$0xff] %v6382_v47  ;;  %v5651_v60 = vpop.eup %5650  ;;  %5660 = vtanh.f32 %v551_v39  ;;  %v6422_v39 = vadd.s32 4294967295, %v6373_v35  ;;  %v6435_v16 = vadd.s32 4294967295, %v6382_v47  ;;  %v554_v27 = vmul.f32 0.7978846, %v546_v53 }
 0x209   : > { %v5653_v9 = vpop.eup %5652  ;;  %v565_v11 = vadd.f32 1.0, %v5651_v60  ;;  %9189 = vst [vmem:[#allocation36_spill] sm:$0xff] %v6400_v15  ;;  %v6419_v60 = vadd.s32 1, %v6373_v35  ;;  %v6454_v53 = vadd.s32 1, %v6375_v43  ;;  %v552_v26 = vmul.f32 0.7978846, %v544_v56 }
 0x20a   : > { %v5655_v23 = vpop.eup %5654  ;;  %v563_v28 = vadd.f32 1.0, %v5653_v9  ;;  %v9192_v9 = vmov 0  ;;  %9194 = vst [vmem:[#allocation37_spill] sm:$0xff] %v6435_v16  ;;  %v6473_v56 = vadd.s32 1, %v6196_v14  ;;  %v6499_v50 = vadd.s32 4294967295, %v6400_v15 }
 0x20b   : > { %v5657_v59 = vpop.eup %5656  ;;  %v573_v12 = vmul.f32 0.5, %v565_v11  ;;  %v9193_v9 = vsel %vm6428_vm7, 4294967295, %v9192_v9  ;;  %v566_v21 = vadd.f32 1.0, %v5655_v23  ;;  %9199 = vst [vmem:[#allocation38_spill] sm:$0xff] %v6454_v53  ;;  %vm9213_vm14 = vcmp.lt.s32.totalorder %v6336_v45, 8 }
 0x20c   : > { %v571_v23 = vmul.f32 0.5, %v563_v28  ;;  %v564_v18 = vadd.f32 1.0, %v5657_v59  ;;  %v6470_v59 = vadd.s32 1, %v6382_v47  ;;  %v9208_v28 = vmov 0  ;;  %9212 = vst [vmem:[#allocation44_spill] sm:$0xff] %v6499_v50 }
 0x20d   : > { %v6457_v58 = vmul.f32 %v573_v12, %v6247_v48  ;;  %v6476_v48 = vadd.s32 4294967295, %v6260_v57  ;;  %v9209_v28 = vsel %vm6491_vm11, 4294967295, %v9208_v28  ;;  %v574_v43 = vmul.f32 0.5, %v566_v21  ;;  %v6510_v57 = vld [vmem:[%s9061_s2 + $0xa] ss:$0 sm:$0xff] }
 0x20e   : > { %9204 = vst [vmem:[#allocation40_spill] sm:$0xff] %v6470_v59  ;;  %v6485_v12 = vmul.f32 %v571_v23, %v6257_v55  ;;  %9210 = vst [vmem:[#allocation42_spill] sm:$0xff] %v9209_v28  ;;  %v6496_v47 = vadd.s32 1, %v6400_v15  ;;  %vm9214_vm10 = vcmp.ge.s32.totalorder %v6336_v45, 0  ;;  %v9215_v21 = vmov 0 }
 0x20f   : > { %v797_v55 = vsel %vm6395_vm0, %v6457_v58, 0.0  ;;  %v1044_v23 = vsel %vm6409_vm15, %v6457_v58, 0.0  ;;  %vm6516_vm8 = vmand %vm9214_vm10, %vm9213_vm14  ;;  %v572_v54 = vmul.f32 0.5, %v564_v18  ;;  %5662 = vtanh.f32 %v554_v27 }
 0x210   : > { %9205 = vst [vmem:[#allocation41_spill] sm:$0xff] %v6485_v12  ;;  %9211 = vst [vmem:[#allocation43_spill] sm:$0xff] %v6496_v47  ;;  %v9216_v21 = vsel %vm6516_vm8, 4294967295, %v9215_v21  ;;  %v1258_v45 = vsel %vm6428_vm7, %v6457_v58, 0.0  ;;  %vm9221_vm14 = vcmp.ge.s32.totalorder %v6347_v3, 0  ;;  %5664 = vtanh.f32 %v552_v26 }
 0x211   : > { %vm6541_vm10 = vmand %vm9221_vm14, %vm649_vm1  ;;  %v6549_v27 = vmul.f32 %v6482_v62, %v797_v55  ;;  %vm9225_vm0 = vcmp.lt.s32.totalorder %v6243_v44, 8  ;;  %v795_v26 = vsel %vm6463_vm12, %v6485_v12, 0.0  ;;  %v1042_v3 = vsel %vm6491_vm11, %v6485_v12, 0.0  ;;  %v5659_v34 = vpop.eup %5658 }
 0x212   : > { %vm6556_vm5 = vmand %vm6428_vm7, %vm9225_vm0  ;;  %v6585_v35 = vmul.f32 %v6510_v57, %v1044_v23  ;;  %v1264_v36 = vsel %vm6516_vm8, %v6485_v12, 0.0  ;;  %v6593_v17 = vmul.f32 %v574_v43, %v6274_v63  ;;  %vm9233_vm14 = vcmp.lt.s32.totalorder %v6196_v14, 8  ;;  %v5661_v23 = vpop.eup %5660 }
 0x213   : > { %vm6570_vm1 = vmand %vm6541_vm10, %vm9102_vm4  ;;  %vm9234_vm15 = vcmp.ge.s32.totalorder %v6196_v14, 0  ;;  %v9235_v33 = vmov 0  ;;  %v6604_v50 = vmul.f32 %v6535_v31, %v1258_v45  ;;  %v6607_v53 = vmul.f32 %v6482_v62, %v795_v26 }
 0x214   : > { %9232 = vst [vmem:[#allocation47_spill] sm:$0xff] %v6593_v17  ;;  %vm6599_vm0 = vmand %vm9234_vm15, %vm9233_vm14  ;;  %vm9239_vm4 = vcmp.lt.s32.totalorder %v6243_v44, 8  ;;  %vm9242_vm14 = vcmp.lt.s32.totalorder %v6360_v19, 8  ;;  %vm9243_vm15 = vcmp.ge.s32.totalorder %v6360_v19, 0  ;;  %v9244_v43 = vmov 0 }
 0x215   : > { %v9236_v33 = vsel %vm6599_vm0, 4294967295, %v9235_v33  ;;  %9237 = vst [vmem:[#allocation48_spill] sm:$0xff] %v6604_v50  ;;  %9238 = vst [vmem:[#allocation49_spill] sm:$0xff] %v6607_v53  ;;  %v6627_v45 = vmul.f32 %v572_v54, %v6285_v2  ;;  %v6631_v26 = vmul.f32 %v6510_v57, %v1042_v3  ;;  %v6642_v19 = vmul.f32 %v6535_v31, %v1264_v36  ;;  %v6657_v3 = vld [vmem:[%s9061_s2 + $0x6] ss:$0 sm:$0xff] }
 0x216   : > { %vm6614_vm2 = vmand %vm6463_vm12, %vm9239_vm4  ;;  %vm9248_vm4 = vcmp.lt.s32.totalorder %v6282_v1, 8  ;;  %v798_v36 = vsel %vm6541_vm10, %v6593_v17, 0.0  ;;  %v1045_v54 = vsel %vm6599_vm0, %v6593_v17, 0.0  ;;  %v6674_v50 = vadd.f32 1.0, %v5659_v34  ;;  %v6695_v34 = vld [vmem:[%s9061_s2 + $0x8] ss:$0 sm:$0xff] }
 0x217   : > { %vm6622_vm8 = vmand %vm9243_vm15, %vm9242_vm14  ;;  %9247 = vst [vmem:[#allocation51_spill] sm:$0xff] %v6631_v26  ;;  %vm9252_vm14 = vcmp.ge.s32.totalorder %v6240_v30, 0  ;;  %v613_v14 = vrot.slane %v6627_v45, 7  ;;  %v9259_v26 = vrot.slane %v6593_v17, 7  ;;  %v9260_v53 = vrot.slane %v6457_v58, 7 }
 0x218   : > { %v9245_v43 = vsel %vm6622_vm8, 4294967295, %v9244_v43  ;;  %vm6637_vm12 = vmand %vm6491_vm11, %vm9248_vm4  ;;  %9251 = vst [vmem:[#allocation52_spill] sm:$0xff] %v6642_v19  ;;  %vm9255_vm4 = vcmp.lt.s32.totalorder %v6365_v20, 8  ;;  %vm9261_vm11 = vcmp.lt.s32.totalorder %v6185_v8, 1  ;;  %v9262_v30 = vrot.slane %v6593_v17, 1 }
 0x219   : > { %9246 = vst [vmem:[#allocation50_spill] sm:$0xff] %v9245_v43  ;;  %vm6650_vm15 = vmand %vm6599_vm0, %vm9252_vm14  ;;  %vm9256_vm14 = vcmp.ge.s32.totalorder %v6365_v20, 0  ;;  %v6682_v28 = vsel %vm9261_vm11, %v9260_v53, %v9259_v26  ;;  %v9263_v47 = vrot.slane %v6457_v58, 1  ;;  %vm9264_vm0 = vcmp.lt.s32.totalorder %v6185_v8, 7 }
 0x21a   : > { %vm6670_vm7 = vmand %vm9256_vm14, %vm9255_vm4  ;;  %vm9265_vm11 = vcmp.ge.s32.totalorder %v6234_v40, 0  ;;  %v721_v26 = vsel %vm6570_vm1, %v6682_v28, 0.0  ;;  %v984_v61 = vsel %vm6650_vm15, %v6682_v28, 0.0  ;;  %v811_v2 = vmul.f32 %v6482_v62, %v798_v36  ;;  %v6759_v36 = vpop.eup %5662 }
 0x21b   : > { %v6690_v20 = vsel %vm9264_vm0, %v9263_v47, %v9262_v30  ;;  %vm6706_vm4 = vmand %vm6622_vm8, %vm9265_vm11  ;;  %v1259_v30 = vsel %vm6622_vm8, %v6593_v17, 0.0  ;;  %v6713_v47 = vadd.f32 1.0, %v5661_v23  ;;  %v6731_v23 = vld [vmem:[%s9061_s2 + $0xb] ss:$0 sm:$0xff]  ;;  %v734_v55 = vmul.f32 %v6657_v3, %v721_v26 }
 0x21c   : > { %v899_v59 = vsel %vm6441_vm6, %v6690_v20, 0.0  ;;  %v1105_v17 = vsel %vm6449_vm9, %v6690_v20, 0.0  ;;  %vm9268_vm1 = vmmov %vm9265_vm11  ;;  %v6744_v29 = vmul.f32 %v6510_v57, %v1045_v54  ;;  %v796_v43 = vsel %vm6670_vm7, %v6627_v45, 0.0 }
 0x21d   : > { %vm6737_vm14 = vmand %vm6670_vm7, %vm9268_vm1  ;;  %vm9272_vm6 = vcmp.lt.s32.totalorder %v6194_v13, 8  ;;  %vm9273_vm9 = vcmp.ge.s32.totalorder %v6194_v13, 0  ;;  %v912_v54 = vmul.f32 %v6695_v34, %v899_v59  ;;  %v6763_v26 = vmul.f32 %v6535_v31, %v1259_v30  ;;  %v6787_v30 = vpop.eup %5664 }
 0x21e   : > { %9271 = vst [vmem:[#allocation53_spill] sm:$0xff] %v6744_v29  ;;  %vm6753_vm15 = vmand %vm9273_vm9, %vm9272_vm6  ;;  %v9277_v29 = vrot.slane %v6457_v58, 7  ;;  %vm9278_vm0 = vcmp.lt.s32.totalorder %v6185_v8, 1  ;;  %v9279_v5 = vrot.slane %v6485_v12, 7  ;;  %vm9281_vm9 = vcmp.ge.s32.totalorder %v6227_v22, 0 }
 0x21f   : > { %9276 = vst [vmem:[#allocation54_spill] sm:$0xff] %v6763_v26  ;;  %vm9280_vm6 = vmmov %vm9278_vm0  ;;  %vm939_vm8 = vcmp.lt.s32.totalorder %v6400_v15, 8  ;;  %v6792_v26 = vmul.f32 %v6700_v10, %v984_v61  ;;  %v6813_v61 = vld [vmem:[%s9061_s2 + $0xc] ss:$0 sm:$0xff]  ;;  %v809_v19 = vmul.f32 %v6482_v62, %v796_v43  ;;  %v1198_v32 = vsel %vm6706_vm4, %v6682_v28, 0.0 }
 0x220   : > { %v6769_v13 = vsel %vm9278_vm0, %v613_v14, %v9277_v29  ;;  %v6775_v42 = vsel %vm9280_vm6, %v9279_v5, %v613_v14  ;;  %vm6781_vm11 = vmand %vm6753_vm15, %vm9281_vm9  ;;  %v6789_v29 = vadd.f32 %v811_v2, %v734_v55  ;;  %v6795_v14 = vmul.f32 %v6731_v23, %v1105_v17 }
 0x221   : > { %v719_v5 = vsel %vm6737_vm14, %v6775_v42, 0.0  ;;  %vm9285_vm0 = vcmp.lt.s32.totalorder %v6250_v49, 8  ;;  %v720_v17 = vsel %vm6525_vm3, %v6769_v13, 0.0  ;;  %v824_v55 = vrot.slane %v6627_v45, 1 }
 0x222   : > { %9284 = vst [vmem:[#allocation55_spill] sm:$0xff] %v6789_v29  ;;  %vm6804_vm6 = vmand %vm6670_vm7, %vm9285_vm0  ;;  %v732_v11 = vmul.f32 %v6657_v3, %v719_v5  ;;  %vm9288_vm7 = vcmp.lt.s32.totalorder %v6243_v44, 8  ;;  %v1319_v43 = vsel %vm6556_vm5, %v6690_v20, 0.0  ;;  %v6840_v44 = vld [vmem:[%s9061_s2 + $0xe] ss:$0 sm:$0xff]  ;;  %v733_v5 = vmul.f32 %v6657_v3, %v720_v17 }
 0x223   : > { %vm6825_vm14 = vmand %vm6753_vm15, %vm9288_vm7  ;;  %v982_v29 = vsel %vm6781_vm11, %v6775_v42, 0.0  ;;  %vm9291_vm3 = vcmp.lt.s32.totalorder %v6388_v0, 8  ;;  %vm9292_vm7 = vcmp.ge.s32.totalorder %v6388_v0, 0  ;;  %v9295_v20 = vrot.slane %v6457_v58, 1 }
 0x224   : > { %vm6850_vm4 = vmand %vm9292_vm7, %vm9291_vm3  ;;  %v817_v25 = vadd.f32 %v809_v19, %v732_v11  ;;  %vm9296_vm9 = vcmp.lt.s32.totalorder %v6185_v8, 7  ;;  %v9297_v59 = vrot.slane %v6485_v12, 1  ;;  %v983_v0 = vsel %vm6580_vm13, %v6769_v13, 0.0 }
 0x225   : > { %v837_v53 = vsel %vm9296_vm9, %v824_v55, %v9295_v20  ;;  %vm9298_vm11 = vmmov %vm9296_vm9  ;;  %vm9299_vm3 = vcmp.ge.s32.totalorder %v6271_v46, 0  ;;  %vm1143_vm5 = vcmp.ge.s32.totalorder %v6473_v56, 0  ;;  %vm1151_vm9 = vcmp.lt.s32.totalorder %v6473_v56, 8 }
 0x226   : > { %v838_v17 = vsel %vm9298_vm11, %v9297_v59, %v824_v55  ;;  %vm6871_vm7 = vmand %vm6850_vm4, %vm9299_vm3  ;;  %vm9302_vm0 = vcmp.ge.s32.totalorder %v6227_v22, 0  ;;  %vm9303_vm11 = vnez %v9193_v9  ;;  %v818_v4 = vadd.f32 %v6549_v27, %v733_v5  ;;  %v9336_v9 = vld [vmem:[#allocation28_spill] sm:$0xff] }
 0x227   : > { %vm6881_vm1 = vmand %vm9303_vm11, %vm9302_vm0  ;;  %v897_v19 = vsel %vm6614_vm2, %v838_v17, 0.0  ;;  %v898_v55 = vsel %vm6804_vm6, %v837_v53, 0.0  ;;  %v1043_v20 = vsel %vm6753_vm15, %v6627_v45, 0.0  ;;  %vm9137_vm13 = vcmp.ge.s32.totalorder %v6416_v38, 0 }
 0x228   : > { %vm9306_vm3 = vcmp.lt.s32.totalorder %v6342_v24, 8  ;;  %vm9307_vm0 = vnez %v9216_v21  ;;  %v1211_v27 = vmul.f32 %v6813_v61, %v1198_v32  ;;  %v6904_v63 = vmul.f32 %v6840_v44, %v1319_v43  ;;  %v9403_v21 = vld [vmem:[#allocation30_spill] sm:$0xff] }
 0x229   : > { %vm6898_vm11 = vmand %vm9307_vm0, %vm9306_vm3  ;;  %v911_v31 = vmul.f32 %v6695_v34, %v898_v55  ;;  %v1103_v40 = vsel %vm6637_vm12, %v838_v17, 0.0  ;;  %v920_v5 = vadd.f32 %v912_v54, %v818_v4  ;;  %v6910_v59 = vmul.f32 %v6700_v10, %v982_v29 }
 0x22a   : > { %9310 = vst [vmem:[#allocation56_spill] sm:$0xff] %v6904_v63  ;;  %v1104_v12 = vsel %vm6825_vm14, %v837_v53, 0.0  ;;  %v1196_v24 = vsel %vm6871_vm7, %v6775_v42, 0.0  ;;  %vm9311_vm2 = vcmp.lt.s32.totalorder %v6282_v1, 8  ;;  %v6926_v16 = vmul.f32 %v6695_v34, %v897_v19 }
 0x22b   : > { %vm6921_vm15 = vmand %vm6850_vm4, %vm9311_vm2  ;;  %v919_v54 = vadd.f32 %v911_v31, %v817_v25  ;;  %v996_v29 = vmul.f32 %v6700_v10, %v983_v0  ;;  %v6930_v2 = vmul.f32 %v6510_v57, %v1043_v20  ;;  %vm9314_vm12 = vcmp.lt.s32.totalorder %v6371_v41, 8 }
 0x22c   : > { %vm6936_vm6 = vmand %vm6541_vm10, %vm9314_vm12  ;;  %vm9317_vm14 = vcmp.lt.s32.totalorder %v6253_v52, 8  ;;  %vm9318_vm7 = vnez %v9236_v33  ;;  %v6949_v25 = vmul.f32 %v6731_v23, %v1103_v40  ;;  %v6952_v0 = vmul.f32 %v6731_v23, %v1104_v12  ;;  %v9341_v40 = vld [vmem:[#allocation53_spill] sm:$0xff] }
 0x22d   : > { %vm6944_vm3 = vmand %vm9318_vm7, %vm9317_vm14  ;;  %v1197_v18 = vsel %vm6881_vm1, %v6769_v13, 0.0  ;;  %v1257_v11 = vsel %vm6850_vm4, %v6627_v45, 0.0  ;;  %v1004_v4 = vadd.f32 %v996_v29, %v919_v54  ;;  %v6961_v33 = vmul.f32 %v6813_v61, %v1196_v24 }
 0x22e   : > { %v1318_v19 = vsel %vm6921_vm15, %v837_v53, 0.0  ;;  %v1325_v55 = vsel %vm6898_vm11, %v838_v17, 0.0  ;;  %vm9321_vm10 = vcmp.lt.s32.totalorder %v6403_v6, 8  ;;  %vm9322_vm2 = vcmp.ge.s32.totalorder %v6403_v6, 0  ;;  %v9328_v17 = vld [vmem:[#allocation45_spill] sm:$0xff] }
 0x22f   : > { %vm6971_vm12 = vmand %vm9322_vm2, %vm9321_vm10  ;;  %v577_v24 = vmul.f32 0.5, %v6674_v50  ;;  %vm9325_vm11 = vcmp.ge.s32.totalorder %v6400_v15, 0  ;;  %v575_v6 = vmul.f32 0.5, %v6713_v47  ;;  %v1005_v45 = vadd.f32 %v6792_v26, %v920_v5 }
 0x230   : > { %vm6983_vm15 = vmand %vm9325_vm11, %vm939_vm8  ;;  %v570_v28 = vadd.f32 1.0, %v6759_v36  ;;  %v1065_v50 = vadd.f32 %v6585_v35, %v1004_v4  ;;  %v6994_v53 = vmul.f32 %v6813_v61, %v1197_v18  ;;  %v6997_v58 = vmul.f32 %v9328_v17, %v1257_v11  ;;  %v9335_v35 = vld [vmem:[#allocation27_spill] sm:$0xff]  ;;  %v9371_v18 = vld [vmem:[#allocation54_spill] sm:$0xff] }
 0x231   : > { %vm9330_vm8 = vcmp.lt.s32.totalorder %v6419_v60, 8  ;;  %vm9331_vm2 = vcmp.ge.s32.totalorder %v6419_v60, 0  ;;  %v9332_v47 = vmov 0  ;;  %v568_v36 = vadd.f32 1.0, %v6787_v30 }
 0x232   : > { %9329 = vst [vmem:[#allocation45_spill] sm:$0xff] %v6997_v58  ;;  %vm7003_vm11 = vmand %vm9331_vm2, %vm9330_vm8  ;;  %v7009_v26 = vmul.f32 %v6840_v44, %v1318_v19  ;;  %v7012_v20 = vmul.f32 %v577_v24, %v9335_v35  ;;  %v7015_v31 = vmul.f32 %v575_v6, %v9336_v9  ;;  %vm9337_vm7 = vcmp.lt.s32.totalorder %v6422_v39, 8  ;;  %v7298_v24 = vld [vmem:[%s9061_s2 + $0x11] ss:$0 sm:$0xff] }
 0x233   : > { %v9333_v47 = vsel %vm7003_vm11, 4294967295, %v9332_v47  ;;  %vm9338_vm10 = vcmp.ge.s32.totalorder %v6422_v39, 0  ;;  %v9339_v60 = vmov 0  ;;  %v1066_v5 = vadd.f32 %v9341_v40, %v1005_v45  ;;  %v9362_v40 = vld [vmem:[#allocation32_spill] sm:$0xff] }
 0x234   : > { %9334 = vst [vmem:[#allocation57_spill] sm:$0xff] %v7009_v26  ;;  %vm7021_vm14 = vmand %vm9338_vm10, %vm9337_vm7  ;;  %v1126_v30 = vadd.f32 %v6795_v14, %v1065_v50  ;;  %v7028_v32 = vmul.f32 %v6840_v44, %v1325_v55  ;;  %vm9343_vm8 = vcmp.lt.s32.totalorder %v6290_v7, 8  ;;  %vm9344_vm2 = vcmp.ge.s32.totalorder %v6290_v7, 0  ;;  %v9352_v55 = vld [vmem:[#allocation39_spill] sm:$0xff] }
 0x235   : > { %v9340_v60 = vsel %vm7021_vm14, 4294967295, %v9339_v60  ;;  %vm7034_vm1 = vmand %vm9344_vm2, %vm9343_vm8  ;;  %v9345_v54 = vmov 0  ;;  %v578_v39 = vmul.f32 0.5, %v570_v28  ;;  %v576_v29 = vmul.f32 0.5, %v568_v36  ;;  %v9357_v28 = vld [vmem:[#allocation40_spill] sm:$0xff]  ;;  %v9372_v36 = vld [vmem:[#allocation43_spill] sm:$0xff] }
 0x236   : > { %9342 = vst [vmem:[#allocation27_spill] sm:$0xff] %v7028_v32  ;;  %v9346_v54 = vsel %vm7034_vm1, 4294967295, %v9345_v54  ;;  %v801_v11 = vsel %vm6971_vm12, %v7012_v20, 0.0  ;;  %v1048_v4 = vsel %vm6983_vm15, %v7012_v20, 0.0  ;;  %vm7050_vm7 = vmand %vm1143_vm5, %vm1151_vm9  ;;  %v9348_v19 = vmov 0  ;;  %v9375_v7 = vld [vmem:[#allocation47_spill] sm:$0xff] }
 0x237   : > { %9347 = vst [vmem:[#allocation28_spill] sm:$0xff] %v9346_v54  ;;  %v9349_v19 = vsel %vm7050_vm7, 4294967295, %v9348_v19  ;;  %vm9351_vm10 = vcmp.ge.s32.totalorder %v6227_v22, 0  ;;  %vm9353_vm8 = vnez %v9352_v55  ;;  %v1219_v6 = vadd.f32 %v1211_v27, %v1126_v30  ;;  %vm7076_vm5 = vmand %vm7021_vm14, %vm9137_vm13 }
 0x238   : > { %9350 = vst [vmem:[#allocation53_spill] sm:$0xff] %v9349_v19  ;;  %vm7058_vm2 = vmand %vm9353_vm8, %vm9351_vm10  ;;  %v7063_v45 = vmul.f32 %v6482_v62, %v801_v11  ;;  %v7067_v56 = vmul.f32 %v6510_v57, %v1048_v4  ;;  %v1262_v50 = vsel %vm7003_vm11, %v7012_v20, 0.0  ;;  %v799_v35 = vsel %vm7021_vm14, %v7015_v31, 0.0  ;;  %v9367_v11 = vld [vmem:[#allocation50_spill] sm:$0xff] }
 0x239   : > { %v7081_v27 = vmul.f32 %v9328_v17, %v1262_v50  ;;  %vm9363_vm9 = vcmp.ge.s32.totalorder %v9362_v40, 0  ;;  %vm9366_vm8 = vcmp.lt.s32.totalorder %v6250_v49, 8  ;;  %vm9368_vm13 = vnez %v9367_v11  ;;  %v9373_v49 = vld [vmem:[#allocation37_spill] sm:$0xff] }
 0x23a   : > { %9356 = vst [vmem:[#allocation39_spill] sm:$0xff] %v7063_v45  ;;  %9358 = vst [vmem:[#allocation40_spill] sm:$0xff] %v7067_v56  ;;  %v812_v55 = vmul.f32 %v6482_v62, %v799_v35  ;;  %v1046_v50 = vsel %vm7034_vm1, %v7015_v31, 0.0  ;;  %v1260_v14 = vsel %vm7050_vm7, %v7015_v31, 0.0  ;;  %v1280_v9 = vadd.f32 %v9371_v18, %v1219_v6  ;;  %v9381_v56 = vld [vmem:[#allocation21_spill] sm:$0xff] }
 0x23b   : > { %9361 = vst [vmem:[#allocation58_spill] sm:$0xff] %v7081_v27  ;;  %vm7092_vm10 = vmand %vm7034_vm1, %vm9363_vm9  ;;  %v9374_v11 = vrot.slane %v7015_v31, 7  ;;  %v9376_v35 = vrot.slane %v9375_v7, 7  ;;  %v9378_v32 = vrot.slane %v7015_v31, 1  ;;  %v9379_v27 = vrot.slane %v9375_v7, 1 }
 0x23c   : > { %vm7100_vm4 = vmand %vm9368_vm13, %vm9366_vm8  ;;  %vm9377_vm8 = vcmp.lt.s32.totalorder %v6185_v8, 1  ;;  %vm9380_vm1 = vcmp.lt.s32.totalorder %v6185_v8, 7  ;;  %v1059_v6 = vmul.f32 %v6510_v57, %v1046_v50  ;;  %vm9382_vm9 = vcmp.ge.s32.totalorder %v9381_v56, 0 }
 0x23d   : > { %v624_v15 = vsel %vm9377_vm8, %v9376_v35, %v9374_v11  ;;  %v835_v18 = vsel %vm9380_vm1, %v9379_v27, %v9378_v32  ;;  %vm7132_vm13 = vmand %vm7050_vm7, %vm9382_vm9  ;;  %v1273_v40 = vmul.f32 %v9328_v17, %v1260_v14  ;;  %vm9385_vm8 = vcmp.ge.s32.totalorder %v6271_v46, 0  ;;  %v9386_v11 = vld [vmem:[#allocation42_spill] sm:$0xff] }
 0x23e   : > { %vm9387_vm14 = vnez %v9386_v11  ;;  %v9390_v32 = vld [vmem:[#allocation38_spill] sm:$0xff]  ;;  %v722_v56 = vsel %vm7076_vm5, %v624_v15, 0.0  ;;  %v900_v27 = vsel %vm6936_vm6, %v835_v18, 0.0  ;;  %v985_v50 = vsel %vm7092_vm10, %v624_v15, 0.0 }
 0x23f   : > { %vm7141_vm11 = vmand %vm9387_vm14, %vm9385_vm8  ;;  %v1106_v14 = vsel %vm6944_vm3, %v835_v18, 0.0  ;;  %v735_v35 = vmul.f32 %v6657_v3, %v722_v56  ;;  %v913_v11 = vmul.f32 %v6695_v34, %v900_v27  ;;  %v998_v19 = vmul.f32 %v6700_v10, %v985_v50  ;;  %v9398_v56 = vld [vmem:[#allocation29_spill] sm:$0xff] }
 0x240   : > { %v1119_v63 = vmul.f32 %v6731_v23, %v1106_v14  ;;  %vm9391_vm14 = vcmp.lt.s32.totalorder %v6476_v48, 8  ;;  %vm9392_vm5 = vcmp.ge.s32.totalorder %v6476_v48, 0  ;;  %vm9395_vm6 = vcmp.ge.s32.totalorder %v6279_v51, 0  ;;  %v9404_v14 = vld [vmem:[#allocation31_spill] sm:$0xff] }
 0x241   : > { %vm7162_vm9 = vmand %vm9392_vm5, %vm9391_vm14  ;;  %v1199_v22 = vsel %vm7132_vm13, %v624_v15, 0.0  ;;  %v1320_v30 = vsel %vm7100_vm4, %v835_v18, 0.0  ;;  %v7179_v48 = vmul.f32 %v578_v39, %v9398_v56  ;;  %vm9399_vm10 = vcmp.lt.s32.totalorder %v6229_v37, 8  ;;  %v9409_v39 = vld [vmem:[#allocation55_spill] sm:$0xff] }
 0x242   : > { %vm7170_vm3 = vmand %vm9307_vm0, %vm9395_vm6  ;;  %vm9400_vm8 = vcmp.ge.s32.totalorder %v6229_v37, 0  ;;  %v7190_v50 = vmul.f32 %v576_v29, %v9403_v21  ;;  %vm9405_vm0 = vcmp.lt.s32.totalorder %v9404_v14, 8  ;;  %v7200_v15 = vadd.f32 %v812_v55, %v735_v35  ;;  %v9410_v37 = vld [vmem:[#allocation44_spill] sm:$0xff]  ;;  %v9414_v35 = vld [vmem:[#allocation33_spill] sm:$0xff] }
 0x243   : > { %vm7185_vm14 = vmand %vm9400_vm8, %vm9399_vm10  ;;  %v921_v4 = vadd.f32 %v913_v11, %v9409_v39  ;;  %v1127_v18 = vadd.f32 %v1119_v63, %v1066_v5  ;;  %v1212_v56 = vmul.f32 %v6813_v61, %v1199_v22  ;;  %v1333_v29 = vmul.f32 %v6840_v44, %v1320_v30 }
 0x244   : > { %vm7196_vm13 = vmand %vm6971_vm12, %vm9405_vm0  ;;  %9408 = vst [vmem:[#allocation50_spill] sm:$0xff] %v7200_v15  ;;  %v619_v21 = vrot.slane %v7179_v48, 7  ;;  %vm9411_vm6 = vcmp.ge.s32.totalorder %v6271_v46, 0  ;;  %v794_v63 = vsel %vm7162_vm9, %v7179_v48, 0.0  ;;  %v830_v5 = vrot.slane %v7179_v48, 1  ;;  %v9420_v15 = vld [vmem:[#allocation41_spill] sm:$0xff] }
 0x245   : > { %vm7212_vm10 = vmand %vm7162_vm9, %vm9411_vm6  ;;  %v1006_v11 = vadd.f32 %v998_v19, %v921_v4  ;;  %v1220_v22 = vadd.f32 %v1212_v56, %v1127_v18  ;;  %v7225_v46 = vld [vmem:[%s9061_s2 + $0xf] ss:$0 sm:$0xff]  ;;  %v807_v30 = vmul.f32 %v6482_v62, %v794_v63  ;;  %vm9415_vm6 = vcmp.lt.s32.totalorder %v6282_v1, 8 }
 0x246   : > { %vm7232_vm4 = vmand %vm7162_vm9, %vm9415_vm6  ;;  %v1049_v19 = vsel %vm7185_vm14, %v7179_v48, 0.0  ;;  %v1341_v4 = vadd.f32 %v1333_v29, %v1280_v9  ;;  %v9418_v18 = vrot.slane %v7012_v20, 7  ;;  %vm9419_vm8 = vcmp.lt.s32.totalorder %v6185_v8, 1 }
 0x247   : > { %v9421_v63 = vrot.slane %v9420_v15, 7  ;;  %vm9422_vm0 = vmmov %vm9419_vm8  ;;  %v9423_v42 = vrot.slane %v7012_v20, 1  ;;  %vm9425_vm6 = vcmp.ge.s32.totalorder %v6279_v51, 0  ;;  %v7343_v9 = vmul.f32 %v6510_v57, %v1049_v19 }
 0x248   : > { %v621_v56 = vsel %vm9419_vm8, %v9418_v18, %v619_v21  ;;  %vm9424_vm9 = vmmov %vm9380_vm1  ;;  %vm9428_vm8 = vcmp.lt.s32.totalorder %v9357_v28, 8  ;;  %v7269_v18 = vadd.f32 %v1273_v40, %v1220_v22  ;;  %v1354_v58 = vadd.f32 %v7225_v46, %v1341_v4  ;;  %v9440_v4 = vld [vmem:[#allocation49_spill] sm:$0xff] }
 0x249   : > { %v628_v1 = vsel %vm9422_vm0, %v619_v21, %v9421_v63  ;;  %v832_v26 = vsel %vm9424_vm9, %v9423_v42, %v830_v5  ;;  %vm7255_vm5 = vmand %vm7185_vm14, %vm9425_vm6  ;;  %v7267_v21 = vadd.f32 %v1059_v6, %v1006_v11  ;;  %v7274_v63 = vld [vmem:[%s9061_s2 + $0x10] ss:$0 sm:$0xff]  ;;  %v717_v42 = vsel %vm7212_vm10, %v621_v56, 0.0 }
 0x24a   : > { %vm7263_vm1 = vmand %vm6983_vm15, %vm9428_vm8  ;;  %v718_v45 = vsel %vm7058_vm2, %v628_v1, 0.0  ;;  %v730_v54 = vmul.f32 %v6657_v3, %v717_v42  ;;  %v9431_v40 = vrot.slane %v9420_v15, 1  ;;  %v903_v15 = vsel %vm7196_vm13, %v832_v26, 0.0 }
 0x24b   : > { %v731_v6 = vmul.f32 %v6657_v3, %v718_v45  ;;  %vm9432_vm0 = vmmov %vm9424_vm9  ;;  %vm9433_vm9 = vcmp.lt.s32.totalorder %v9404_v14, 8  ;;  %v981_v14 = vsel %vm7141_vm11, %v628_v1, 0.0  ;;  %v988_v27 = vsel %vm7255_vm5, %v621_v56, 0.0 }
 0x24c   : > { %v839_v11 = vsel %vm9432_vm0, %v830_v5, %v9431_v40  ;;  %vm7291_vm6 = vmand %vm7185_vm14, %vm9433_vm9  ;;  %vm9436_vm2 = vcmp.lt.s32.totalorder %v9372_v36, 8  ;;  %vm9437_vm14 = vcmp.ge.s32.totalorder %v9372_v36, 0  ;;  %v1367_v22 = vmul.f32 %v7274_v63, %v1354_v58 }
 0x24d   : > { %v896_v45 = vsel %vm7232_vm4, %v839_v11, 0.0  ;;  %vm7312_vm10 = vmand %vm9437_vm14, %vm9436_vm2  ;;  %v815_v39 = vadd.f32 %v807_v30, %v730_v54  ;;  %v816_v52 = vadd.f32 %v9440_v4, %v731_v6  ;;  %vm9441_vm11 = vcmp.ge.s32.totalorder %v9373_v49, 0 }
 0x24e   : > { %v909_v42 = vmul.f32 %v6695_v34, %v896_v45  ;;  %vm7323_vm13 = vmand %vm7312_vm10, %vm9441_vm11  ;;  %vm9444_vm4 = vcmp.lt.s32.totalorder %v9390_v32, 8  ;;  %vm9445_vm5 = vnez %v9333_v47  ;;  %v7336_v58 = vmul.f32 %v6695_v34, %v903_v15 }
 0x24f   : > { %vm7331_vm8 = vmand %vm9445_vm5, %vm9444_vm4  ;;  %v994_v54 = vmul.f32 %v6700_v10, %v981_v14  ;;  %v7340_v30 = vmul.f32 %v6700_v10, %v988_v27  ;;  %v7346_v6 = vadd.f32 %v7298_v24, %v1367_v22  ;;  %v918_v45 = vadd.f32 %v6926_v16, %v816_v52  ;;  %v9454_v22 = vld [vmem:[#allocation46_spill] sm:$0xff] }
 0x250   : > { %v917_v40 = vadd.f32 %v909_v42, %v815_v39  ;;  %v1109_v4 = vsel %vm7263_vm1, %v832_v26, 0.0  ;;  %vm9448_vm0 = vcmp.lt.s32.totalorder %v9357_v28, 8  ;;  %vm9451_vm2 = vcmp.ge.s32.totalorder %v6279_v51, 0 }
 0x251   : > { %vm7355_vm9 = vmand %vm7312_vm10, %vm9448_vm0  ;;  %v1110_v16 = vsel %vm7291_vm6, %v839_v11, 0.0  ;;  %v7370_v29 = vmul.f32 %v6731_v23, %v1109_v4  ;;  %v1202_v14 = vsel %vm7323_vm13, %v621_v56, 0.0  ;;  %v1203_v27 = vsel %vm7170_vm3, %v628_v1, 0.0 }
 0x252   : > { %vm7363_vm14 = vmand %vm6971_vm12, %vm9451_vm2  ;;  %vm1144_vm1 = vcmp.ge.s32.totalorder %v9454_v22, 0  ;;  %vm1152_vm11 = vcmp.lt.s32.totalorder %v9454_v22, 8  ;;  %v1002_v51 = vadd.f32 %v994_v54, %v917_v40  ;;  %v1003_v13 = vadd.f32 %v6910_v59, %v918_v45 }
 0x253   : > { %v7380_v39 = vmul.f32 %v6731_v23, %v1110_v16  ;;  %v7383_v55 = vmul.f32 %v6813_v61, %v1202_v14  ;;  %vm9455_vm12 = vcmp.lt.s32.totalorder %v9410_v37, 8  ;;  %vm9456_vm6 = vcmp.ge.s32.totalorder %v9410_v37, 0 }
 0x254   : > { %vm7389_vm13 = vmand %vm9456_vm6, %vm9455_vm12  ;;  %v7394_v56 = vmul.f32 %v6813_v61, %v1203_v27  ;;  %v1263_v59 = vsel %vm7312_vm10, %v7179_v48, 0.0  ;;  %v1323_v1 = vsel %vm7331_vm8, %v832_v26, 0.0  ;;  %v1324_v52 = vsel %vm7355_vm9, %v839_v11, 0.0  ;;  %v9467_v26 = vld [vmem:[#allocation51_spill] sm:$0xff] }
 0x255   : > { %vm9459_vm3 = vcmp.lt.s32.totalorder %v9414_v35, 8  ;;  %vm9460_vm4 = vcmp.ge.s32.totalorder %v9414_v35, 0  ;;  %vm9463_vm2 = vcmp.lt.s32.totalorder %v9390_v32, 8  ;;  %vm9464_vm12 = vnez %v9340_v60  ;;  %v9494_v60 = vld [vmem:[#allocation48_spill] sm:$0xff] }
 0x256   : > { %vm7407_vm0 = vmand %vm9460_vm4, %vm9459_vm3  ;;  %v1063_v5 = vadd.f32 %v9467_v26, %v1002_v51  ;;  %v1064_v11 = vadd.f32 %v6930_v2, %v1003_v13  ;;  %v7422_v42 = vmul.f32 %v9328_v17, %v1263_v59  ;;  %v7425_v7 = vmul.f32 %v6840_v44, %v1323_v1  ;;  %v9489_v26 = vld [vmem:[#allocation28_spill] sm:$0xff] }
 0x257   : > { %vm7415_vm6 = vmand %vm9464_vm12, %vm9463_vm2  ;;  %v7428_v36 = vmul.f32 %v6840_v44, %v1324_v52  ;;  %v617_v54 = vrot.slane %v7190_v50, 7  ;;  %vm9468_vm10 = vcmp.ge.s32.totalorder %v9373_v49, 0  ;;  %v800_v2 = vsel %vm7389_vm13, %v7190_v50, 0.0 }
 0x258   : > { %vm7435_vm8 = vmand %vm7389_vm13, %vm9468_vm10  ;;  %v828_v40 = vrot.slane %v7190_v50, 1  ;;  %v1124_v45 = vadd.f32 %v6949_v25, %v1063_v5  ;;  %v1125_v4 = vadd.f32 %v6952_v0, %v1064_v11  ;;  %v813_v15 = vmul.f32 %v6482_v62, %v800_v2  ;;  %v9493_v11 = vld [vmem:[#allocation45_spill] sm:$0xff] }
 0x259   : > { %vm9471_vm9 = vcmp.lt.s32.totalorder %v9357_v28, 8  ;;  %v1047_v14 = vsel %vm7407_vm0, %v7190_v50, 0.0  ;;  %vm9474_vm4 = vmmov %vm9468_vm10  ;;  %v9477_v62 = vrot.slane %v7012_v20, 7  ;;  %vm9478_vm12 = vcmp.lt.s32.totalorder %v6185_v8, 1 }
 0x25a   : > { %vm7450_vm3 = vmand %vm7389_vm13, %vm9471_vm9  ;;  %v9479_v28 = vrot.slane %v7015_v31, 7  ;;  %v9481_v51 = vrot.slane %v7012_v20, 1  ;;  %vm9482_vm10 = vcmp.lt.s32.totalorder %v6185_v8, 7  ;;  %v9483_v12 = vrot.slane %v7015_v31, 1 }
 0x25b   : > { %vm7461_vm2 = vmand %vm6983_vm15, %vm9474_vm4  ;;  %v622_v0 = vsel %vm9478_vm12, %v617_v54, %v9477_v62  ;;  %v1217_v43 = vadd.f32 %v6961_v33, %v1124_v45  ;;  %v1218_v59 = vadd.f32 %v6994_v53, %v1125_v4  ;;  %vm9485_vm9 = vcmp.ge.s32.totalorder %v6416_v38, 0  ;;  %v9495_v45 = vld [vmem:[#allocation39_spill] sm:$0xff] }
 0x25c   : > { %vm9480_vm13 = vmmov %vm9478_vm12  ;;  %v7477_v49 = vsel %vm9482_vm10, %v828_v40, %v9481_v51  ;;  %v724_v52 = vsel %vm7363_vm14, %v622_v0, 0.0  ;;  %vm9488_vm14 = vcmp.lt.s32.totalorder %v6371_v41, 8  ;;  %v987_v62 = vsel %vm7461_vm2, %v622_v0, 0.0  ;;  %v9499_v51 = vld [vmem:[#allocation57_spill] sm:$0xff] }
 0x25d   : > { %v623_v27 = vsel %vm9480_vm13, %v9479_v28, %v617_v54  ;;  %vm9484_vm15 = vmmov %vm9482_vm10  ;;  %v737_v33 = vmul.f32 %v6657_v3, %v724_v52  ;;  %v902_v19 = vsel %vm7450_vm3, %v7477_v49, 0.0  ;;  %v1278_v54 = vadd.f32 %v9493_v11, %v1217_v43  ;;  %v9501_v43 = vld [vmem:[#allocation50_spill] sm:$0xff] }
 0x25e   : > { %v834_v13 = vsel %vm9484_vm15, %v9483_v12, %v828_v40  ;;  %v723_v1 = vsel %vm7435_vm8, %v623_v27, 0.0  ;;  %vm7493_vm4 = vmand %vm7407_vm0, %vm9485_vm9  ;;  %vm9490_vm8 = vnez %v9489_v26  ;;  %v1279_v2 = vadd.f32 %v9494_v60, %v1218_v59  ;;  %v9511_v26 = vld [vmem:[#allocation22_spill] sm:$0xff] }
 0x25f   : > { %v736_v31 = vmul.f32 %v6657_v3, %v723_v1  ;;  %v901_v53 = vsel %vm7415_vm6, %v834_v13, 0.0  ;;  %vm7508_vm12 = vmand %vm9490_vm8, %vm9488_vm14  ;;  %v915_v48 = vmul.f32 %v6695_v34, %v902_v19  ;;  %v822_v4 = vadd.f32 %v9495_v45, %v737_v33 }
 0x260   : > { %v914_v3 = vmul.f32 %v6695_v34, %v901_v53  ;;  %v986_v16 = vsel %vm7493_vm4, %v623_v27, 0.0  ;;  %vm9496_vm6 = vcmp.lt.s32.totalorder %v9390_v32, 8  ;;  %v1339_v12 = vadd.f32 %v9499_v51, %v1278_v54  ;;  %v9500_v34 = vld [vmem:[#allocation56_spill] sm:$0xff]  ;;  %vm7537_vm2 = vmand %vm1144_vm1, %vm1152_vm11 }
 0x261   : > { %v821_v40 = vadd.f32 %v813_v15, %v736_v31  ;;  %vm7525_vm3 = vmand %vm7407_vm0, %vm9496_vm6  ;;  %v1340_v15 = vadd.f32 %v9500_v34, %v1279_v2  ;;  %v999_v1 = vmul.f32 %v6700_v10, %v986_v16  ;;  %v924_v25 = vadd.f32 %v7336_v58, %v822_v4  ;;  %v9504_v31 = vld [vmem:[#allocation32_spill] sm:$0xff] }
 0x262   : > { %v922_v59 = vadd.f32 %v914_v3, %v9501_v43  ;;  %v1000_v52 = vmul.f32 %v6700_v10, %v987_v62  ;;  %v1060_v20 = vmul.f32 %v6510_v57, %v1047_v14  ;;  %vm9505_vm0 = vcmp.ge.s32.totalorder %v9504_v31, 0  ;;  %vm9508_vm1 = vmmov %vm9485_vm9  ;;  %v9516_v3 = vld [vmem:[#allocation40_spill] sm:$0xff]  ;;  %v9518_v43 = vld [vmem:[#allocation58_spill] sm:$0xff] }
 0x263   : > { %v923_v37 = vadd.f32 %v915_v48, %v821_v40  ;;  %vm7548_vm13 = vmand %vm7537_vm2, %vm9505_vm0  ;;  %v1352_v10 = vadd.f32 %v7225_v46, %v1339_v12  ;;  %v1353_v57 = vadd.f32 %v7225_v46, %v1340_v15  ;;  %v1107_v14 = vsel %vm7508_vm12, %v834_v13, 0.0 }
 0x264   : > { %vm7556_vm11 = vmand %vm9445_vm5, %vm9508_vm1  ;;  %v1007_v58 = vadd.f32 %v999_v1, %v922_v59  ;;  %v1009_v19 = vadd.f32 %v7340_v30, %v924_v25  ;;  %v1108_v38 = vsel %vm7525_vm3, %v7477_v49, 0.0  ;;  %v1120_v47 = vmul.f32 %v6731_v23, %v1107_v14  ;;  %v9519_v1 = vld [vmem:[#allocation52_spill] sm:$0xff] }
 0x265   : > { %v1008_v53 = vadd.f32 %v1000_v52, %v923_v37  ;;  %vm9512_vm5 = vcmp.lt.s32.totalorder %v9511_v26, 8  ;;  %v1365_v5 = vmul.f32 %v7274_v63, %v1352_v10  ;;  %v1121_v2 = vmul.f32 %v6731_v23, %v1108_v38 }
 0x266   : > { %vm7573_vm10 = vmand %vm7050_vm7, %vm9512_vm5  ;;  %v1068_v60 = vadd.f32 %v1060_v20, %v1007_v58  ;;  %v1200_v30 = vsel %vm7548_vm13, %v623_v27, 0.0  ;;  %v1070_v40 = vadd.f32 %v7343_v9, %v1009_v19  ;;  %v1128_v45 = vadd.f32 %v1120_v47, %v7267_v21  ;;  %v9520_v20 = vld [vmem:[#allocation27_spill] sm:$0xff] }
 0x267   : > { %v1069_v48 = vadd.f32 %v9516_v3, %v1008_v53  ;;  %v1201_v4 = vsel %vm7556_vm11, %v622_v0, 0.0  ;;  %vm9517_vm7 = vmmov %vm9488_vm14  ;;  %v1213_v23 = vmul.f32 %v6813_v61, %v1200_v30  ;;  %v1261_v27 = vsel %vm7537_vm2, %v7190_v50, 0.0 }
 0x268   : > { %vm1298_vm15 = vmand %vm7537_vm2, %vm9517_vm7  ;;  %v1129_v16 = vadd.f32 %v1121_v2, %v1068_v60  ;;  %v1214_v62 = vmul.f32 %v6813_v61, %v1201_v4  ;;  %v1131_v21 = vadd.f32 %v7380_v39, %v1070_v40  ;;  %v1274_v0 = vmul.f32 %v9328_v17, %v1261_v27 }
 0x269   : > { %v1130_v9 = vadd.f32 %v7370_v29, %v1069_v48  ;;  %v1321_v41 = vsel %vm7573_vm10, %v834_v13, 0.0  ;;  %v1221_v28 = vadd.f32 %v1213_v23, %v1128_v45  ;;  %v1322_v12 = vsel %vm1298_vm15, %v7477_v49, 0.0 }
 0x26a   : > { %v1222_v51 = vadd.f32 %v1214_v62, %v1129_v16  ;;  %v1334_v34 = vmul.f32 %v6840_v44, %v1321_v41  ;;  %v1224_v15 = vadd.f32 %v7394_v56, %v1131_v21  ;;  %v1335_v50 = vmul.f32 %v6840_v44, %v1322_v12 }
 0x26b   : > { %v1223_v61 = vadd.f32 %v7383_v55, %v1130_v9  ;;  %v1366_v29 = vmul.f32 %v7274_v63, %v1353_v57  ;;  %v1282_v39 = vadd.f32 %v1274_v0, %v1221_v28  ;;  %v7609_v13 = vadd.f32 %v7298_v24, %v1365_v5 }
 0x26c   : > { %v1283_v17 = vadd.f32 %v9518_v43, %v1222_v51  ;;  %v1342_v59 = vadd.f32 %v1334_v34, %v7269_v18  ;;  %v1285_v32 = vadd.f32 %v9519_v1, %v1224_v15  ;;  %v1388_v44 = vmul.f32 %v7346_v6, %v7346_v6 }
 0x26d   : > { %v1284_v49 = vadd.f32 %v7422_v42, %v1223_v61  ;;  %v7614_v55 = vadd.f32 %v7298_v24, %v1366_v29  ;;  %v1343_v56 = vadd.f32 %v1335_v50, %v1282_v39  ;;  %v1386_v18 = vmul.f32 %v7609_v13, %v7609_v13 }
 0x26e   : > { %v1344_v37 = vadd.f32 %v7425_v7, %v1283_v17  ;;  %v1355_v25 = vadd.f32 %v7225_v46, %v1342_v59  ;;  %v1346_v42 = vadd.f32 %v9520_v20, %v1285_v32  ;;  %v1396_v33 = vmul.f32 %v1388_v44, %v7346_v6 }
 0x26f   : > { %v1345_v52 = vadd.f32 %v7428_v36, %v1284_v49  ;;  %v1387_v31 = vmul.f32 %v7614_v55, %v7614_v55  ;;  %v1356_v22 = vadd.f32 %v7225_v46, %v1343_v56  ;;  %v1394_v57 = vmul.f32 %v1386_v18, %v7609_v13 }
 0x270   : > { %v1357_v10 = vadd.f32 %v7225_v46, %v1344_v37  ;;  %v1368_v7 = vmul.f32 %v7274_v63, %v1355_v25  ;;  %v1359_v14 = vadd.f32 %v7225_v46, %v1346_v42  ;;  %v1404_v53 = vmul.f32 0.044715, %v1396_v33 }
 0x271   : > { %v1358_v58 = vadd.f32 %v7225_v46, %v1345_v52  ;;  %v1395_v36 = vmul.f32 %v1387_v31, %v7614_v55  ;;  %v1369_v19 = vmul.f32 %v7274_v63, %v1356_v22  ;;  %v1402_v26 = vmul.f32 0.044715, %v1394_v57 }
 0x272   : > { %v1370_v38 = vmul.f32 %v7274_v63, %v1357_v10  ;;  %v7637_v47 = vadd.f32 %v7298_v24, %v1368_v7  ;;  %v1372_v54 = vmul.f32 %v7274_v63, %v1359_v14  ;;  %v1412_v60 = vadd.f32 %v1404_v53, %v7346_v6 }
 0x273   : > { %v1371_v11 = vmul.f32 %v7274_v63, %v1358_v58  ;;  %v1403_v5 = vmul.f32 0.044715, %v1395_v36  ;;  %v7643_v46 = vadd.f32 %v7298_v24, %v1369_v19  ;;  %v1410_v3 = vadd.f32 %v1402_v26, %v7609_v13 }
 0x274   : > { %v7646_v2 = vadd.f32 %v7298_v24, %v1370_v38  ;;  %v1389_v30 = vmul.f32 %v7637_v47, %v7637_v47  ;;  %v7655_v40 = vadd.f32 %v7298_v24, %v1372_v54  ;;  %v1420_v45 = vmul.f32 0.7978846, %v1412_v60 }
 0x275   : > { %v7652_v48 = vadd.f32 %v7298_v24, %v1371_v11  ;;  %v1411_v63 = vadd.f32 %v1403_v5, %v7614_v55  ;;  %v1390_v4 = vmul.f32 %v7643_v46, %v7643_v46  ;;  %v1418_v62 = vmul.f32 0.7978846, %v1410_v3 }
 0x276   : > { %v1391_v16 = vmul.f32 %v7646_v2, %v7646_v2  ;;  %v1397_v23 = vmul.f32 %v1389_v30, %v7637_v47  ;;  %v1393_v9 = vmul.f32 %v7655_v40, %v7655_v40  ;;  %5666 = vtanh.f32 %v1420_v45 }
 0x277   : > { %v1392_v27 = vmul.f32 %v7652_v48, %v7652_v48  ;;  %v1419_v24 = vmul.f32 0.7978846, %v1411_v63  ;;  %v1398_v21 = vmul.f32 %v1390_v4, %v7643_v46  ;;  %5668 = vtanh.f32 %v1418_v62 }
 0x278   : > { %v1399_v0 = vmul.f32 %v1391_v16, %v7646_v2  ;;  %v1405_v41 = vmul.f32 0.044715, %v1397_v23  ;;  %v1401_v51 = vmul.f32 %v1393_v9, %v7655_v40  ;;  %vm1458_vm9 = vcmask 523264  }
 0x279   : > { %v1400_v28 = vmul.f32 %v1392_v27, %v7652_v48  ;;  %5670 = vtanh.f32 %v1419_v24  ;;  %v1406_v12 = vmul.f32 0.044715, %v1398_v21  ;;  %vm1576_vm4 = vcmask 130048  }
 0x27a   : > { %v1407_v34 = vmul.f32 0.044715, %v1399_v0  ;;  %v1413_v61 = vadd.f32 %v1405_v41, %v7637_v47  ;;  %v1409_v50 = vmul.f32 0.044715, %v1401_v51  ;;  %vm9524_vm14 = vcmask 261120  }
 0x27b   : > { %v1408_v15 = vmul.f32 0.044715, %v1400_v28  ;;  %v1414_v29 = vadd.f32 %v1406_v12, %v7643_v46  ;;  %vm9526_vm8 = vmmov %vm9524_vm14 }
 0x27c   : > { %v1415_v39 = vadd.f32 %v1407_v34, %v7646_v2  ;;  %v1421_v43 = vmul.f32 0.7978846, %v1413_v61  ;;  %v1417_v59 = vadd.f32 %v1409_v50, %v7655_v40  ;;  %vm9527_vm12 = vmmov %vm9526_vm8 }
 0x27d   : > { %v1416_v17 = vadd.f32 %v1408_v15, %v7652_v48  ;;  %v1422_v49 = vmul.f32 0.7978846, %v1414_v29  ;;  %vm9528_vm6 = vmmov %vm9526_vm8 }
 0x27e   : > { %v1423_v1 = vmul.f32 0.7978846, %v1415_v39  ;;  %5672 = vtanh.f32 %v1421_v43  ;;  %v1425_v44 = vmul.f32 0.7978846, %v1417_v59  ;;  %v5607_v43 = vld [vmem:[%s9060_s1 + $0x40] sm:$0xff]   ;;  %vm9532_vm3 = vmmov %vm9528_vm6 }
 0x27f   : > { %v1424_v32 = vmul.f32 0.7978846, %v1416_v17  ;;  %5674 = vtanh.f32 %v1422_v49  ;;  %5234 = vmatpush3.bf16.msra.mxu1 %v5607_v43  ;;  %v1491_v17 = vld [vmem:[%s9061_s2 + $0x12] sm:$0x1]  ;;  %vm9534_vm2 = vmmov %vm9532_vm3 }
 0x280   : > { %v5667_v56 = vpop.eup %5666  ;;  %5676 = vtanh.f32 %v1423_v1  ;;  %vm9535_vm0 = vmmov %vm9534_vm2 }
 0x281   : > { %v5669_v37 = vpop.eup %5668  ;;  %5678 = vtanh.f32 %v1424_v32  ;;  %v1436_v25 = vadd.f32 1.0, %v5667_v56  ;;  %vm9536_vm13 = vmmov %vm9535_vm0 }
 0x282   : > { %5680 = vtanh.f32 %v1425_v44  ;;  %v1434_v52 = vadd.f32 1.0, %v5669_v37  ;;  %vm9537_vm1 = vmmov %vm9535_vm0 }
 0x283   : > { %v5671_v18 = vpop.eup %5670  ;;  %v1444_v42 = vmul.f32 0.5, %v1436_v25  ;;  %vm9538_vm11 = vmmov %vm9535_vm0 }
 0x284   : > { %v1435_v20 = vadd.f32 1.0, %v5671_v18  ;;  %v1442_v31 = vmul.f32 0.5, %v1434_v52  ;;  %vm9539_vm5 = vmmov %vm9535_vm0 }
 0x285   : > { %v7683_v57 = vmul.f32 %v1444_v42, %v7346_v6  ;;  %v5608_v42 = vld [vmem:[%s9060_s1 + $0x48] sm:$0xff]   ;;  %vm9540_vm10 = vmmov %vm9535_vm0 }
 0x286   : > { %v1443_v33 = vmul.f32 0.5, %v1435_v20  ;;  %v7677_v22 = vmul.f32 %v1442_v31, %v7609_v13  ;;  %v5609_v31 = vld [vmem:[%s9060_s1 + $0x50] sm:$0xff]   ;;  %5239 = vmatprep.subr.bf16.mxu0 %v5608_v42  ;;  %vm9541_vm7 = vmmov %vm9535_vm0 }
 0x287   : > { %vm9542_vm15 = vmmov %vm9535_vm0 }
 0x288   : > { %v5673_v10 = vpop.eup %5672  ;;  %v7680_v7 = vmul.f32 %v1443_v33, %v7614_v55  ;;  %v1459_v14 = vsel %vm1458_vm9, %v7677_v22, 0.0  ;;  %v1462_v55 = vsel %vm1458_vm9, %v7683_v57, 0.0  ;;  %v5610_v33 = vld [vmem:[%s9060_s1 + $0x58] sm:$0xff]  }
 0x289   : > { %v1437_v58 = vadd.f32 1.0, %v5673_v10  ;;  %v5675_v36 = vpop.eup %5674  ;;  %v5611_v10 = vld [vmem:[%s9060_s1 + $0x60] sm:$0xff]  }
 0x28a   : > { %v1460_v53 = vsel %vm1458_vm9, %v7680_v7, 0.0  ;;  %v5677_v19 = vpop.eup %5676  ;;  %v1438_v38 = vadd.f32 1.0, %v5675_v36 }
 0x28b   : > { %v1445_v13 = vmul.f32 0.5, %v1437_v58  ;;  %v1461_v26 = vadd.f32 %v1460_v53, %v1459_v14  ;;  %v5679_v11 = vpop.eup %5678  ;;  %v1439_v54 = vadd.f32 1.0, %v5677_v19  ;;  %v1569_v58 = vld [vmem:[%s9061_s2 + $0x13] sm:$0x1] }
 0x28c   : > { %v5681_v6 = vpop.eup %5680  ;;  %v1440_v5 = vadd.f32 1.0, %v5679_v11  ;;  %v1446_v60 = vmul.f32 0.5, %v1438_v38 }
 0x28d   : > { %v7692_v30 = vmul.f32 %v1445_v13, %v7637_v47  ;;  %v1463_v3 = vadd.f32 %v1462_v55, %v1461_v26  ;;  %v1441_v63 = vadd.f32 1.0, %v5681_v6  ;;  %v1447_v45 = vmul.f32 0.5, %v1439_v54 }
 0x28e   : > { %v1448_v4 = vmul.f32 0.5, %v1440_v5  ;;  %v7695_v16 = vmul.f32 %v1446_v60, %v7643_v46  ;;  %v1628_v54 = vsub.s32 0, %v6185_v8 }
 0x28f   : > { %v1464_v23 = vsel %vm1458_vm9, %v7692_v30, 0.0  ;;  %v1449_v62 = vmul.f32 0.5, %v1441_v63  ;;  %v7700_v27 = vmul.f32 %v1447_v45, %v7646_v2 }
 0x290   : > { %v1465_v9 = vadd.f32 %v1464_v23, %v1463_v3  ;;  %v7703_v24 = vmul.f32 %v1448_v4, %v7652_v48  ;;  %v1466_v47 = vsel %vm1458_vm9, %v7695_v16, 0.0 }
 0x291   : > { %v7708_v0 = vmul.f32 %v1449_v62, %v7655_v40  ;;  %v1468_v46 = vsel %vm1458_vm9, %v7700_v27, 0.0 }
 0x292   : > { %v1467_v21 = vadd.f32 %v1466_v47, %v1465_v9  ;;  %v1470_v28 = vsel %vm1458_vm9, %v7703_v24, 0.0 }
 0x293   : > { %v1472_v51 = vsel %vm1458_vm9, %v7708_v0, 0.0 }
 0x294   : > { %v1469_v41 = vadd.f32 %v1468_v46, %v1467_v21  ;;  %v9521_v46 = vld [vmem:[#allocation5_spill] sm:$0xff] }
 0x296   : > { %v1471_v2 = vadd.f32 %v1470_v28, %v1469_v41 }
 0x298   : > { %v1473_v48 = vadd.f32 %v1472_v51, %v1471_v2 }
 0x29a   : > { %v1474_v12 = vrot.slane %v1473_v48, 4 }
 0x29c   : > { %v1475_v34 = vadd.f32 %v1474_v12, %v1473_v48  ;;  %v9523_v48 = vld [vmem:[#allocation7_spill] sm:$0xff] }
 0x29e   : > { %v1476_v61 = vrot.slane %v1475_v34, 2 }
 0x2a0   : > { %v1477_v15 = vadd.f32 %v1476_v61, %v1475_v34  ;;  %v9525_v61 = vld [vmem:[#allocation8_spill] sm:$0xff] }
 0x2a2   : > { %v1478_v50 = vrot.slane %v1477_v15, 1 }
 0x2a4   : > { %v1479_v29 = vadd.f32 %v1478_v50, %v1477_v15 }
 0x2a6   : > { %v1481_v40 = vmul.f32 0.015625, %v1479_v29 }
 0x2a8   : > { %v1490_v39 = vpack.c.bf16 %v1481_v40, %v1481_v40 }
 0x2aa   : > { %5230 = vmatmul.mubr.msk.bf16.vlgmr.msra.gmra.mrb[8].mxu0 %vm1458_vm9, %v1490_v39 }
 0x2ab   : > { %5240 = vmatpush3.bf16.msra.mxu0 %v5608_v42 }
 0x2ac   : > { %5241 = vmatprep.subr.bf16.mxu0 %v5609_v31 }
 0x2af   : > { %5242 = vmatpush3.bf16.msra.mxu0 %v5609_v31  ;;  %v9533_v31 = vld [vmem:[#allocation11_spill] sm:$0xff] }
 0x2b0   : > { %5243 = vmatprep.subr.bf16.mxu0 %v5610_v33 }
 0x2b3   : > { %5244 = vmatpush3.bf16.msra.mxu0 %v5610_v33 }
 0x2b4   : > { %5245 = vmatprep.subr.bf16.mxu0 %v5611_v10 }
 0x2b7   : > { %5246 = vmatpush3.bf16.msra.mxu0 %v5611_v10 }
 0x37d   : > { %v1553_v59 = vpop.f32.mrb[8].mxu0 }
 0x37e   : > { %v1554_v49 = vadd.f32 %v1553_v59, %v1491_v17  ;;  %v5231_v1 = vpop.f32.mrb[9].mxu0 }
 0x37f   : > { %v1556_v32 = vpop.f32.mrb[10].mxu0 }
 0x380   : > { %v4932_v44 = vmul.f32 -1.442695, %v1554_v49  ;;  %v5232_v56 = vpop.f32.mrb[11].mxu0  ;;  %v9529_v32 = vld [vmem:[#allocation10_spill] sm:$0xff] }
 0x382   : > { %5682 = vpow2.f32 %v4932_v44 }
 0x38c   : > { %v5683_v37 = vpop.eup %5682 }
 0x38d   : > { %v1562_v25 = vadd.f32 1.0, %v5683_v37 }
 0x38f   : > { %5684 = vrcp.f32 %v1562_v25  ;;  %v9530_v25 = vld [vmem:[#allocation9_spill] sm:$0xff] }
 0x399   : > { %v5685_v18 = vpop.eup %5684 }
 0x39a   : > { %v1565_v52 = vmul.f32 %v5685_v18, %v1554_v49 }
 0x39c   : > { %v1568_v20 = vpack.c.bf16 %v1565_v52, %v1565_v52  ;;  %v9531_v52 = vld [vmem:[#allocation12_spill] sm:$0xff] }
 0x39e   : > { %5236 = vmatmul.mubr.msk.bf16.vlgmr.msra.gmra.mrb[8].mxu1 %vm1576_vm4, %v1568_v20 }
 0x471   : > { %v1614_v14 = vpop.f32.mrb[8].mxu1 }
 0x472   : > { %v1615_v36 = vadd.f32 %v1614_v14, %v1569_v58  ;;  %v5237_v53 = vpop.f32.mrb[9].mxu1 }
 0x473   : > { %v1617_v19 = vpop.f32.mrb[10].mxu1 }
 0x474   : > { %v4935_v38 = vmul.f32 -1.442695, %v1615_v36  ;;  %v5238_v13 = vpop.f32.mrb[11].mxu1 }
 0x476   : > { %5686 = vpow2.f32 %v4935_v38 }
 0x480   : > { %v5687_v26 = vpop.eup %5686 }
 0x481   : > { %v1623_v11 = vadd.f32 1.0, %v5687_v26 }
 0x483   : > { %5688 = vrcp.f32 %v1623_v11 }
 0x48d   : > { %v5689_v55 = vpop.eup %5688 }
 0x48e   : > { %v1629_v6 = vrot.slane %v5689_v55, %v1628_v54 }
 0x490   : > { %v1630_v5 = vmul.f32 %v1629_v6, %v7677_v22  ;;  %v1631_v60 = vmul.f32 %v1629_v6, %v7680_v7  ;;  %v1632_v3 = vmul.f32 %v1629_v6, %v7683_v57  ;;  %v1633_v63 = vmul.f32 %v1629_v6, %v7692_v30  ;;  %v4936_v57 = vld [vmem:[%s9061_s2 + $0x14] ss:$0 sm:$0xff] }
 0x491   : > { %v1634_v45 = vmul.f32 %v1629_v6, %v7695_v16  ;;  %v1635_v4 = vmul.f32 %v1629_v6, %v7700_v27  ;;  %v1636_v8 = vmul.f32 %v1629_v6, %v7703_v24  ;;  %v1637_v22 = vmul.f32 %v1629_v6, %v7708_v0  ;;  %v9522_v24 = vld [vmem:[#allocation6_spill] sm:$0xff] }
 0x492   : > { %v1646_v23 = vpack.c.bf16 %v1631_v60, %v1630_v5  ;;  %v1647_v62 = vpack.c.bf16 %v1633_v63, %v1632_v3 }
 0x493   : > { %v1648_v9 = vpack.c.bf16 %v1635_v4, %v1634_v45  ;;  %v1649_v7 = vpack.c.bf16 %v1637_v22, %v1636_v8 }
 0x494   : > { %5247 = vmatprep.mubr.msk.bf16.mxu0 %vm1458_vm9, %v1646_v23 }
 0x495   : > { %5248 = vmatmul.mubr.msk.bf16.vlgmr.msra.gmra.mrb[12].mxu0 %vm1458_vm9, %v1647_v62 }
 0x496   : > { %5251 = vmatprep.mubr.msk.bf16.mxu0 %vm1458_vm9, %v1648_v9 }
 0x49d   : > { %5252 = vmatmul.mubr.msk.bf16.gmra.mrb[16].mxu0 %vm1458_vm9, %v1649_v7 }
 0x568   : > { %v5249_v30 = vpop.f32.mrb[12].mxu0 }
 0x569   : > { %v1734_v16 = vadd.f32 %v5249_v30, %v4936_v57  ;;  %v1725_v27 = vpop.f32.mrb[13].mxu0 }
 0x56a   : > { %v1726_v47 = vadd.f32 %v4936_v57, %v1725_v27  ;;  %v5250_v21 = vpop.f32.mrb[14].mxu0 }
 0x56b   : > { %v7756_v41 = vadd.f32 %v1734_v16, %v9521_v46  ;;  %v1737_v28 = vadd.f32 %v5250_v21, %v4936_v57  ;;  %v1728_v2 = vpop.f32.mrb[15].mxu0 }
 0x56c   : > { %v7759_v51 = vadd.f32 %v1726_v47, %v9522_v24  ;;  %v1729_v0 = vadd.f32 %v4936_v57, %v1728_v2 }
 0x56d   : > { %v7762_v12 = vadd.f32 %v1737_v28, %v9523_v48  ;;  %v1820_v34 = vsel %vm9524_vm14, %v7756_v41, 0.0  ;;  %vm9543_vm14 = vmmov %vm9535_vm0 }
 0x56e   : > { %v7767_v15 = vadd.f32 %v1729_v0, %v9525_v61  ;;  %1821 = vadd.xlane.f32.xlu1 %v1820_v34  ;;  %v1814_v50 = vsel %vm9526_vm8, %v7759_v51, 0.0  ;;  %vm9544_vm8 = vmmov %vm9535_vm0 }
 0x56f   : > { %1815 = vadd.xlane.f32.xlu0 %v1814_v50  ;;  %v1823_v39 = vsel %vm9527_vm12, %v7762_v12, 0.0  ;;  %vm9545_vm12 = vmmov %vm9535_vm0 }
 0x570   : > { %v5253_v29 = vpop.f32.mrb[16].mxu0  ;;  %v1817_v49 = vsel %vm9528_vm6, %v7767_v15, 0.0  ;;  %vm9546_vm6 = vmmov %vm9535_vm0 }
 0x571   : > { %v1741_v40 = vpop.f32.mrb[17].mxu0  ;;  %v1750_v43 = vadd.f32 %v5253_v29, %v4936_v57 }
 0x572   : > { %v1742_v17 = vadd.f32 %v4936_v57, %v1741_v40  ;;  %1824 = vadd.xlane.f32.xlu1 %v1823_v39  ;;  %v5254_v59 = vpop.f32.mrb[18].mxu0 }
 0x573   : > { %v1744_v1 = vpop.f32.mrb[19].mxu0  ;;  %1818 = vadd.xlane.f32.xlu0 %v1817_v49  ;;  %v1753_v56 = vadd.f32 %v5254_v59, %v4936_v57  ;;  %v7779_v18 = vadd.f32 %v1750_v43, %v9530_v25  ;;  %v5612_v43 = vld [vmem:[%s9060_s1 + $0x68] sm:$0xff]  }
 0x574   : > { %v7776_v44 = vadd.f32 %v1742_v17, %v9529_v32  ;;  %v1745_v37 = vadd.f32 %v4936_v57, %v1744_v1  ;;  %v5613_v17 = vld [vmem:[%s9060_s1 + $0x70] sm:$0xff]   ;;  %5255 = vmatprep.subr.bf16.mxu1 %v5612_v43 }
 0x575   : > { %v7787_v33 = vadd.f32 %v1753_v56, %v9533_v31  ;;  %v1832_v58 = vsel %vm9535_vm0, %v7779_v18, 0.0  ;;  %5256 = vmatpush3.bf16.msra.mxu1 %v5612_v43 }
 0x576   : > { %v7782_v20 = vadd.f32 %v1745_v37, %v9531_v52  ;;  %v1826_v42 = vsel %vm9532_vm3, %v7776_v44, 0.0  ;;  %5257 = vmatprep.subr.bf16.mxu1 %v5613_v17  ;;  %vm9547_vm3 = vmmov %vm9535_vm0 }
 0x577   : > { %1827 = vadd.xlane.f32.xlu0 %v1826_v42  ;;  %v1835_v14 = vsel %vm9536_vm13, %v7787_v33, 0.0 }
 0x578   : > { %v1829_v10 = vsel %vm9534_vm2, %v7782_v20, 0.0  ;;  %vm9548_vm2 = vmmov %vm9535_vm0 }
 0x579   : > { %1830 = vadd.xlane.f32.xlu1 %v1829_v10  ;;  %5258 = vmatpush3.bf16.msra.mxu1 %v5613_v17 }
 0x57b   : > { %1833 = vadd.xlane.f32.xlu0 %v1832_v58 }
 0x57d   : > { %1836 = vadd.xlane.f32.xlu1 %v1835_v14 }
 0x5fb   : > { %v1822_v36 = vpop.xlane.xlu1 %1821 }
 0x5fc   : > { %v1841_v53 = vmul.f32 0.03125, %v1822_v36  ;;  %v1816_v19 = vpop.xlane.xlu0 %1815 }
 0x5fd   : > { %v1839_v38 = vmul.f32 0.03125, %v1816_v19 }
 0x5fe   : > { %v7796_v13 = vsub.f32 %v7756_v41, %v1841_v53 }
 0x5ff   : > { %v7799_v26 = vsub.f32 %v7759_v51, %v1839_v38  ;;  %v1825_v11 = vpop.xlane.xlu1 %1824 }
 0x600   : > { %v1842_v54 = vmul.f32 0.03125, %v1825_v11  ;;  %v1819_v55 = vpop.xlane.xlu0 %1818  ;;  %v1857_v45 = vmul.f32 %v7796_v13, %v7796_v13 }
 0x601   : > { %v1840_v6 = vmul.f32 0.03125, %v1819_v55  ;;  %v1855_v5 = vmul.f32 %v7799_v26, %v7799_v26 }
 0x602   : > { %v7804_v60 = vsub.f32 %v7762_v12, %v1842_v54  ;;  %v1869_v57 = vsel %vm9538_vm11, %v1857_v45, 0.0 }
 0x603   : > { %v7807_v3 = vsub.f32 %v7767_v15, %v1840_v6  ;;  %v1863_v63 = vsel %vm9537_vm1, %v1855_v5, 0.0 }
 0x604   : > { %1864 = vadd.xlane.f32.xlu0 %v1863_v63  ;;  %v1828_v4 = vpop.xlane.xlu0 %1827  ;;  %v1858_v8 = vmul.f32 %v7804_v60, %v7804_v60 }
 0x605   : > { %v1843_v23 = vmul.f32 0.03125, %v1828_v4  ;;  %v1856_v62 = vmul.f32 %v7807_v3, %v7807_v3  ;;  %v4945_v4 = vld [vmem:[%s9061_s2 + $0x15] ss:$0 sm:$0xff] }
 0x606   : > { %v1831_v9 = vpop.xlane.xlu1 %1830  ;;  %v1872_v28 = vsel %vm9540_vm10, %v1858_v8, 0.0 }
 0x607   : > { %v7817_v22 = vsub.f32 %v7776_v44, %v1843_v23  ;;  %v1844_v7 = vmul.f32 0.03125, %v1831_v9  ;;  %v1866_v30 = vsel %vm9539_vm5, %v1856_v62, 0.0 }
 0x608   : > { %1870 = vadd.xlane.f32.xlu0 %v1869_v57  ;;  %1867 = vadd.xlane.f32.xlu1 %v1866_v30  ;;  %v1834_v16 = vpop.xlane.xlu0 %1833 }
 0x609   : > { %v7822_v27 = vsub.f32 %v7782_v20, %v1844_v7  ;;  %v1845_v47 = vmul.f32 0.03125, %v1834_v16  ;;  %v1859_v21 = vmul.f32 %v7817_v22, %v7817_v22 }
 0x60a   : > { %v1837_v46 = vpop.xlane.xlu1 %1836 }
 0x60b   : > { %v7828_v2 = vsub.f32 %v7779_v18, %v1845_v47  ;;  %v1846_v24 = vmul.f32 0.03125, %v1837_v46  ;;  %v1875_v0 = vsel %vm9541_vm7, %v1859_v21, 0.0  ;;  %v1860_v48 = vmul.f32 %v7822_v27, %v7822_v27 }
 0x60c   : > { %1873 = vadd.xlane.f32.xlu1 %v1872_v28  ;;  %1876 = vadd.xlane.f32.xlu0 %v1875_v0 }
 0x60d   : > { %v7834_v34 = vsub.f32 %v7787_v33, %v1846_v24  ;;  %v1861_v61 = vmul.f32 %v7828_v2, %v7828_v2  ;;  %v1878_v50 = vsel %vm9542_vm15, %v1860_v48, 0.0 }
 0x60f   : > { %v1881_v29 = vsel %vm9543_vm14, %v1861_v61, 0.0  ;;  %v1862_v40 = vmul.f32 %v7834_v34, %v7834_v34  ;;  %vm9565_vm14 = vmmov %vm9548_vm2 }
 0x610   : > { %1879 = vadd.xlane.f32.xlu1 %v1878_v50  ;;  %1882 = vadd.xlane.f32.xlu0 %v1881_v29 }
 0x611   : > { %v1884_v39 = vsel %vm9544_vm8, %v1862_v40, 0.0  ;;  %vm9566_vm8 = vmmov %vm9548_vm2 }
 0x614   : > { %1885 = vadd.xlane.f32.xlu1 %v1884_v39 }
 0x691   : > { %v1865_v59 = vpop.xlane.xlu0 %1864 }
 0x692   : > { %v1887_v49 = vmul.f32 0.03125, %v1865_v59 }
 0x694   : > { %v1895_v1 = vadd.f32 1e-05, %v1887_v49 }
 0x695   : > { %v1868_v32 = vpop.xlane.xlu1 %1867  ;;  %v1871_v56 = vpop.xlane.xlu0 %1870 }
 0x696   : > { %5690 = vrsqrt.f32 %v1895_v1  ;;  %v1888_v37 = vmul.f32 0.03125, %v1868_v32  ;;  %v1889_v25 = vmul.f32 0.03125, %v1871_v56 }
 0x698   : > { %v1896_v52 = vadd.f32 1e-05, %v1888_v37  ;;  %v1897_v42 = vadd.f32 1e-05, %v1889_v25 }
 0x699   : > { %v1874_v31 = vpop.xlane.xlu1 %1873  ;;  %v1877_v10 = vpop.xlane.xlu0 %1876 }
 0x69a   : > { %5692 = vrsqrt.f32 %v1896_v52  ;;  %v1890_v58 = vmul.f32 0.03125, %v1874_v31  ;;  %v1891_v14 = vmul.f32 0.03125, %v1877_v10 }
 0x69b   : > { %5694 = vrsqrt.f32 %v1897_v42 }
 0x69c   : > { %v1898_v36 = vadd.f32 1e-05, %v1890_v58  ;;  %v1899_v53 = vadd.f32 1e-05, %v1891_v14 }
 0x69d   : > { %v1880_v19 = vpop.xlane.xlu1 %1879  ;;  %v1883_v38 = vpop.xlane.xlu0 %1882 }
 0x69e   : > { %5696 = vrsqrt.f32 %v1898_v36  ;;  %v1892_v11 = vmul.f32 0.03125, %v1880_v19  ;;  %v1893_v54 = vmul.f32 0.03125, %v1883_v38 }
 0x69f   : > { %5698 = vrsqrt.f32 %v1899_v53 }
 0x6a0   : > { %v5691_v55 = vpop.eup %5690  ;;  %v1900_v6 = vadd.f32 1e-05, %v1892_v11  ;;  %v1901_v5 = vadd.f32 1e-05, %v1893_v54 }
 0x6a1   : > { %v1886_v63 = vpop.xlane.xlu1 %1885  ;;  %v1911_v45 = vmul.f32 %v5691_v55, %v7799_v26  ;;  %v4946_v26 = vld [vmem:[%s9061_s2 + $0x16] ss:$0 sm:$0xff] }
 0x6a2   : > { %5700 = vrsqrt.f32 %v1900_v6  ;;  %v1894_v23 = vmul.f32 0.03125, %v1886_v63 }
 0x6a3   : > { %5702 = vrsqrt.f32 %v1901_v5  ;;  %v1923_v57 = vmul.f32 %v4945_v4, %v1911_v45 }
 0x6a4   : > { %v5693_v62 = vpop.eup %5692  ;;  %v1902_v9 = vadd.f32 1e-05, %v1894_v23 }
 0x6a5   : > { %v5695_v8 = vpop.eup %5694  ;;  %v1912_v7 = vmul.f32 %v5693_v62, %v7807_v3  ;;  %v1935_v24 = vadd.f32 %v4946_v26, %v1923_v57 }
 0x6a6   : > { %v1913_v30 = vmul.f32 %v5695_v8, %v7796_v13  ;;  %5704 = vrsqrt.f32 %v1902_v9 }
 0x6a7   : > { %v1924_v16 = vmul.f32 %v4945_v4, %v1912_v7 }
 0x6a8   : > { %v5697_v47 = vpop.eup %5696  ;;  %v1925_v46 = vmul.f32 %v4945_v4, %v1913_v30 }
 0x6a9   : > { %v5699_v21 = vpop.eup %5698  ;;  %v1914_v28 = vmul.f32 %v5697_v47, %v7804_v60  ;;  %v1936_v0 = vadd.f32 %v4946_v26, %v1924_v16 }
 0x6aa   : > { %v1915_v48 = vmul.f32 %v5699_v21, %v7817_v22  ;;  %v1937_v13 = vadd.f32 %v4946_v26, %v1925_v46 }
 0x6ab   : > { %v1926_v61 = vmul.f32 %v4945_v4, %v1914_v28  ;;  %v1947_v3 = vpack.c.bf16 %v1936_v0, %v1935_v24 }
 0x6ac   : > { %v5701_v50 = vpop.eup %5700  ;;  %v1927_v43 = vmul.f32 %v4945_v4, %v1915_v48 }
 0x6ad   : > { %v5703_v29 = vpop.eup %5702  ;;  %5259 = vmatprep.mubr.msk.bf16.mxu1 %vm9545_vm12, %v1947_v3  ;;  %v1938_v40 = vadd.f32 %v4946_v26, %v1926_v61  ;;  %v1916_v39 = vmul.f32 %v5701_v50, %v7822_v27  ;;  %vm9567_vm12 = vmmov %vm9548_vm2 }
 0x6ae   : > { %v1917_v17 = vmul.f32 %v5703_v29, %v7828_v2  ;;  %v1939_v1 = vadd.f32 %v4946_v26, %v1927_v43  ;;  %v4947_v2 = vld [vmem:[%s9061_s2 + $0x17] ss:$0 sm:$0xff]  ;;  %v9549_v43 = vlaneseq }
 0x6af   : > { %v1948_v59 = vpack.c.bf16 %v1938_v40, %v1937_v13  ;;  %v1928_v49 = vmul.f32 %v4945_v4, %v1916_v39 }
 0x6b0   : > { %v5705_v60 = vpop.eup %5704  ;;  %v1929_v56 = vmul.f32 %v4945_v4, %v1917_v17  ;;  %v7911_v17 = vand.u32 127, %v9549_v43 }
 0x6b1   : > { %5260 = vmatmul.mubr.msk.bf16.vlgmr.msra.gmra.mrb[12].mxu1 %vm9546_vm6, %v1948_v59  ;;  %v1940_v22 = vadd.f32 %v4946_v26, %v1928_v49  ;;  %v1918_v32 = vmul.f32 %v5705_v60, %v7834_v34  ;;  %v9550_v49 = vld [vmem:[#allocation18_spill] sm:$0xff]  ;;  %vm9568_vm6 = vmmov %vm9548_vm2 }
 0x6b2   : > { %v1941_v52 = vadd.f32 %v4946_v26, %v1929_v56  ;;  %v9152_v59 = vshra.s32 %v7911_v17, 3  ;;  %v1766_v60 = vshra.s32 %v9550_v49, 2 }
 0x6b3   : > { %v1949_v37 = vpack.c.bf16 %v1940_v22, %v1939_v1  ;;  %v1930_v25 = vmul.f32 %v4945_v4, %v1918_v32  ;;  %v9151_v1 = vand.u32 7, %v7911_v17  ;;  %v9551_v32 = vld [vmem:[#allocation23_spill] sm:$0xff] }
 0x6b4   : > { %v1800_v22 = vshra.s32 %v9152_v59, 2  ;;  %v1764_v56 = vshra.s32 %v9551_v32, 2 }
 0x6b5   : > { %5263 = vmatprep.mubr.msk.bf16.mxu1 %vm9547_vm3, %v1949_v37  ;;  %v1942_v42 = vadd.f32 %v4946_v26, %v1930_v25  ;;  %v9552_v37 = vld [vmem:[#allocation13_spill] sm:$0xff]  ;;  %vm9569_vm3 = vmmov %vm9548_vm2 }
 0x6b6   : > { %v1765_v25 = vshra.s32 %v9552_v37, 2 }
 0x6b7   : > { %v1950_v27 = vpack.c.bf16 %v1942_v42, %v1941_v52  ;;  %v9553_v52 = vld [vmem:[#allocation16_spill] sm:$0xff] }
 0x6b8   : > { %v1774_v42 = vshra.s32 %v9553_v52, 2 }
 0x6b9   : > { %5264 = vmatmul.mubr.msk.bf16.gmra.mrb[16].mxu1 %vm9548_vm2, %v1950_v27  ;;  %v1782_v27 = vmul.u32 2, %v1766_v60  ;;  %v9561_v60 = vld [vmem:[#allocation26_spill] sm:$0xff] }
 0x784   : > { %v5261_v31 = vpop.f32.mrb[12].mxu1 }
 0x785   : > { %v2023_v10 = vadd.f32 %v5261_v31, %v4947_v2  ;;  %v2014_v58 = vpop.f32.mrb[13].mxu1  ;;  %v1802_v31 = vmul.u32 2, %v1800_v22  ;;  %v1776_v22 = vshra.s32 %v9561_v60, 2 }
 0x786   : > { %v2015_v14 = vadd.f32 %v4947_v2, %v2014_v58  ;;  %v5262_v36 = vpop.f32.mrb[14].mxu1 }
 0x787   : > { %v2026_v34 = vadd.f32 %v5262_v36, %v4947_v2  ;;  %v2017_v53 = vpop.f32.mrb[15].mxu1  ;;  %v2047_v38 = vmul.f32 0.25, %v2023_v10 }
 0x788   : > { %v2018_v19 = vadd.f32 %v4947_v2, %v2017_v53  ;;  %v2045_v55 = vmul.f32 0.25, %v2015_v14  ;;  %v9556_v53 = vld [vmem:[#allocation15_spill] sm:$0xff] }
 0x789   : > { %v2048_v11 = vmul.f32 0.25, %v2026_v34  ;;  %v7870_v54 = vpack.c.bf16 %v2026_v34, %v2023_v10  ;;  %v9554_v10 = vld [vmem:[#allocation14_spill] sm:$0xff]  ;;  %v1780_v34 = vmul.u32 2, %v1764_v56 }
 0x78a   : > { %v2046_v6 = vmul.f32 0.25, %v2018_v19  ;;  %v7872_v5 = vpack.c.bf16 %v2018_v19, %v2015_v14  ;;  %v1767_v58 = vshra.s32 %v9554_v10, 2  ;;  %v9555_v14 = vld [vmem:[#allocation20_spill] sm:$0xff]  ;;  %v1773_v19 = vshra.s32 %v9556_v53, 2 }
 0x78b   : > { %v7874_v63 = vpack.c.bf16 %v2048_v11, %v2047_v38  ;;  %2067 = vrot.lane.b32.xlu1 %v7870_v54, %s5983_s8  ;;  %v1772_v36 = vshra.s32 %v9555_v14, 2  ;;  %v1781_v38 = vmul.u32 2, %v1765_v25  ;;  %v7926_v11 = vadd.s32 %v1782_v27, %v1774_v42 }
 0x78c   : > { %v7878_v45 = vpack.c.bf16 %v2046_v6, %v2045_v55  ;;  %2065 = vrot.lane.b32.xlu0 %v7872_v5, %s5983_s8  ;;  %v5265_v4 = vpop.f32.mrb[16].mxu1  ;;  %v9557_v6 = vld [vmem:[#allocation17_spill] sm:$0xff] }
 0x78d   : > { %v2039_v23 = vadd.f32 %v5265_v4, %v4947_v2  ;;  %v2030_v62 = vpop.f32.mrb[17].mxu1  ;;  %v1775_v4 = vshra.s32 %v9557_v6, 2 }
 0x78e   : > { %v2031_v9 = vadd.f32 %v4947_v2, %v2030_v62  ;;  %v5266_v8 = vpop.f32.mrb[18].mxu1  ;;  %5275 = vmatprep.mubr.msk.bf16.mxu1 %vm1576_vm4, %v7878_v45  ;;  %v7931_v62 = vadd.s32 %v1780_v34, %v1772_v36 }
 0x78f   : > { %v2042_v7 = vadd.f32 %v5266_v8, %v4947_v2  ;;  %v2033_v57 = vpop.f32.mrb[19].mxu1  ;;  %v2051_v26 = vmul.f32 0.25, %v2039_v23 }
 0x790   : > { %v2034_v30 = vadd.f32 %v4947_v2, %v2033_v57  ;;  %v2049_v21 = vmul.f32 0.25, %v2031_v9  ;;  %v1801_v2 = vshra.s32 %v9151_v1, 2 }
 0x791   : > { %v2052_v16 = vmul.f32 0.25, %v2042_v7  ;;  %v7884_v47 = vpack.c.bf16 %v2042_v7, %v2039_v23  ;;  %v1783_v23 = vmul.u32 2, %v1767_v58  ;;  %v7934_v7 = vadd.s32 %v1781_v38, %v1773_v19 }
 0x792   : > { %v2050_v46 = vmul.f32 0.25, %v2034_v30  ;;  %v7886_v28 = vpack.c.bf16 %v2034_v30, %v2031_v9  ;;  %v7928_v55 = vadd.s32 %v1802_v31, %v1801_v2  ;;  %v9558_v9 = vld [vmem:[#allocation36_spill] sm:$0xff] }
 0x793   : > { %v7888_v24 = vpack.c.bf16 %v2052_v16, %v2051_v26  ;;  %v1770_v8 = vshra.s32 %v9558_v9, 2  ;;  %v7938_v57 = vadd.s32 %v1783_v23, %v1775_v4  ;;  %v9559_v26 = vld [vmem:[#allocation35_spill] sm:$0xff] }
 0x794   : > { %v7890_v0 = vpack.c.bf16 %v2050_v46, %v2049_v21  ;;  %2069 = vrot.lane.b32.xlu1 %v7886_v28, %s5983_s8  ;;  %vm1806_vm0 = vcmp.eq.s32.totalorder %v7926_v11, %v7928_v55  ;;  %vm1804_vm13 = vcmp.eq.s32.totalorder %v7931_v62, %v7928_v55  ;;  %v1778_v16 = vshra.s32 %v9559_v26, 2  ;;  %v9560_v46 = vld [vmem:[#allocation25_spill] sm:$0xff] }
 0x795   : > { %v1786_v21 = vmul.u32 2, %v1770_v8  ;;  %vm1805_vm1 = vcmp.eq.s32.totalorder %v7934_v7, %v7928_v55  ;;  %vm1807_vm11 = vcmp.eq.s32.totalorder %v7938_v57, %v7928_v55 }
 0x797   : > { %v7958_v43 = vadd.s32 %v1786_v21, %v1778_v16  ;;  %v9563_v21 = vld [vmem:[#allocation24_spill] sm:$0xff] }
 0x798   : > { %2071 = vrot.lane.b32.xlu1 %v7884_v47, %s5983_s8 }
 0x799   : > { %vm1810_vm5 = vcmp.eq.s32.totalorder %v7958_v43, %v7928_v55 }
 0x7fd   : > { %v2068_v3 = vpop.permute.xlu1 %2067 }
 0x7fe   : > { %v2066_v48 = vpop.permute.xlu0 %2065  ;;  %v2089_v50 = vsel %vm1576_vm4, %v2068_v3, 0 }
 0x7ff   : > { %5495 = vmatprep.subr.msk.bf16.mxu1 %vm1576_vm4, %v2066_v48  ;;  %v2086_v61 = vsel %vm1576_vm4, %v2066_v48, 0  ;;  %v1768_v48 = vshra.s32 %v9560_v46, 2 }
 0x800   : > { %5268 = vmatpush3.bf16.xpose.msra.mxu1 %v2086_v61 }
 0x801   : > { %5496 = vmatprep.subr.msk.bf16.mxu1 %vm1576_vm4, %v2068_v3  ;;  %v1784_v56 = vmul.u32 2, %v1768_v48  ;;  %v1779_v48 = vshra.s32 %v9563_v21, 2 }
 0x803   : > { %v7968_v31 = vadd.s32 %v1784_v56, %v1776_v22 }
 0x805   : > { %vm1808_vm10 = vcmp.eq.s32.totalorder %v7968_v31, %v7928_v55 }
 0x806   : > { %v2070_v29 = vpop.permute.xlu1 %2069 }
 0x807   : > { %v2092_v13 = vsel %vm1576_vm4, %v2070_v29, 0 }
 0x808   : > { %5270 = vmatpush3.bf16.xpose.msra.mxu1 %v2089_v50 }
 0x809   : > { %5497 = vmatprep.subr.msk.bf16.mxu1 %vm1576_vm4, %v2070_v29 }
 0x80a   : > { %v2072_v40 = vpop.permute.xlu1 %2071 }
 0x80b   : > { %v2095_v39 = vsel %vm1576_vm4, %v2072_v40, 0 }
 0x810   : > { %5272 = vmatpush3.bf16.xpose.msra.mxu1 %v2092_v13 }
 0x811   : > { %5498 = vmatprep.subr.msk.bf16.mxu1 %vm1576_vm4, %v2072_v40 }
 0x818   : > { %5274 = vmatpush3.bf16.xpose.msra.mxu1 %v2095_v39 }
 0x81f   : > { %5276 = vmatmul.mubr.msk.bf16.vlgmr.msra.gmra.mrb[20].mxu1 %vm1576_vm4, %v7874_v63 }
 0x820   : > { %5279 = vmatprep.mubr.msk.bf16.mxu1 %vm1576_vm4, %v7890_v0 }
 0x827   : > { %5280 = vmatmul.mubr.msk.bf16.gmra.mrb[24].mxu1 %vm1576_vm4, %v7888_v24 }
 0x8f2   : > { %v5277_v30 = vpop.f32.mrb[20].mxu1 }
 0x8f3   : > { %v2164_v61 = vsel %vm1806_vm0, %v5277_v30, -1e+30  ;;  %v2131_v3 = vpop.f32.mrb[21].mxu1  ;;  %v9562_v30 = vld [vmem:[#allocation19_spill] sm:$0xff] }
 0x8f4   : > { %v5278_v50 = vpop.f32.mrb[22].mxu1  ;;  %v2176_v29 = vsel %vm1458_vm9, %v2164_v61, -inf  ;;  %v2162_v13 = vsel %vm1804_vm13, %v2131_v3, -1e+30  ;;  %v1771_v16 = vshra.s32 %v9562_v30, 2 }
 0x8f5   : > { %2177 = vmax.xlane.f32.xlu0 %v2176_v29  ;;  %v2134_v40 = vpop.f32.mrb[23].mxu1  ;;  %v2170_v42 = vsel %vm1458_vm9, %v2162_v13, -inf  ;;  %v2165_v27 = vsel %vm1807_vm11, %v5278_v50, -1e+30  ;;  %v1769_v50 = vshra.s32 %v9414_v35, 2 }
 0x8f6   : > { %v2163_v39 = vsel %vm1805_vm1, %v2134_v40, -1e+30  ;;  %v2179_v34 = vsel %vm1458_vm9, %v2165_v27, -inf  ;;  %v1787_v3 = vmul.u32 2, %v1771_v16  ;;  %v9564_v40 = vld [vmem:[#allocation34_spill] sm:$0xff] }
 0x8f7   : > { %v2173_v25 = vsel %vm1458_vm9, %v2163_v39, -inf  ;;  %v1777_v22 = vshra.s32 %v9564_v40, 2  ;;  %v1785_v56 = vmul.u32 2, %v1769_v50 }
 0x8f8   : > { %2174 = vmax.xlane.f32.xlu1 %v2173_v25  ;;  %v7990_v29 = vadd.s32 %v1787_v3, %v1779_v48 }
 0x8f9   : > { %2171 = vmax.xlane.f32.xlu0 %v2170_v42  ;;  %v7995_v25 = vadd.s32 %v1785_v56, %v1777_v22 }
 0x8fa   : > { %v5281_v2 = vpop.f32.mrb[24].mxu1  ;;  %vm1811_vm7 = vcmp.eq.s32.totalorder %v7990_v29, %v7928_v55 }
 0x8fb   : > { %v2147_v58 = vpop.f32.mrb[25].mxu1  ;;  %v2168_v19 = vsel %vm1810_vm5, %v5281_v2, -1e+30  ;;  %vm1809_vm15 = vcmp.eq.s32.totalorder %v7995_v25, %v7928_v55 }
 0x8fc   : > { %v5282_v36 = vpop.f32.mrb[26].mxu1  ;;  %v2188_v4 = vsel %vm1458_vm9, %v2168_v19, -inf  ;;  %v2166_v23 = vsel %vm1808_vm10, %v2147_v58, -1e+30 }
 0x8fd   : > { %2180 = vmax.xlane.f32.xlu0 %v2179_v34  ;;  %v2150_v38 = vpop.f32.mrb[27].mxu1  ;;  %v2182_v8 = vsel %vm1458_vm9, %v2166_v23, -inf  ;;  %v8000_v42 = vsel %vm1811_vm7, %v5282_v36, -1e+30 }
 0x8fe   : > { %v2191_v2 = vsel %vm1458_vm9, %v8000_v42, -inf  ;;  %v8009_v58 = vsel %vm1809_vm15, %v2150_v38, -1e+30 }
 0x8ff   : > { %v2185_v34 = vsel %vm1458_vm9, %v8009_v58, -inf }
 0x901   : > { %2189 = vmax.xlane.f32.xlu0 %v2188_v4 }
 0x905   : > { %2183 = vmax.xlane.f32.xlu0 %v2182_v8 }
 0x909   : > { %2264 = vrot.lane.b32.xlu1 %v7870_v54, %s5984_s9 }
 0x90d   : > { %2266 = vrot.lane.b32.xlu1 %v7886_v28, %s5984_s9 }
 0x91b   : > { %2262 = vrot.lane.b32.xlu0 %v7872_v5, %s5984_s9 }
 0x931   : > { %2192 = vmax.xlane.f32.xlu1 %v2191_v2 }
 0x935   : > { %2186 = vmax.xlane.f32.xlu1 %v2185_v34 }
 0x946   : > { %2268 = vrot.lane.b32.xlu1 %v7884_v47, %s5984_s9 }
 0x982   : > { %v2178_v36 = vpop.xlane.xlu0 %2177 }
 0x983   : > { %v2196_v4 = vsub.f32 %v2164_v61, %v2178_v36 }
 0x985   : > { %v2206_v8 = vmul.f32 1.442695, %v2196_v4  ;;  %v2175_v16 = vpop.xlane.xlu1 %2174 }
 0x986   : > { %v2172_v48 = vpop.xlane.xlu0 %2171  ;;  %v2195_v50 = vsub.f32 %v2163_v39, %v2175_v16 }
 0x987   : > { %5706 = vpow2.f32 %v2206_v8  ;;  %v2194_v3 = vsub.f32 %v2162_v13, %v2172_v48 }
 0x988   : > { %v2204_v2 = vmul.f32 1.442695, %v2195_v50 }
 0x989   : > { %v2202_v22 = vmul.f32 1.442695, %v2194_v3 }
 0x98a   : > { %v2181_v56 = vpop.xlane.xlu0 %2180 }
 0x98b   : > { %5708 = vpow2.f32 %v2202_v22  ;;  %v2197_v38 = vsub.f32 %v2165_v27, %v2181_v56  ;;  %v2265_v27 = vpop.permute.xlu1 %2264 }
 0x98d   : > { %v2208_v1 = vmul.f32 1.442695, %v2197_v38 }
 0x98e   : > { %v2190_v59 = vpop.xlane.xlu0 %2189 }
 0x98f   : > { %5710 = vpow2.f32 %v2208_v1  ;;  %v2200_v34 = vsub.f32 %v2168_v19, %v2190_v59 }
 0x990   : > { %5712 = vpow2.f32 %v2204_v2 }
 0x991   : > { %v8015_v40 = vpop.eup %5706  ;;  %v2214_v35 = vmul.f32 1.442695, %v2200_v34 }
 0x992   : > { %v2184_v61 = vpop.xlane.xlu0 %2183  ;;  %v2224_v36 = vsel %vm1458_vm9, %v8015_v40, 0.0 }
 0x993   : > { %5714 = vpow2.f32 %v2214_v35  ;;  %v2198_v13 = vsub.f32 %v2166_v23, %v2184_v61  ;;  %2225 = vadd.xlane.f32.xlu0 %v2224_v36  ;;  %v2267_v35 = vpop.permute.xlu1 %2266 }
 0x995   : > { %v8019_v39 = vpop.eup %5708  ;;  %v2210_v4 = vmul.f32 1.442695, %v2198_v13 }
 0x996   : > { %v2263_v8 = vpop.permute.xlu0 %2262  ;;  %v2218_v1 = vsel %vm1458_vm9, %v8019_v39, 0.0 }
 0x997   : > { %5716 = vpow2.f32 %v2210_v4  ;;  %2219 = vadd.xlane.f32.xlu0 %v2218_v1  ;;  %5283 = vmatprep.subr.bf16.mxu0 %v2263_v8 }
 0x998   : > { %5284 = vmatpush3.bf16.msra.mxu0 %v2263_v8 }
 0x999   : > { %v5711_v59 = vpop.eup %5710  ;;  %5285 = vmatprep.subr.bf16.mxu0 %v2265_v27 }
 0x99a   : > { %v2227_v19 = vsel %vm1458_vm9, %v5711_v59, 0.0  ;;  %v5713_v16 = vpop.eup %5712 }
 0x99b   : > { %2228 = vadd.xlane.f32.xlu1 %v2227_v19  ;;  %v2221_v3 = vsel %vm1458_vm9, %v5713_v16, 0.0 }
 0x99c   : > { %5286 = vmatpush3.bf16.msra.mxu0 %v2265_v27 }
 0x99d   : > { %v8024_v23 = vpop.eup %5714  ;;  %5287 = vmatprep.subr.bf16.mxu0 %v2267_v35 }
 0x99e   : > { %v2236_v48 = vsel %vm1458_vm9, %v8024_v23, 0.0 }
 0x99f   : > { %2237 = vadd.xlane.f32.xlu0 %v2236_v48  ;;  %2222 = vadd.xlane.f32.xlu1 %v2221_v3 }
 0x9a0   : > { %5288 = vmatpush3.bf16.msra.mxu0 %v2267_v35 }
 0x9a1   : > { %v8029_v50 = vpop.eup %5716 }
 0x9a2   : > { %v2230_v22 = vsel %vm1458_vm9, %v8029_v50, 0.0 }
 0x9a3   : > { %2231 = vadd.xlane.f32.xlu0 %v2230_v22 }
 0x9b0   : > { %2365 = vrot.lane.b32.xlu1 %v7870_v54, %s5985_s10 }
 0x9b4   : > { %2367 = vrot.lane.b32.xlu1 %v7886_v28, %s5985_s10 }
 0x9be   : > { %v2193_v56 = vpop.xlane.xlu1 %2192 }
 0x9bf   : > { %v2201_v38 = vsub.f32 %v8000_v42, %v2193_v56 }
 0x9c1   : > { %v2216_v2 = vmul.f32 1.442695, %v2201_v38 }
 0x9c2   : > { %v2187_v34 = vpop.xlane.xlu1 %2186 }
 0x9c3   : > { %5718 = vpow2.f32 %v2216_v2  ;;  %v2199_v61 = vsub.f32 %v8009_v58, %v2187_v34 }
 0x9c5   : > { %v2212_v36 = vmul.f32 1.442695, %v2199_v61 }
 0x9c6   : > { %v2269_v13 = vpop.permute.xlu1 %2268 }
 0x9c7   : > { %5289 = vmatprep.subr.bf16.mxu0 %v2269_v13  ;;  %5720 = vpow2.f32 %v2212_v36 }
 0x9c8   : > { %5290 = vmatpush3.bf16.msra.mxu0 %v2269_v13 }
 0x9cd   : > { %v5719_v4 = vpop.eup %5718 }
 0x9ce   : > { %v2239_v27 = vsel %vm1458_vm9, %v5719_v4, 0.0 }
 0x9cf   : > { %2240 = vadd.xlane.f32.xlu0 %v2239_v27 }
 0x9d1   : > { %v5721_v8 = vpop.eup %5720 }
 0x9d2   : > { %v2233_v1 = vsel %vm1458_vm9, %v5721_v8, 0.0 }
 0x9d8   : > { %2234 = vadd.xlane.f32.xlu1 %v2233_v1 }
 0x9e5   : > { %2363 = vrot.lane.b32.xlu0 %v7872_v5, %s5985_s10 }
 0x9e9   : > { %2355 = vrot.lane.b32.xlu0 %v7878_v45, %s5986_s11  ;;  %2369 = vrot.lane.b32.xlu1 %v7884_v47, %s5985_s10 }
 0x9ed   : > { %2359 = vrot.lane.b32.xlu0 %v7890_v0, %s5986_s11  ;;  %2357 = vrot.lane.b32.xlu1 %v7874_v63, %s5986_s11 }
 0x9f1   : > { %2361 = vrot.lane.b32.xlu1 %v7888_v24, %s5986_s11 }
 0xa20   : > { %v2226_v42 = vpop.xlane.xlu0 %2225 }
 0xa24   : > { %v2220_v19 = vpop.xlane.xlu0 %2219 }
 0xa28   : > { %v2229_v58 = vpop.xlane.xlu1 %2228 }
 0xa29   : > { %5722 = vrcp.f32 %v2229_v58 }
 0xa2a   : > { %5724 = vrcp.f32 %v2220_v19 }
 0xa2b   : > { %5726 = vrcp.f32 %v2226_v42 }
 0xa2c   : > { %v2223_v35 = vpop.xlane.xlu1 %2222  ;;  %v2238_v34 = vpop.xlane.xlu0 %2237 }
 0xa2d   : > { %5728 = vrcp.f32 %v2223_v35 }
 0xa30   : > { %v2232_v61 = vpop.xlane.xlu0 %2231  ;;  %v2366_v36 = vpop.permute.xlu1 %2365 }
 0xa33   : > { %v5723_v45 = vpop.eup %5722 }
 0xa34   : > { %v5725_v48 = vpop.eup %5724  ;;  %v2253_v56 = vmul.f32 %v5723_v45, %v5711_v59  ;;  %v2368_v1 = vpop.permute.xlu1 %2367 }
 0xa35   : > { %v5727_v3 = vpop.eup %5726  ;;  %v2250_v0 = vmul.f32 %v5725_v48, %v8019_v39  ;;  %v2387_v39 = vsel %vm1576_vm4, %v2366_v36, 0  ;;  %v2390_v45 = vsel %vm1576_vm4, %v2368_v1, 0 }
 0xa36   : > { %v2252_v63 = vmul.f32 %v5727_v3, %v8015_v40 }
 0xa37   : > { %v5729_v22 = vpop.eup %5728 }
 0xa38   : > { %v2251_v38 = vmul.f32 %v5729_v22, %v5713_v16  ;;  %v2259_v24 = vpack.c.bf16 %v2253_v56, %v2252_v63 }
 0xa3a   : > { %v2258_v2 = vpack.c.bf16 %v2251_v38, %v2250_v0 }
 0xa3c   : > { %5291 = vmatprep.mubr.msk.bf16.mxu0 %vm1458_vm9, %v2258_v2 }
 0xa3d   : > { %5292 = vmatmul.mubr.msk.bf16.vlgmr.msra.gmra.mrb[20].mxu0 %vm1458_vm9, %v2259_v24 }
 0xa5c   : > { %v2241_v13 = vpop.xlane.xlu0 %2240 }
 0xa5d   : > { %5730 = vrcp.f32 %v2241_v13 }
 0xa5e   : > { %5732 = vrcp.f32 %v2232_v61 }
 0xa5f   : > { %5734 = vrcp.f32 %v2238_v34 }
 0xa60   : > { %v2364_v27 = vpop.permute.xlu0 %2363 }
 0xa61   : > { %5499 = vmatprep.subr.msk.bf16.mxu0 %vm1576_vm4, %v2364_v27  ;;  %v2384_v59 = vsel %vm1576_vm4, %v2364_v27, 0 }
 0xa62   : > { %5300 = vmatpush3.bf16.xpose.msra.mxu0 %v2384_v59 }
 0xa63   : > { %5500 = vmatprep.subr.msk.bf16.mxu0 %vm1576_vm4, %v2366_v36 }
 0xa64   : > { %v2356_v63 = vpop.permute.xlu0 %2355 }
 0xa65   : > { %v2235_v40 = vpop.xlane.xlu1 %2234 }
 0xa66   : > { %5736 = vrcp.f32 %v2235_v40 }
 0xa67   : > { %v5731_v16 = vpop.eup %5730 }
 0xa68   : > { %v5733_v42 = vpop.eup %5732  ;;  %v2257_v35 = vmul.f32 %v5731_v16, %v5719_v4 }
 0xa69   : > { %v5735_v58 = vpop.eup %5734  ;;  %v2254_v48 = vmul.f32 %v5733_v42, %v8029_v50  ;;  %v2370_v22 = vpop.permute.xlu1 %2369 }
 0xa6a   : > { %5302 = vmatpush3.bf16.xpose.msra.mxu0 %v2387_v39  ;;  %v2256_v56 = vmul.f32 %v5735_v58, %v8024_v23  ;;  %v2393_v4 = vsel %vm1576_vm4, %v2370_v22, 0 }
 0xa6b   : > { %5501 = vmatprep.subr.msk.bf16.mxu0 %vm1576_vm4, %v2368_v1 }
 0xa6c   : > { %v2261_v38 = vpack.c.bf16 %v2257_v35, %v2256_v56 }
 0xa6d   : > { %v2358_v50 = vpop.permute.xlu1 %2357 }
 0xa70   : > { %v5737_v19 = vpop.eup %5736 }
 0xa71   : > { %v2255_v3 = vmul.f32 %v5737_v19, %v5721_v8  ;;  %v2360_v8 = vpop.permute.xlu0 %2359  ;;  %v2362_v23 = vpop.permute.xlu1 %2361 }
 0xa72   : > { %5304 = vmatpush3.bf16.xpose.msra.mxu0 %v2390_v45 }
 0xa73   : > { %5502 = vmatprep.subr.msk.bf16.mxu0 %vm1576_vm4, %v2370_v22  ;;  %v2260_v0 = vpack.c.bf16 %v2255_v3, %v2254_v48 }
 0xa75   : > { %5295 = vmatprep.mubr.msk.bf16.mxu0 %vm1458_vm9, %v2260_v0 }
 0xa76   : > { %5296 = vmatmul.mubr.msk.bf16.gmra.mrb[24].mxu0 %vm1458_vm9, %v2261_v38 }
 0xa77   : > { %5307 = vmatprep.mubr.msk.bf16.mxu0 %vm1576_vm4, %v2356_v63 }
 0xa7a   : > { %5306 = vmatpush3.bf16.xpose.msra.mxu0 %v2393_v4 }
 0xa81   : > { %5308 = vmatmul.mubr.msk.bf16.vlgmr.msra.gmra.mrb[28].mxu0 %vm1576_vm4, %v2358_v50 }
 0xa82   : > { %5311 = vmatprep.mubr.msk.bf16.mxu0 %vm1576_vm4, %v2360_v8 }
 0xa89   : > { %5312 = vmatmul.mubr.msk.bf16.gmra.mrb[32].mxu0 %vm1576_vm4, %v2362_v23 }
 0xb10   : > { %v8073_v2 = vpop.f32.mrb[20].mxu0 }
 0xb11   : > { %v8075_v24 = vpop.f32.mrb[21].mxu0 }
 0xb12   : > { %v8077_v34 = vpop.f32.mrb[22].mxu0 }
 0xb13   : > { %v8079_v61 = vpop.f32.mrb[23].mxu0 }
 0xb49   : > { %v8081_v36 = vpop.f32.mrb[24].mxu0 }
 0xb4a   : > { %v8083_v13 = vpop.f32.mrb[25].mxu0 }
 0xb4b   : > { %v8085_v27 = vpop.f32.mrb[26].mxu0 }
 0xb4c   : > { %v8087_v1 = vpop.f32.mrb[27].mxu0 }
 0xb54   : > { %v5309_v59 = vpop.f32.mrb[28].mxu0 }
 0xb55   : > { %v2429_v40 = vpop.f32.mrb[29].mxu0  ;;  %v2462_v19 = vsel %vm1806_vm0, %v5309_v59, -1e+30  ;;  %vm9570_vm0 = vmmov %vm9548_vm2 }
 0xb56   : > { %v2460_v39 = vsel %vm1804_vm13, %v2429_v40, -1e+30  ;;  %v5310_v16 = vpop.f32.mrb[30].mxu0  ;;  %v2474_v48 = vsel %vm1458_vm9, %v2462_v19, -inf  ;;  %vm9571_vm13 = vmmov %vm9570_vm0 }
 0xb57   : > { %v2432_v42 = vpop.f32.mrb[31].mxu0  ;;  %v2468_v58 = vsel %vm1458_vm9, %v2460_v39, -inf  ;;  %v2463_v62 = vsel %vm1807_vm11, %v5310_v16, -1e+30  ;;  %vm9573_vm11 = vmmov %vm9570_vm0 }
 0xb58   : > { %v2461_v35 = vsel %vm1805_vm1, %v2432_v42, -1e+30  ;;  %2469 = vmax.xlane.f32.xlu0 %v2468_v58  ;;  %v2477_v0 = vsel %vm1458_vm9, %v2463_v62, -inf  ;;  %vm9572_vm1 = vmmov %vm9570_vm0 }
 0xb59   : > { %v2471_v45 = vsel %vm1458_vm9, %v2461_v35, -inf }
 0xb5a   : > { %2472 = vmax.xlane.f32.xlu1 %v2471_v45 }
 0xb5c   : > { %2475 = vmax.xlane.f32.xlu0 %v2474_v48  ;;  %v5313_v3 = vpop.f32.mrb[32].mxu0 }
 0xb5d   : > { %v2445_v22 = vpop.f32.mrb[33].mxu0  ;;  %v2466_v50 = vsel %vm1810_vm5, %v5313_v3, -1e+30  ;;  %vm9574_vm5 = vmmov %vm9570_vm0 }
 0xb5e   : > { %v5314_v56 = vpop.f32.mrb[34].mxu0  ;;  %v2464_v7 = vsel %vm1808_vm10, %v2445_v22, -1e+30  ;;  %v2486_v25 = vsel %vm1458_vm9, %v2466_v50, -inf  ;;  %vm9575_vm10 = vmmov %vm9570_vm0 }
 0xb5f   : > { %v2448_v11 = vpop.f32.mrb[35].mxu0  ;;  %v2467_v57 = vsel %vm1811_vm7, %v5314_v56, -1e+30  ;;  %v2480_v4 = vsel %vm1458_vm9, %v2464_v7, -inf  ;;  %vm9576_vm7 = vmmov %vm9570_vm0 }
 0xb60   : > { %v2465_v38 = vsel %vm1809_vm15, %v2448_v11, -1e+30  ;;  %2478 = vmax.xlane.f32.xlu0 %v2477_v0  ;;  %v2489_v31 = vsel %vm1458_vm9, %v2467_v57, -inf  ;;  %vm9577_vm15 = vmmov %vm9570_vm0 }
 0xb61   : > { %v2483_v63 = vsel %vm1458_vm9, %v2465_v38, -inf }
 0xb62   : > { %2484 = vmax.xlane.f32.xlu1 %v2483_v63 }
 0xb64   : > { %2481 = vmax.xlane.f32.xlu0 %v2480_v4 }
 0xb66   : > { %2490 = vmax.xlane.f32.xlu1 %v2489_v31 }
 0xb68   : > { %2487 = vmax.xlane.f32.xlu0 %v2486_v25 }
 0xb7e   : > { %2560 = vrot.lane.b32.xlu0 %v7872_v5, %s5987_s17 }
 0xbe5   : > { %v2470_v29 = vpop.xlane.xlu0 %2469 }
 0xbe6   : > { %v2492_v8 = vsub.f32 %v2460_v39, %v2470_v29 }
 0xbe7   : > { %v2473_v23 = vpop.xlane.xlu1 %2472 }
 0xbe8   : > { %v2500_v16 = vmul.f32 1.442695, %v2492_v8  ;;  %v2493_v42 = vsub.f32 %v2461_v35, %v2473_v23 }
 0xbe9   : > { %v2476_v59 = vpop.xlane.xlu0 %2475 }
 0xbea   : > { %v2494_v40 = vsub.f32 %v2462_v19, %v2476_v59  ;;  %v2502_v48 = vmul.f32 1.442695, %v2493_v42 }
 0xbec   : > { %v2504_v55 = vmul.f32 1.442695, %v2494_v40 }
 0xbed   : > { %v2479_v43 = vpop.xlane.xlu0 %2478 }
 0xbee   : > { %5738 = vpow2.f32 %v2504_v55  ;;  %v2495_v58 = vsub.f32 %v2463_v62, %v2479_v43 }
 0xbef   : > { %v2485_v45 = vpop.xlane.xlu1 %2484  ;;  %5740 = vpow2.f32 %v2500_v16 }
 0xbf0   : > { %v2506_v3 = vmul.f32 1.442695, %v2495_v58  ;;  %v2497_v29 = vsub.f32 %v2465_v38, %v2485_v45 }
 0xbf1   : > { %v2482_v22 = vpop.xlane.xlu0 %2481 }
 0xbf2   : > { %5742 = vpow2.f32 %v2506_v3  ;;  %v2496_v56 = vsub.f32 %v2464_v7, %v2482_v22 }
 0xbf3   : > { %5744 = vpow2.f32 %v2502_v48  ;;  %v2491_v5 = vpop.xlane.xlu1 %2490 }
 0xbf4   : > { %v2508_v19 = vmul.f32 1.442695, %v2496_v56  ;;  %v2499_v63 = vsub.f32 %v2467_v57, %v2491_v5  ;;  %v2510_v57 = vmul.f32 1.442695, %v2497_v29 }
 0xbf5   : > { %v2488_v11 = vpop.xlane.xlu0 %2487 }
 0xbf6   : > { %v2498_v39 = vsub.f32 %v2466_v50, %v2488_v11  ;;  %v2514_v7 = vmul.f32 1.442695, %v2499_v63 }
 0xbf8   : > { %v8123_v0 = vpop.eup %5738  ;;  %v2512_v35 = vmul.f32 1.442695, %v2498_v39 }
 0xbf9   : > { %v2561_v4 = vpop.permute.xlu0 %2560  ;;  %v2522_v62 = vsel %vm1458_vm9, %v8123_v0, 0.0  ;;  %v5741_v31 = vpop.eup %5740 }
 0xbfa   : > { %5746 = vpow2.f32 %v2512_v35  ;;  %2523 = vadd.xlane.f32.xlu0 %v2522_v62  ;;  %5315 = vmatprep.subr.bf16.mxu1 %v2561_v4  ;;  %v2516_v50 = vsel %vm1458_vm9, %v5741_v31, 0.0 }
 0xbfb   : > { %5316 = vmatpush3.bf16.msra.mxu1 %v2561_v4  ;;  %5748 = vpow2.f32 %v2508_v19 }
 0xbfc   : > { %v5743_v25 = vpop.eup %5742  ;;  %5750 = vpow2.f32 %v2514_v7 }
 0xbfd   : > { %v2525_v8 = vsel %vm1458_vm9, %v5743_v25, 0.0  ;;  %v5745_v23 = vpop.eup %5744  ;;  %5752 = vpow2.f32 %v2510_v57 }
 0xbfe   : > { %2517 = vadd.xlane.f32.xlu0 %v2516_v50  ;;  %2526 = vadd.xlane.f32.xlu1 %v2525_v8  ;;  %v2519_v59 = vsel %vm1458_vm9, %v5745_v23, 0.0 }
 0xc02   : > { %2520 = vadd.xlane.f32.xlu1 %v2519_v59 }
 0xc04   : > { %v5747_v40 = vpop.eup %5746 }
 0xc05   : > { %v2534_v16 = vsel %vm1458_vm9, %v5747_v40, 0.0  ;;  %v5749_v42 = vpop.eup %5748 }
 0xc06   : > { %2535 = vadd.xlane.f32.xlu1 %v2534_v16  ;;  %v2528_v38 = vsel %vm1458_vm9, %v5749_v42, 0.0  ;;  %v5751_v55 = vpop.eup %5750 }
 0xc07   : > { %v2537_v43 = vsel %vm1458_vm9, %v5751_v55, 0.0  ;;  %v5753_v58 = vpop.eup %5752 }
 0xc08   : > { %v2531_v45 = vsel %vm1458_vm9, %v5753_v58, 0.0 }
 0xc0a   : > { %2529 = vadd.xlane.f32.xlu1 %v2528_v38 }
 0xc0e   : > { %2538 = vadd.xlane.f32.xlu1 %v2537_v43 }
 0xc12   : > { %2532 = vadd.xlane.f32.xlu1 %v2531_v45 }
 0xc14   : > { %2564 = vrot.lane.b32.xlu0 %v7886_v28, %s5987_s17 }
 0xc18   : > { %2566 = vrot.lane.b32.xlu0 %v7884_v47, %s5987_s17 }
 0xc23   : > { %2562 = vrot.lane.b32.xlu1 %v7870_v54, %s5987_s17 }
 0xc87   : > { %v2524_v48 = vpop.xlane.xlu0 %2523 }
 0xc8b   : > { %v2518_v3 = vpop.xlane.xlu0 %2517  ;;  %v2527_v22 = vpop.xlane.xlu1 %2526 }
 0xc8c   : > { %5754 = vrcp.f32 %v2518_v3 }
 0xc8f   : > { %v2521_v56 = vpop.xlane.xlu1 %2520  ;;  %v2565_v47 = vpop.permute.xlu0 %2564 }
 0xc90   : > { %5756 = vrcp.f32 %v2521_v56 }
 0xc91   : > { %5758 = vrcp.f32 %v2527_v22 }
 0xc92   : > { %5760 = vrcp.f32 %v2524_v48 }
 0xc93   : > { %v2536_v5 = vpop.xlane.xlu1 %2535 }
 0xc96   : > { %v5755_v39 = vpop.eup %5754 }
 0xc97   : > { %v2530_v11 = vpop.xlane.xlu1 %2529  ;;  %v2548_v35 = vmul.f32 %v5755_v39, %v5741_v31  ;;  %v2567_v31 = vpop.permute.xlu0 %2566 }
 0xc98   : > { %5762 = vrcp.f32 %v2530_v11 }
 0xc9a   : > { %v5757_v19 = vpop.eup %5756 }
 0xc9b   : > { %v2539_v63 = vpop.xlane.xlu1 %2538  ;;  %v2549_v4 = vmul.f32 %v5757_v19, %v5745_v23  ;;  %v5759_v29 = vpop.eup %5758 }
 0xc9c   : > { %v5761_v7 = vpop.eup %5760  ;;  %v2551_v23 = vmul.f32 %v5759_v29, %v5743_v25  ;;  %v5614_v25 = vld [vmem:[%s9060_s1 + $0x78] sm:$0xff]  }
 0xc9d   : > { %v2556_v28 = vpack.c.bf16 %v2549_v4, %v2548_v35  ;;  %v2550_v59 = vmul.f32 %v5761_v7, %v8123_v0  ;;  %v5615_v0 = vld [vmem:[%s9060_s1 + $0x80] sm:$0xff]  }
 0xc9f   : > { %5323 = vmatprep.mubr.msk.bf16.mxu1 %vm1458_vm9, %v2556_v28  ;;  %v2533_v54 = vpop.xlane.xlu1 %2532  ;;  %v2557_v38 = vpack.c.bf16 %v2551_v23, %v2550_v59 }
 0xca0   : > { %5764 = vrcp.f32 %v2533_v54 }
 0xca1   : > { %5766 = vrcp.f32 %v2539_v63 }
 0xca2   : > { %5768 = vrcp.f32 %v2536_v5  ;;  %v5763_v50 = vpop.eup %5762 }
 0xca3   : > { %v2563_v62 = vpop.permute.xlu1 %2562  ;;  %v2552_v16 = vmul.f32 %v5763_v50, %v5749_v42 }
 0xca4   : > { %5317 = vmatprep.subr.bf16.mxu1 %v2563_v62 }
 0xca5   : > { %5318 = vmatpush3.bf16.msra.mxu1 %v2563_v62 }
 0xca6   : > { %5319 = vmatprep.subr.bf16.mxu1 %v2565_v47 }
 0xca9   : > { %5320 = vmatpush3.bf16.msra.mxu1 %v2565_v47 }
 0xcaa   : > { %v5765_v8 = vpop.eup %5764  ;;  %5321 = vmatprep.subr.bf16.mxu1 %v2567_v31 }
 0xcab   : > { %v2553_v57 = vmul.f32 %v5765_v8, %v5753_v58  ;;  %v5767_v43 = vpop.eup %5766 }
 0xcac   : > { %v5769_v48 = vpop.eup %5768  ;;  %v2555_v3 = vmul.f32 %v5767_v43, %v5751_v55 }
 0xcad   : > { %5322 = vmatpush3.bf16.msra.mxu1 %v2567_v31  ;;  %v2558_v45 = vpack.c.bf16 %v2553_v57, %v2552_v16  ;;  %v2554_v22 = vmul.f32 %v5769_v48, %v5747_v40 }
 0xcae   : > { %5331 = vmatprep.subr.bf16.mxu1 %v5614_v25 }
 0xcaf   : > { %v2559_v56 = vpack.c.bf16 %v2555_v3, %v2554_v22 }
 0xcb0   : > { %5324 = vmatmul.mubr.msk.bf16.vlgmr.msra.gmra.mrb[28].mxu1 %vm1458_vm9, %v2557_v38 }
 0xcb1   : > { %5327 = vmatprep.mubr.msk.bf16.mxu1 %vm1458_vm9, %v2558_v45  ;;  %5332 = vmatpush3.bf16.msra.mxu1 %v5614_v25 }
 0xcb2   : > { %5333 = vmatprep.subr.bf16.mxu1 %v5615_v0 }
 0xcb5   : > { %5334 = vmatpush3.bf16.msra.mxu1 %v5615_v0 }
 0xcb8   : > { %5328 = vmatmul.mubr.msk.bf16.gmra.mrb[32].mxu1 %vm1458_vm9, %v2559_v56 }
 0xd83   : > { %v5325_v42 = vpop.f32.mrb[28].mxu1 }
 0xd84   : > { %v2618_v58 = vpop.f32.mrb[29].mxu1 }
 0xd85   : > { %v5326_v5 = vpop.f32.mrb[30].mxu1 }
 0xd86   : > { %v5564_v55 = vpack.i.bf16 %v5326_v5, %v5325_v42  ;;  %v2621_v40 = vpop.f32.mrb[31].mxu1 }
 0xd87   : > { %v5559_v11 = vpack.i.bf16 %v2621_v40, %v2618_v58 }
 0xd88   : > { %5565 = vrot.lane.b32.xlu1 %v5564_v55, %s5988_s26 }
 0xd89   : > { %5560 = vrot.lane.b32.xlu0 %v5559_v11, %s5988_s26 }
 0xd8b   : > { %v5329_v39 = vpop.f32.mrb[32].mxu1 }
 0xd8c   : > { %v2634_v19 = vpop.f32.mrb[33].mxu1 }
 0xd8d   : > { %v5330_v63 = vpop.f32.mrb[34].mxu1 }
 0xd8e   : > { %v5574_v35 = vpack.i.bf16 %v5330_v63, %v5329_v39  ;;  %v2637_v4 = vpop.f32.mrb[35].mxu1 }
 0xd8f   : > { %v5569_v28 = vpack.i.bf16 %v2637_v4, %v2634_v19 }
 0xd90   : > { %5575 = vrot.lane.b32.xlu1 %v5574_v35, %s5988_s26 }
 0xd91   : > { %5570 = vrot.lane.b32.xlu0 %v5569_v28, %s5988_s26 }
 0xdfa   : > { %v5566_v54 = vpop.permute.xlu1 %5565 }
 0xdfb   : > { %v5568_v47 = vunpack.i.h.bf16 %v5566_v54  ;;  %v5567_v62 = vunpack.i.l.bf16 %v5566_v54  ;;  %v5561_v29 = vpop.permute.xlu0 %5560 }
 0xdfc   : > { %v5563_v7 = vunpack.i.h.bf16 %v5561_v29  ;;  %v5562_v50 = vunpack.i.l.bf16 %v5561_v29 }
 0xdfd   : > { %v2684_v31 = vsel %vm1576_vm4, %v8077_v34, %v5568_v47  ;;  %v2683_v8 = vsel %vm1576_vm4, %v8073_v2, %v5567_v62 }
 0xdfe   : > { %v2694_v23 = vpack.c.bf16 %v2684_v31, %v2683_v8  ;;  %v2682_v57 = vsel %vm1576_vm4, %v8079_v61, %v5563_v7  ;;  %v2681_v59 = vsel %vm1576_vm4, %v8075_v24, %v5562_v50 }
 0xdff   : > { %v2693_v16 = vpack.c.bf16 %v2682_v57, %v2681_v59 }
 0xe01   : > { %5335 = vmatprep.mubr.msk.bf16.mxu1 %vm9565_vm14, %v2693_v16  ;;  %vm9578_vm14 = vmmov %vm9570_vm0 }
 0xe02   : > { %5336 = vmatmul.mubr.msk.bf16.vlgmr.msra.gmra.mrb[36].mxu1 %vm9566_vm8, %v2694_v23  ;;  %v5576_v38 = vpop.permute.xlu1 %5575  ;;  %vm9579_vm8 = vmmov %vm9570_vm0 }
 0xe03   : > { %v5578_v43 = vunpack.i.h.bf16 %v5576_v38  ;;  %v5577_v45 = vunpack.i.l.bf16 %v5576_v38  ;;  %v5571_v48 = vpop.permute.xlu0 %5570 }
 0xe04   : > { %v5573_v34 = vunpack.i.h.bf16 %v5571_v48  ;;  %v5572_v3 = vunpack.i.l.bf16 %v5571_v48 }
 0xe05   : > { %v2688_v2 = vsel %vm1576_vm4, %v8085_v27, %v5578_v43  ;;  %v2687_v61 = vsel %vm1576_vm4, %v8081_v36, %v5577_v45  ;;  %v4976_v27 = vld [vmem:[%s9061_s2 + $0x18] ss:$0 sm:$0xff] }
 0xe06   : > { %v2686_v24 = vsel %vm1576_vm4, %v8087_v1, %v5573_v34  ;;  %v2685_v22 = vsel %vm1576_vm4, %v8083_v13, %v5572_v3  ;;  %v2696_v56 = vpack.c.bf16 %v2688_v2, %v2687_v61 }
 0xe07   : > { %v2695_v25 = vpack.c.bf16 %v2686_v24, %v2685_v22 }
 0xe09   : > { %5339 = vmatprep.mubr.msk.bf16.mxu1 %vm9567_vm12, %v2695_v25  ;;  %vm9580_vm12 = vmmov %vm9570_vm0 }
 0xe0a   : > { %5340 = vmatmul.mubr.msk.bf16.gmra.mrb[40].mxu1 %vm9568_vm6, %v2696_v56  ;;  %vm9581_vm6 = vmmov %vm9570_vm0 }
 0xed5   : > { %v5337_v0 = vpop.f32.mrb[36].mxu1 }
 0xed6   : > { %v2755_v42 = vpop.f32.mrb[37].mxu1  ;;  %v2788_v36 = vadd.f32 %v5337_v0, %v7756_v41 }
 0xed7   : > { %v2786_v58 = vadd.f32 %v2755_v42, %v7759_v51  ;;  %v5338_v1 = vpop.f32.mrb[38].mxu1 }
 0xed8   : > { %v2758_v5 = vpop.f32.mrb[39].mxu1  ;;  %v8183_v40 = vadd.f32 %v4976_v27, %v2788_v36  ;;  %v2789_v11 = vadd.f32 %v5338_v1, %v7762_v12 }
 0xed9   : > { %v8180_v55 = vadd.f32 %v4976_v27, %v2786_v58  ;;  %v2787_v13 = vadd.f32 %v2758_v5, %v7767_v15 }
 0xeda   : > { %v8192_v35 = vadd.f32 %v4976_v27, %v2789_v11  ;;  %v2815_v12 = vsel %vm9570_vm0, %v8183_v40, 0.0 }
 0xedb   : > { %v8186_v39 = vadd.f32 %v4976_v27, %v2787_v13  ;;  %v2809_v19 = vsel %vm9569_vm3, %v8180_v55, 0.0  ;;  %vm9582_vm3 = vmmov %vm9570_vm0 }
 0xedc   : > { %2810 = vadd.xlane.f32.xlu0 %v2809_v19  ;;  %v2818_v50 = vsel %vm9571_vm13, %v8192_v35, 0.0  ;;  %vm9584_vm13 = vmmov %vm9570_vm0 }
 0xedd   : > { %v5341_v63 = vpop.f32.mrb[40].mxu1  ;;  %v2812_v41 = vsel %vm9548_vm2, %v8186_v39, 0.0  ;;  %vm9583_vm2 = vmmov %vm9570_vm0 }
 0xede   : > { %2813 = vadd.xlane.f32.xlu1 %v2812_v41  ;;  %v2771_v51 = vpop.f32.mrb[41].mxu1  ;;  %v2792_v62 = vadd.f32 %v5341_v63, %v7779_v18 }
 0xedf   : > { %v2790_v15 = vadd.f32 %v2771_v51, %v7776_v44  ;;  %v5342_v4 = vpop.f32.mrb[42].mxu1 }
 0xee0   : > { %2816 = vadd.xlane.f32.xlu0 %v2815_v12  ;;  %v2774_v28 = vpop.f32.mrb[43].mxu1  ;;  %v2793_v54 = vadd.f32 %v5342_v4, %v7787_v33  ;;  %v8210_v8 = vadd.f32 %v4976_v27, %v2792_v62 }
 0xee1   : > { %v2791_v47 = vadd.f32 %v2774_v28, %v7782_v20  ;;  %v8200_v29 = vadd.f32 %v4976_v27, %v2790_v15 }
 0xee2   : > { %v8206_v44 = vadd.f32 %v4976_v27, %v2793_v54  ;;  %v2827_v33 = vsel %vm9575_vm10, %v8210_v8, 0.0  ;;  %vm9588_vm10 = vmmov %vm9570_vm0 }
 0xee3   : > { %v8202_v7 = vadd.f32 %v4976_v27, %v2791_v47  ;;  %v2821_v20 = vsel %vm9573_vm11, %v8200_v29, 0.0  ;;  %vm9586_vm11 = vmmov %vm9570_vm0 }
 0xee4   : > { %2819 = vadd.xlane.f32.xlu0 %v2818_v50  ;;  %v2830_v18 = vsel %vm9574_vm5, %v8206_v44, 0.0  ;;  %vm9587_vm5 = vmmov %vm9570_vm0 }
 0xee5   : > { %v2824_v31 = vsel %vm9572_vm1, %v8202_v7, 0.0  ;;  %vm9585_vm1 = vmmov %vm9570_vm0 }
 0xee6   : > { %2825 = vadd.xlane.f32.xlu1 %v2824_v31 }
 0xee8   : > { %2822 = vadd.xlane.f32.xlu0 %v2821_v20 }
 0xeea   : > { %2831 = vadd.xlane.f32.xlu1 %v2830_v18 }
 0xeec   : > { %2828 = vadd.xlane.f32.xlu0 %v2827_v33  ;;  %v5616_v33 = vld [vmem:[%s9060_s1 + $0x88] sm:$0xff]  }
 0xeed   : > { %5343 = vmatprep.subr.bf16.mxu0 %v5616_v33 }
 0xeee   : > { %5344 = vmatpush3.bf16.msra.mxu0 %v5616_v33 }
 0xf69   : > { %v2811_v23 = vpop.xlane.xlu0 %2810 }
 0xf6a   : > { %v2833_v57 = vmul.f32 0.03125, %v2811_v23  ;;  %v5617_v23 = vld [vmem:[%s9060_s1 + $0x90] sm:$0xff]  }
 0xf6b   : > { %v2814_v59 = vpop.xlane.xlu1 %2813  ;;  %5345 = vmatprep.subr.bf16.mxu0 %v5617_v23 }
 0xf6c   : > { %v8219_v16 = vsub.f32 %v8180_v55, %v2833_v57  ;;  %v2834_v38 = vmul.f32 0.03125, %v2814_v59  ;;  %5346 = vmatpush3.bf16.msra.mxu0 %v5617_v23 }
 0xf6d   : > { %v2817_v43 = vpop.xlane.xlu0 %2816 }
 0xf6e   : > { %v8222_v45 = vsub.f32 %v8186_v39, %v2834_v38  ;;  %v2835_v48 = vmul.f32 0.03125, %v2817_v43  ;;  %v2849_v34 = vmul.f32 %v8219_v16, %v8219_v16 }
 0xf70   : > { %v8227_v3 = vsub.f32 %v8183_v40, %v2835_v48  ;;  %v2857_v2 = vsel %vm9576_vm7, %v2849_v34, 0.0  ;;  %v2850_v61 = vmul.f32 %v8222_v45, %v8222_v45  ;;  %vm9589_vm7 = vmmov %vm9570_vm0 }
 0xf71   : > { %v2820_v24 = vpop.xlane.xlu0 %2819  ;;  %2858 = vadd.xlane.f32.xlu0 %v2857_v2 }
 0xf72   : > { %v2836_v22 = vmul.f32 0.03125, %v2820_v24  ;;  %v2860_v56 = vsel %vm9577_vm15, %v2850_v61, 0.0  ;;  %v2851_v25 = vmul.f32 %v8227_v3, %v8227_v3  ;;  %vm9590_vm15 = vmmov %vm9570_vm0 }
 0xf73   : > { %2861 = vadd.xlane.f32.xlu1 %v2860_v56  ;;  %v2826_v0 = vpop.xlane.xlu1 %2825 }
 0xf74   : > { %v8236_v27 = vsub.f32 %v8192_v35, %v2836_v22  ;;  %v2838_v42 = vmul.f32 0.03125, %v2826_v0  ;;  %v2863_v36 = vsel %vm9578_vm14, %v2851_v25, 0.0  ;;  %vm9591_vm14 = vmmov %vm9570_vm0 }
 0xf75   : > { %2864 = vadd.xlane.f32.xlu0 %v2863_v36  ;;  %v2823_v58 = vpop.xlane.xlu0 %2822 }
 0xf76   : > { %v8240_v1 = vsub.f32 %v8202_v7, %v2838_v42  ;;  %v2837_v5 = vmul.f32 0.03125, %v2823_v58  ;;  %v2852_v13 = vmul.f32 %v8236_v27, %v8236_v27 }
 0xf77   : > { %v2832_v11 = vpop.xlane.xlu1 %2831 }
 0xf78   : > { %v8245_v19 = vsub.f32 %v8200_v29, %v2837_v5  ;;  %v2840_v63 = vmul.f32 0.03125, %v2832_v11  ;;  %v2866_v41 = vsel %vm9579_vm8, %v2852_v13, 0.0  ;;  %v2854_v51 = vmul.f32 %v8240_v1, %v8240_v1  ;;  %v4977_v13 = vld [vmem:[%s9061_s2 + $0x19] ss:$0 sm:$0xff]  ;;  %vm9592_vm8 = vmmov %vm9570_vm0 }
 0xf79   : > { %v2829_v15 = vpop.xlane.xlu0 %2828  ;;  %2867 = vadd.xlane.f32.xlu1 %v2866_v41 }
 0xf7a   : > { %v8251_v4 = vsub.f32 %v8206_v44, %v2840_v63  ;;  %v2839_v12 = vmul.f32 0.03125, %v2829_v15  ;;  %v2853_v28 = vmul.f32 %v8245_v19, %v8245_v19  ;;  %v2872_v62 = vsel %vm9581_vm6, %v2854_v51, 0.0  ;;  %vm9594_vm6 = vmmov %vm9570_vm0 }
 0xf7c   : > { %v8256_v54 = vsub.f32 %v8210_v8, %v2839_v12  ;;  %v2869_v47 = vsel %vm9580_vm12, %v2853_v28, 0.0  ;;  %v2856_v50 = vmul.f32 %v8251_v4, %v8251_v4  ;;  %vm9593_vm12 = vmmov %vm9570_vm0 }
 0xf7d   : > { %2870 = vadd.xlane.f32.xlu0 %v2869_v47  ;;  %2873 = vadd.xlane.f32.xlu1 %v2872_v62 }
 0xf7e   : > { %v2855_v31 = vmul.f32 %v8256_v54, %v8256_v54  ;;  %v2878_v18 = vsel %vm9583_vm2, %v2856_v50, 0.0  ;;  %vm9596_vm2 = vmmov %vm9570_vm0 }
 0xf80   : > { %v2875_v20 = vsel %vm9582_vm3, %v2855_v31, 0.0  ;;  %vm9595_vm3 = vmmov %vm9570_vm0 }
 0xf81   : > { %2876 = vadd.xlane.f32.xlu0 %v2875_v20  ;;  %2879 = vadd.xlane.f32.xlu1 %v2878_v18  ;;  %v4978_v20 = vld [vmem:[%s9061_s2 + $0x1a] ss:$0 sm:$0xff] }
 0xffe   : > { %v2859_v57 = vpop.xlane.xlu0 %2858 }
 0xfff   : > { %v2881_v59 = vmul.f32 0.03125, %v2859_v57 }
0x1000   : > { %v2862_v38 = vpop.xlane.xlu1 %2861 }
0x1001   : > { %v2889_v43 = vadd.f32 1e-05, %v2881_v59  ;;  %v2882_v48 = vmul.f32 0.03125, %v2862_v38 }
0x1002   : > { %v2865_v34 = vpop.xlane.xlu0 %2864 }
0x1003   : > { %5770 = vrsqrt.f32 %v2889_v43  ;;  %v2890_v2 = vadd.f32 1e-05, %v2882_v48  ;;  %v2883_v61 = vmul.f32 0.03125, %v2865_v34 }
0x1005   : > { %5772 = vrsqrt.f32 %v2890_v2  ;;  %v2891_v24 = vadd.f32 1e-05, %v2883_v61 }
0x1006   : > { %v2868_v22 = vpop.xlane.xlu1 %2867 }
0x1007   : > { %5774 = vrsqrt.f32 %v2891_v24  ;;  %v2884_v56 = vmul.f32 0.03125, %v2868_v22 }
0x1009   : > { %v2892_v25 = vadd.f32 1e-05, %v2884_v56 }
0x100a   : > { %v2871_v0 = vpop.xlane.xlu0 %2870  ;;  %v2874_v42 = vpop.xlane.xlu1 %2873 }
0x100b   : > { %5776 = vrsqrt.f32 %v2892_v25  ;;  %v2885_v36 = vmul.f32 0.03125, %v2871_v0  ;;  %v2886_v58 = vmul.f32 0.03125, %v2874_v42 }
0x100d   : > { %v5771_v5 = vpop.eup %5770  ;;  %v2893_v11 = vadd.f32 1e-05, %v2885_v36  ;;  %v2894_v63 = vadd.f32 1e-05, %v2886_v58 }
0x100e   : > { %v2905_v41 = vmul.f32 %v5771_v5, %v8219_v16  ;;  %v2877_v51 = vpop.xlane.xlu0 %2876  ;;  %v2880_v15 = vpop.xlane.xlu1 %2879 }
0x100f   : > { %v5773_v12 = vpop.eup %5772  ;;  %5778 = vrsqrt.f32 %v2893_v11  ;;  %v2887_v28 = vmul.f32 0.03125, %v2877_v51  ;;  %v2888_v47 = vmul.f32 0.03125, %v2880_v15 }
0x1010   : > { %v2906_v62 = vmul.f32 %v5773_v12, %v8222_v45  ;;  %5780 = vrsqrt.f32 %v2894_v63  ;;  %v2917_v50 = vmul.f32 %v4977_v13, %v2905_v41 }
0x1011   : > { %v5775_v31 = vpop.eup %5774  ;;  %v2895_v18 = vadd.f32 1e-05, %v2887_v28  ;;  %v2896_v33 = vadd.f32 1e-05, %v2888_v47  ;;  %v5621_v28 = vld [vmem:[%s9060_s1 + $0xb0] sm:$0xff]  }
0x1012   : > { %v2907_v23 = vmul.f32 %v5775_v31, %v8227_v3  ;;  %v2918_v16 = vmul.f32 %v4977_v13, %v2906_v62  ;;  %v2929_v57 = vadd.f32 %v4978_v20, %v2917_v50  ;;  %v4979_v47 = vld [vmem:[%s9061_s2 + $0x1b] ss:$0 sm:$0xff] }
0x1013   : > { %5782 = vrsqrt.f32 %v2895_v18 }
0x1014   : > { %5784 = vrsqrt.f32 %v2896_v33  ;;  %v2930_v59 = vadd.f32 %v4978_v20, %v2918_v16  ;;  %v2919_v43 = vmul.f32 %v4977_v13, %v2907_v23 }
0x1015   : > { %v5777_v38 = vpop.eup %5776 }
0x1016   : > { %v2908_v45 = vmul.f32 %v5777_v38, %v8236_v27  ;;  %v2941_v48 = vpack.c.bf16 %v2930_v59, %v2929_v57  ;;  %v2931_v24 = vadd.f32 %v4978_v20, %v2919_v43 }
0x1018   : > { %v2920_v34 = vmul.f32 %v4977_v13, %v2908_v45  ;;  %5347 = vmatprep.mubr.msk.bf16.mxu0 %vm9570_vm0, %v2941_v48 }
0x1019   : > { %v5779_v2 = vpop.eup %5778 }
0x101a   : > { %v5781_v61 = vpop.eup %5780  ;;  %v2932_v22 = vadd.f32 %v4978_v20, %v2920_v34  ;;  %v2909_v56 = vmul.f32 %v5779_v2, %v8245_v19 }
0x101b   : > { %v2910_v3 = vmul.f32 %v5781_v61, %v8240_v1 }
0x101c   : > { %v2942_v25 = vpack.c.bf16 %v2932_v22, %v2931_v24  ;;  %v2921_v0 = vmul.f32 %v4977_v13, %v2909_v56 }
0x101d   : > { %v5783_v42 = vpop.eup %5782  ;;  %v2922_v36 = vmul.f32 %v4977_v13, %v2910_v3 }
0x101e   : > { %v5785_v58 = vpop.eup %5784  ;;  %v2911_v5 = vmul.f32 %v5783_v42, %v8256_v54  ;;  %5348 = vmatmul.mubr.msk.bf16.vlgmr.msra.gmra.mrb[36].mxu0 %vm9584_vm13, %v2942_v25  ;;  %v2933_v27 = vadd.f32 %v4978_v20, %v2921_v0  ;;  %v5618_v54 = vld [vmem:[%s9060_s1 + $0x98] sm:$0xff]   ;;  %vm9597_vm13 = vmmov %vm9570_vm0 }
0x101f   : > { %v2912_v11 = vmul.f32 %v5785_v58, %v8251_v4  ;;  %v2934_v63 = vadd.f32 %v4978_v20, %v2922_v36  ;;  %5355 = vmatprep.subr.bf16.mxu1 %v5618_v54  ;;  %v5619_v4 = vld [vmem:[%s9060_s1 + $0xa0] sm:$0xff]  }
0x1020   : > { %v2923_v41 = vmul.f32 %v4977_v13, %v2911_v5  ;;  %5356 = vmatpush3.bf16.msra.mxu1 %v5618_v54 }
0x1021   : > { %v2943_v51 = vpack.c.bf16 %v2934_v63, %v2933_v27  ;;  %v2924_v15 = vmul.f32 %v4977_v13, %v2912_v11  ;;  %v5620_v13 = vld [vmem:[%s9060_s1 + $0xa8] sm:$0xff]   ;;  %5357 = vmatprep.subr.bf16.mxu1 %v5619_v4 }
0x1022   : > { %v2935_v12 = vadd.f32 %v4978_v20, %v2923_v41 }
0x1023   : > { %5351 = vmatprep.mubr.msk.bf16.mxu0 %vm9585_vm1, %v2943_v51  ;;  %v2936_v1 = vadd.f32 %v4978_v20, %v2924_v15  ;;  %vm9598_vm1 = vmmov %vm9570_vm0 }
0x1024   : > { %5358 = vmatpush3.bf16.msra.mxu1 %v5619_v4 }
0x1025   : > { %v2944_v19 = vpack.c.bf16 %v2936_v1, %v2935_v12  ;;  %5359 = vmatprep.subr.bf16.mxu1 %v5620_v13 }
0x1027   : > { %5352 = vmatmul.mubr.msk.bf16.gmra.mrb[40].mxu0 %vm9586_vm11, %v2944_v19  ;;  %vm9599_vm11 = vmmov %vm9570_vm0 }
0x1028   : > { %5360 = vmatpush3.bf16.msra.mxu1 %v5620_v13 }
0x1029   : > { %5361 = vmatprep.subr.bf16.mxu1 %v5621_v28 }
0x102c   : > { %5362 = vmatpush3.bf16.msra.mxu1 %v5621_v28 }
0x10f1   : > { %v5349_v62 = vpop.f32.mrb[36].mxu0 }
0x10f2   : > { %v8305_v50 = vadd.f32 %v5349_v62, %v4979_v47  ;;  %v3008_v31 = vpop.f32.mrb[37].mxu0 }
0x10f3   : > { %v8307_v20 = vadd.f32 %v4979_v47, %v3008_v31  ;;  %v5350_v18 = vpop.f32.mrb[38].mxu0 }
0x10f4   : > { %v3041_v33 = vmul.f32 %v8305_v50, %v8305_v50  ;;  %v8311_v23 = vadd.f32 %v5350_v18, %v4979_v47  ;;  %v3011_v16 = vpop.f32.mrb[39].mxu0 }
0x10f5   : > { %v3039_v57 = vmul.f32 %v8307_v20, %v8307_v20  ;;  %v8315_v59 = vadd.f32 %v4979_v47, %v3011_v16 }
0x10f6   : > { %v3049_v38 = vmul.f32 %v3041_v33, %v8305_v50  ;;  %v3042_v43 = vmul.f32 %v8311_v23, %v8311_v23 }
0x10f7   : > { %v3047_v45 = vmul.f32 %v3039_v57, %v8307_v20  ;;  %v3040_v48 = vmul.f32 %v8315_v59, %v8315_v59 }
0x10f8   : > { %v3057_v34 = vmul.f32 0.044715, %v3049_v38  ;;  %v3050_v2 = vmul.f32 %v3042_v43, %v8311_v23 }
0x10f9   : > { %v3055_v61 = vmul.f32 0.044715, %v3047_v45  ;;  %v3048_v24 = vmul.f32 %v3040_v48, %v8315_v59 }
0x10fa   : > { %v3065_v22 = vadd.f32 %v3057_v34, %v8305_v50  ;;  %v3058_v56 = vmul.f32 0.044715, %v3050_v2  ;;  %v5353_v3 = vpop.f32.mrb[40].mxu0 }
0x10fb   : > { %v3063_v25 = vadd.f32 %v3055_v61, %v8307_v20  ;;  %v3056_v0 = vmul.f32 0.044715, %v3048_v24  ;;  %v8327_v42 = vadd.f32 %v5353_v3, %v4979_v47  ;;  %v3024_v36 = vpop.f32.mrb[41].mxu0 }
0x10fc   : > { %v3073_v58 = vmul.f32 0.7978846, %v3065_v22  ;;  %v3066_v5 = vadd.f32 %v3058_v56, %v8311_v23  ;;  %v8330_v27 = vadd.f32 %v4979_v47, %v3024_v36  ;;  %v5354_v11 = vpop.f32.mrb[42].mxu0 }
0x10fd   : > { %v3071_v63 = vmul.f32 0.7978846, %v3063_v25  ;;  %v3064_v41 = vadd.f32 %v3056_v0, %v8315_v59  ;;  %v3045_v51 = vmul.f32 %v8327_v42, %v8327_v42  ;;  %v8335_v15 = vadd.f32 %v5354_v11, %v4979_v47  ;;  %v3027_v12 = vpop.f32.mrb[43].mxu0 }
0x10fe   : > { %5786 = vtanh.f32 %v3073_v58  ;;  %v3074_v1 = vmul.f32 0.7978846, %v3066_v5  ;;  %v3043_v19 = vmul.f32 %v8330_v27, %v8330_v27  ;;  %v3028_v54 = vadd.f32 %v4979_v47, %v3027_v12 }
0x10ff   : > { %5788 = vtanh.f32 %v3071_v63  ;;  %v3072_v4 = vmul.f32 0.7978846, %v3064_v41  ;;  %v3053_v13 = vmul.f32 %v3045_v51, %v8327_v42  ;;  %v3046_v28 = vmul.f32 %v8335_v15, %v8335_v15 }
0x1100   : > { %5790 = vtanh.f32 %v3074_v1  ;;  %v3051_v62 = vmul.f32 %v3043_v19, %v8330_v27  ;;  %v3044_v31 = vmul.f32 %v3028_v54, %v3028_v54 }
0x1101   : > { %5792 = vtanh.f32 %v3072_v4  ;;  %v3061_v18 = vmul.f32 0.044715, %v3053_v13  ;;  %v3054_v33 = vmul.f32 %v3046_v28, %v8335_v15 }
0x1102   : > { %v3059_v16 = vmul.f32 0.044715, %v3051_v62  ;;  %v3052_v57 = vmul.f32 %v3044_v31, %v3028_v54 }
0x1103   : > { %v3069_v38 = vadd.f32 %v3061_v18, %v8327_v42  ;;  %v3062_v47 = vmul.f32 0.044715, %v3054_v33 }
0x1104   : > { %v3067_v43 = vadd.f32 %v3059_v16, %v8330_v27  ;;  %v3060_v45 = vmul.f32 0.044715, %v3052_v57 }
0x1105   : > { %v3077_v48 = vmul.f32 0.7978846, %v3069_v38  ;;  %v3070_v34 = vadd.f32 %v3062_v47, %v8335_v15 }
0x1106   : > { %v3075_v2 = vmul.f32 0.7978846, %v3067_v43  ;;  %v3068_v61 = vadd.f32 %v3060_v45, %v3028_v54 }
0x1107   : > { %5794 = vtanh.f32 %v3077_v48  ;;  %v3078_v24 = vmul.f32 0.7978846, %v3070_v34 }
0x1108   : > { %v5787_v22 = vpop.eup %5786  ;;  %5796 = vtanh.f32 %v3075_v2  ;;  %v3076_v56 = vmul.f32 0.7978846, %v3068_v61 }
0x1109   : > { %v5789_v3 = vpop.eup %5788  ;;  %v3089_v25 = vadd.f32 1.0, %v5787_v22  ;;  %5798 = vtanh.f32 %v3078_v24 }
0x110a   : > { %v5791_v0 = vpop.eup %5790  ;;  %v3087_v36 = vadd.f32 1.0, %v5789_v3  ;;  %5800 = vtanh.f32 %v3076_v56  ;;  %v4994_v56 = vld [vmem:[%s9061_s2 + $0x1c] ss:$0 sm:$0xff] }
0x110b   : > { %v5793_v58 = vpop.eup %5792  ;;  %v3097_v5 = vmul.f32 0.5, %v3089_v25  ;;  %v3090_v11 = vadd.f32 1.0, %v5791_v0 }
0x110c   : > { %v3095_v63 = vmul.f32 0.5, %v3087_v36  ;;  %v3088_v41 = vadd.f32 1.0, %v5793_v58 }
0x110d   : > { %v3098_v51 = vmul.f32 0.5, %v3090_v11  ;;  %v3105_v1 = vmul.f32 %v3097_v5, %v8305_v50 }
0x110e   : > { %v3096_v12 = vmul.f32 0.5, %v3088_v41  ;;  %v3103_v4 = vmul.f32 %v3095_v63, %v8307_v20 }
0x110f   : > { %v3106_v19 = vmul.f32 %v3098_v51, %v8311_v23 }
0x1110   : > { %v3104_v13 = vmul.f32 %v3096_v12, %v8315_v59 }
0x1111   : > { %v5795_v28 = vpop.eup %5794  ;;  %v3120_v62 = vpack.c.bf16 %v3106_v19, %v3105_v1 }
0x1112   : > { %v5797_v31 = vpop.eup %5796  ;;  %v3093_v18 = vadd.f32 1.0, %v5795_v28  ;;  %v3119_v33 = vpack.c.bf16 %v3104_v13, %v3103_v4 }
0x1113   : > { %v5799_v16 = vpop.eup %5798  ;;  %v3091_v57 = vadd.f32 1.0, %v5797_v31 }
0x1114   : > { %v5801_v38 = vpop.eup %5800  ;;  %v3101_v47 = vmul.f32 0.5, %v3093_v18  ;;  %v3094_v43 = vadd.f32 1.0, %v5799_v16  ;;  %5363 = vmatprep.mubr.msk.bf16.mxu1 %vm1458_vm9, %v3119_v33 }
0x1115   : > { %v3099_v45 = vmul.f32 0.5, %v3091_v57  ;;  %v3092_v50 = vadd.f32 1.0, %v5801_v38  ;;  %5364 = vmatmul.mubr.msk.bf16.vlgmr.msra.gmra.mrb[44].mxu1 %vm1458_vm9, %v3120_v62 }
0x1116   : > { %v3102_v23 = vmul.f32 0.5, %v3094_v43  ;;  %v3109_v59 = vmul.f32 %v3101_v47, %v8327_v42 }
0x1117   : > { %v3100_v20 = vmul.f32 0.5, %v3092_v50  ;;  %v3107_v34 = vmul.f32 %v3099_v45, %v8330_v27 }
0x1118   : > { %v3110_v48 = vmul.f32 %v3102_v23, %v8335_v15 }
0x1119   : > { %v3108_v2 = vmul.f32 %v3100_v20, %v3028_v54 }
0x111a   : > { %v3122_v61 = vpack.c.bf16 %v3110_v48, %v3109_v59 }
0x111b   : > { %v3121_v24 = vpack.c.bf16 %v3108_v2, %v3107_v34 }
0x111d   : > { %5367 = vmatprep.mubr.msk.bf16.mxu1 %vm1458_vm9, %v3121_v24 }
0x111e   : > { %5368 = vmatmul.mubr.msk.bf16.gmra.mrb[48].mxu1 %vm1458_vm9, %v3122_v61 }
0x11e8   : > { %v5365_v22 = vpop.f32.mrb[44].mxu1 }
0x11e9   : > { %v3193_v3 = vpop.f32.mrb[45].mxu1  ;;  %v3226_v25 = vadd.f32 %v5365_v22, %v8183_v40 }
0x11ea   : > { %v3224_v42 = vadd.f32 %v3193_v3, %v8180_v55  ;;  %v5366_v15 = vpop.f32.mrb[46].mxu1 }
0x11eb   : > { %v3196_v0 = vpop.f32.mrb[47].mxu1  ;;  %v3227_v54 = vadd.f32 %v5366_v15, %v8192_v35  ;;  %v8367_v58 = vadd.f32 %v4994_v56, %v3226_v25 }
0x11ec   : > { %v8363_v27 = vadd.f32 %v4994_v56, %v3224_v42  ;;  %v3225_v36 = vadd.f32 %v3196_v0, %v8186_v39 }
0x11ed   : > { %v8373_v63 = vadd.f32 %v4994_v56, %v3227_v54  ;;  %v3297_v35 = vsel %vm9589_vm7, %v8367_v58, 0.0  ;;  %vm9602_vm7 = vmmov %vm9570_vm0 }
0x11ee   : > { %v8369_v5 = vadd.f32 %v4994_v56, %v3225_v36  ;;  %v3291_v11 = vsel %vm9587_vm5, %v8363_v27, 0.0  ;;  %vm9600_vm5 = vmmov %vm9570_vm0 }
0x11ef   : > { %3292 = vadd.xlane.f32.xlu0 %v3291_v11  ;;  %v3300_v19 = vsel %vm9590_vm15, %v8373_v63, 0.0  ;;  %vm9603_vm15 = vmmov %vm9570_vm0 }
0x11f0   : > { %v3294_v55 = vsel %vm9588_vm10, %v8369_v5, 0.0  ;;  %vm9601_vm10 = vmmov %vm9570_vm0 }
0x11f1   : > { %v5369_v40 = vpop.f32.mrb[48].mxu1  ;;  %3295 = vadd.xlane.f32.xlu1 %v3294_v55 }
0x11f2   : > { %v3209_v41 = vpop.f32.mrb[49].mxu1  ;;  %v3230_v39 = vadd.f32 %v5369_v40, %v8210_v8 }
0x11f3   : > { %v3228_v51 = vadd.f32 %v3209_v41, %v8200_v29  ;;  %v5370_v12 = vpop.f32.mrb[50].mxu1  ;;  %3298 = vadd.xlane.f32.xlu0 %v3297_v35 }
0x11f4   : > { %v3212_v1 = vpop.f32.mrb[51].mxu1  ;;  %v3231_v13 = vadd.f32 %v5370_v12, %v8206_v44  ;;  %v8387_v62 = vadd.f32 %v4994_v56, %v3230_v39 }
0x11f5   : > { %v8383_v4 = vadd.f32 %v4994_v56, %v3228_v51  ;;  %v3229_v28 = vadd.f32 %v3212_v1, %v8202_v7  ;;  %3301 = vadd.xlane.f32.xlu1 %v3300_v19 }
0x11f6   : > { %v8393_v8 = vadd.f32 %v4994_v56, %v3231_v13  ;;  %v3309_v44 = vsel %vm9593_vm12, %v8387_v62, 0.0 }
0x11f7   : > { %v8389_v31 = vadd.f32 %v4994_v56, %v3229_v28  ;;  %v3303_v29 = vsel %vm9591_vm14, %v8383_v4, 0.0  ;;  %vm9604_vm14 = vmmov %vm9570_vm0 }
0x11f8   : > { %3304 = vadd.xlane.f32.xlu0 %v3303_v29  ;;  %v3312_v7 = vsel %vm9594_vm6, %v8393_v8, 0.0 }
0x11f9   : > { %v3306_v18 = vsel %vm9592_vm8, %v8389_v31, 0.0  ;;  %vm9605_vm8 = vmmov %vm9570_vm0 }
0x11fa   : > { %3307 = vadd.xlane.f32.xlu1 %v3306_v18 }
0x11fc   : > { %3310 = vadd.xlane.f32.xlu0 %v3309_v44 }
0x11fe   : > { %3313 = vadd.xlane.f32.xlu1 %v3312_v7  ;;  %v5622_v7 = vld [vmem:[%s9060_s1 + $0xb8] sm:$0xff]  }
0x11ff   : > { %5371 = vmatprep.subr.bf16.mxu0 %v5622_v7 }
0x1200   : > { %5372 = vmatpush3.bf16.msra.mxu0 %v5622_v7  ;;  %v4996_v7 = vld [vmem:[%s9061_s2 + $0x1e] ss:$0 sm:$0xff] }
0x127c   : > { %v3293_v33 = vpop.xlane.xlu0 %3292 }
0x127d   : > { %v3315_v16 = vmul.f32 0.03125, %v3293_v33  ;;  %v5623_v33 = vld [vmem:[%s9060_s1 + $0xc0] sm:$0xff]  }
0x127e   : > { %v3296_v57 = vpop.xlane.xlu1 %3295  ;;  %5373 = vmatprep.subr.bf16.mxu0 %v5623_v33 }
0x127f   : > { %v8402_v38 = vsub.f32 %v8363_v27, %v3315_v16  ;;  %v3316_v47 = vmul.f32 0.03125, %v3296_v57  ;;  %5374 = vmatpush3.bf16.msra.mxu0 %v5623_v33 }
0x1280   : > { %v3299_v43 = vpop.xlane.xlu0 %3298 }
0x1281   : > { %v8405_v45 = vsub.f32 %v8369_v5, %v3316_v47  ;;  %v3317_v50 = vmul.f32 0.03125, %v3299_v43  ;;  %v3331_v23 = vmul.f32 %v8402_v38, %v8402_v38 }
0x1282   : > { %v3302_v20 = vpop.xlane.xlu1 %3301 }
0x1283   : > { %v8410_v59 = vsub.f32 %v8367_v58, %v3317_v50  ;;  %v3318_v48 = vmul.f32 0.03125, %v3302_v20  ;;  %v3339_v34 = vsel %vm9595_vm3, %v3331_v23, 0.0  ;;  %v3332_v2 = vmul.f32 %v8405_v45, %v8405_v45 }
0x1284   : > { %3340 = vadd.xlane.f32.xlu0 %v3339_v34 }
0x1285   : > { %v8416_v61 = vsub.f32 %v8373_v63, %v3318_v48  ;;  %v3305_v24 = vpop.xlane.xlu0 %3304  ;;  %v3342_v22 = vsel %vm9596_vm2, %v3332_v2, 0.0  ;;  %v3333_v56 = vmul.f32 %v8410_v59, %v8410_v59 }
0x1286   : > { %v3319_v3 = vmul.f32 0.03125, %v3305_v24  ;;  %3343 = vadd.xlane.f32.xlu1 %v3342_v22 }
0x1287   : > { %v3308_v25 = vpop.xlane.xlu1 %3307  ;;  %v3345_v42 = vsel %vm9570_vm0, %v3333_v56, 0.0  ;;  %v3334_v15 = vmul.f32 %v8416_v61, %v8416_v61 }
0x1288   : > { %v8425_v0 = vsub.f32 %v8383_v4, %v3319_v3  ;;  %v3320_v54 = vmul.f32 0.03125, %v3308_v25  ;;  %3346 = vadd.xlane.f32.xlu0 %v3345_v42 }
0x1289   : > { %v3311_v36 = vpop.xlane.xlu0 %3310  ;;  %v3348_v11 = vsel %vm9597_vm13, %v3334_v15, 0.0 }
0x128a   : > { %v8429_v55 = vsub.f32 %v8389_v31, %v3320_v54  ;;  %v3321_v40 = vmul.f32 0.03125, %v3311_v36  ;;  %3349 = vadd.xlane.f32.xlu1 %v3348_v11  ;;  %v3335_v41 = vmul.f32 %v8425_v0, %v8425_v0 }
0x128b   : > { %v3314_v35 = vpop.xlane.xlu1 %3313 }
0x128c   : > { %v8434_v39 = vsub.f32 %v8387_v62, %v3321_v40  ;;  %v3322_v51 = vmul.f32 0.03125, %v3314_v35  ;;  %v3351_v12 = vsel %vm9598_vm1, %v3335_v41, 0.0  ;;  %v3336_v1 = vmul.f32 %v8429_v55, %v8429_v55  ;;  %v4995_v41 = vld [vmem:[%s9061_s2 + $0x1d] ss:$0 sm:$0xff] }
0x128d   : > { %3352 = vadd.xlane.f32.xlu0 %v3351_v12 }
0x128e   : > { %v8440_v19 = vsub.f32 %v8393_v8, %v3322_v51  ;;  %v3354_v13 = vsel %vm9599_vm11, %v3336_v1, 0.0  ;;  %v3337_v28 = vmul.f32 %v8434_v39, %v8434_v39 }
0x128f   : > { %3355 = vadd.xlane.f32.xlu1 %v3354_v13 }
0x1290   : > { %v3357_v29 = vsel %vm9600_vm5, %v3337_v28, 0.0  ;;  %v3338_v18 = vmul.f32 %v8440_v19, %v8440_v19 }
0x1291   : > { %3358 = vadd.xlane.f32.xlu0 %v3357_v29 }
0x1292   : > { %v3360_v44 = vsel %vm9601_vm10, %v3338_v18, 0.0  ;;  %vm9610_vm10 = vmmov %vm9600_vm5 }
0x1293   : > { %3361 = vadd.xlane.f32.xlu1 %v3360_v44 }
0x1311   : > { %v3341_v16 = vpop.xlane.xlu0 %3340 }
0x1312   : > { %v3363_v57 = vmul.f32 0.03125, %v3341_v16 }
0x1313   : > { %v3344_v47 = vpop.xlane.xlu1 %3343 }
0x1314   : > { %v3371_v43 = vadd.f32 1e-05, %v3363_v57  ;;  %v3364_v50 = vmul.f32 0.03125, %v3344_v47 }
0x1315   : > { %v3347_v23 = vpop.xlane.xlu0 %3346 }
0x1316   : > { %5802 = vrsqrt.f32 %v3371_v43  ;;  %v3372_v20 = vadd.f32 1e-05, %v3364_v50  ;;  %v3365_v48 = vmul.f32 0.03125, %v3347_v23 }
0x1317   : > { %v3350_v34 = vpop.xlane.xlu1 %3349 }
0x1318   : > { %5804 = vrsqrt.f32 %v3372_v20  ;;  %v3373_v2 = vadd.f32 1e-05, %v3365_v48  ;;  %v3366_v24 = vmul.f32 0.03125, %v3350_v34 }
0x131a   : > { %5806 = vrsqrt.f32 %v3373_v2  ;;  %v3374_v22 = vadd.f32 1e-05, %v3366_v24  ;;  %v3353_v56 = vpop.xlane.xlu0 %3352 }
0x131b   : > { %v3367_v3 = vmul.f32 0.03125, %v3353_v56 }
0x131c   : > { %5808 = vrsqrt.f32 %v3374_v22  ;;  %v3356_v25 = vpop.xlane.xlu1 %3355 }
0x131d   : > { %v3375_v42 = vadd.f32 1e-05, %v3367_v3  ;;  %v3368_v15 = vmul.f32 0.03125, %v3356_v25 }
0x131e   : > { %v3359_v54 = vpop.xlane.xlu0 %3358 }
0x131f   : > { %5810 = vrsqrt.f32 %v3375_v42  ;;  %v3376_v36 = vadd.f32 1e-05, %v3368_v15  ;;  %v3369_v11 = vmul.f32 0.03125, %v3359_v54 }
0x1320   : > { %v5803_v40 = vpop.eup %5802  ;;  %v3362_v35 = vpop.xlane.xlu1 %3361 }
0x1321   : > { %v3387_v51 = vmul.f32 %v5803_v40, %v8402_v38  ;;  %5812 = vrsqrt.f32 %v3376_v36  ;;  %v3377_v12 = vadd.f32 1e-05, %v3369_v11  ;;  %v3370_v1 = vmul.f32 0.03125, %v3362_v35 }
0x1322   : > { %v5805_v13 = vpop.eup %5804 }
0x1323   : > { %v3388_v28 = vmul.f32 %v5805_v13, %v8405_v45  ;;  %5814 = vrsqrt.f32 %v3377_v12  ;;  %v3378_v29 = vadd.f32 1e-05, %v3370_v1  ;;  %v3399_v18 = vmul.f32 %v4995_v41, %v3387_v51 }
0x1324   : > { %v5807_v44 = vpop.eup %5806 }
0x1325   : > { %v3389_v33 = vmul.f32 %v5807_v44, %v8410_v59  ;;  %5816 = vrsqrt.f32 %v3378_v29  ;;  %v3400_v16 = vmul.f32 %v4995_v41, %v3388_v28  ;;  %v3411_v43 = vadd.f32 %v4996_v7, %v3399_v18 }
0x1326   : > { %v5809_v57 = vpop.eup %5808 }
0x1327   : > { %v3401_v38 = vmul.f32 %v4995_v41, %v3389_v33  ;;  %v3390_v47 = vmul.f32 %v5809_v57, %v8416_v61  ;;  %v3412_v50 = vadd.f32 %v4996_v7, %v3400_v16 }
0x1329   : > { %v5811_v23 = vpop.eup %5810  ;;  %v3402_v45 = vmul.f32 %v4995_v41, %v3390_v47  ;;  %v3423_v20 = vpack.c.bf16 %v3412_v50, %v3411_v43  ;;  %v3413_v2 = vadd.f32 %v4996_v7, %v3401_v38 }
0x132a   : > { %v3391_v48 = vmul.f32 %v5811_v23, %v8425_v0 }
0x132b   : > { %v5813_v34 = vpop.eup %5812  ;;  %v3414_v24 = vadd.f32 %v4996_v7, %v3402_v45  ;;  %5375 = vmatprep.mubr.msk.bf16.mxu0 %vm9602_vm7, %v3423_v20  ;;  %vm9611_vm7 = vmmov %vm9600_vm5 }
0x132c   : > { %v3392_v59 = vmul.f32 %v5813_v34, %v8429_v55  ;;  %v3403_v22 = vmul.f32 %v4995_v41, %v3391_v48 }
0x132d   : > { %v5815_v56 = vpop.eup %5814  ;;  %v3424_v3 = vpack.c.bf16 %v3414_v24, %v3413_v2 }
0x132e   : > { %v3393_v25 = vmul.f32 %v5815_v56, %v8434_v39  ;;  %v3404_v61 = vmul.f32 %v4995_v41, %v3392_v59  ;;  %v3415_v54 = vadd.f32 %v4996_v7, %v3403_v22  ;;  %v4997_v39 = vld [vmem:[%s9061_s2 + $0x1f] ss:$0 sm:$0xff] }
0x132f   : > { %v5817_v42 = vpop.eup %5816  ;;  %5376 = vmatmul.mubr.msk.bf16.vlgmr.msra.gmra.mrb[44].mxu0 %vm9603_vm15, %v3424_v3  ;;  %vm9612_vm15 = vmmov %vm9600_vm5 }
0x1330   : > { %v3394_v15 = vmul.f32 %v5817_v42, %v8440_v19  ;;  %v3416_v0 = vadd.f32 %v4996_v7, %v3404_v61  ;;  %v3405_v36 = vmul.f32 %v4995_v41, %v3393_v25 }
0x1332   : > { %v3425_v11 = vpack.c.bf16 %v3416_v0, %v3415_v54  ;;  %v3406_v40 = vmul.f32 %v4995_v41, %v3394_v15  ;;  %v3417_v35 = vadd.f32 %v4996_v7, %v3405_v36 }
0x1334   : > { %5379 = vmatprep.mubr.msk.bf16.mxu0 %vm9604_vm14, %v3425_v11  ;;  %v3418_v55 = vadd.f32 %v4996_v7, %v3406_v40 }
0x1336   : > { %v3426_v51 = vpack.c.bf16 %v3418_v55, %v3417_v35 }
0x1338   : > { %5380 = vmatmul.mubr.msk.bf16.gmra.mrb[48].mxu0 %vm9605_vm8, %v3426_v51 }
0x1402   : > { %v5377_v12 = vpop.f32.mrb[44].mxu0 }
0x1403   : > { %v3499_v1 = vadd.f32 %v5377_v12, %v4997_v39  ;;  %v3490_v13 = vpop.f32.mrb[45].mxu0  ;;  %v9606_v12 = vshra.s32 %v7911_v17, 3 }
0x1404   : > { %v3491_v19 = vadd.f32 %v4997_v39, %v3490_v13  ;;  %v5378_v28 = vpop.f32.mrb[46].mxu0  ;;  %v3245_v13 = vand.u32 1, %v9551_v32 }
0x1405   : > { %v3502_v29 = vadd.f32 %v5378_v28, %v4997_v39  ;;  %v3493_v18 = vpop.f32.mrb[47].mxu0  ;;  %v3523_v41 = vmul.f32 0.25, %v3499_v1  ;;  %v3255_v28 = vand.u32 1, %v9553_v52 }
0x1406   : > { %v3494_v44 = vadd.f32 %v4997_v39, %v3493_v18  ;;  %v3521_v7 = vmul.f32 0.25, %v3491_v19  ;;  %v9607_v18 = vand.u32 7, %v7911_v17  ;;  %v3251_v17 = vand.u32 1, %v9558_v9 }
0x1407   : > { %v3524_v33 = vmul.f32 0.25, %v3502_v29  ;;  %v8476_v16 = vpack.c.bf16 %v3502_v29, %v3499_v1  ;;  %v3277_v1 = vand.u32 1, %v9606_v12 }
0x1408   : > { %v3522_v57 = vmul.f32 0.25, %v3494_v44  ;;  %v8478_v38 = vpack.c.bf16 %v3494_v44, %v3491_v19  ;;  %v3246_v19 = vand.u32 1, %v9552_v37  ;;  %v3278_v44 = vand.u32 1, %v9607_v18  ;;  %v9608_v18 = vld [vmem:[#allocation33_spill] sm:$0xff] }
0x1409   : > { %v8480_v47 = vpack.c.bf16 %v3524_v33, %v3523_v41  ;;  %3543 = vrot.lane.b32.xlu1 %v8476_v16, %s5983_s8  ;;  %v3279_v41 = vmul.u32 2, %v3277_v1  ;;  %v3248_v33 = vand.u32 1, %v9554_v10  ;;  %v3256_v37 = vand.u32 1, %v9557_v6 }
0x140a   : > { %v8484_v43 = vpack.c.bf16 %v3522_v57, %v3521_v7  ;;  %3541 = vrot.lane.b32.xlu0 %v8478_v38, %s5983_s8  ;;  %v3253_v7 = vand.u32 1, %v9555_v14  ;;  %v3261_v57 = vmul.u32 2, %v3245_v13  ;;  %v3249_v6 = vand.u32 1, %v9560_v46 }
0x140b   : > { %v5381_v50 = vpop.f32.mrb[48].mxu0  ;;  %v8529_v32 = vadd.s32 %v3279_v41, %v3278_v44  ;;  %v3264_v52 = vmul.u32 2, %v3248_v33  ;;  %v3250_v44 = vand.u32 1, %v9608_v18  ;;  %v9609_v33 = vld [vmem:[#allocation34_spill] sm:$0xff] }
0x140c   : > { %v3515_v23 = vadd.f32 %v5381_v50, %v4997_v39  ;;  %v3506_v45 = vpop.f32.mrb[49].mxu0  ;;  %5391 = vmatprep.mubr.msk.bf16.mxu1 %vm1576_vm4, %v8484_v43  ;;  %v3262_v50 = vmul.u32 2, %v3246_v19  ;;  %v3252_v19 = vand.u32 1, %v9562_v30 }
0x140d   : > { %v3507_v20 = vadd.f32 %v4997_v39, %v3506_v45  ;;  %v5382_v48 = vpop.f32.mrb[50].mxu0  ;;  %v8532_v45 = vadd.s32 %v3261_v57, %v3253_v7  ;;  %v8539_v10 = vadd.s32 %v3264_v52, %v3256_v37  ;;  %v3258_v7 = vand.u32 1, %v9609_v33 }
0x140e   : > { %v3518_v34 = vadd.f32 %v5382_v48, %v4997_v39  ;;  %v3509_v2 = vpop.f32.mrb[51].mxu0  ;;  %v3527_v59 = vmul.f32 0.25, %v3515_v23  ;;  %v3267_v48 = vmul.u32 2, %v3251_v17  ;;  %v3266_v57 = vmul.u32 2, %v3250_v44 }
0x140f   : > { %v3510_v24 = vadd.f32 %v4997_v39, %v3509_v2  ;;  %v3525_v3 = vmul.f32 0.25, %v3507_v20  ;;  %v3247_v39 = vand.u32 1, %v9550_v49  ;;  %v3254_v49 = vand.u32 1, %v9556_v53 }
0x1410   : > { %v3528_v22 = vmul.f32 0.25, %v3518_v34  ;;  %v8490_v56 = vpack.c.bf16 %v3518_v34, %v3515_v23  ;;  %vm3281_vm6 = vcmp.eq.s32.totalorder %v8532_v45, %v8529_v32  ;;  %v3259_v53 = vand.u32 1, %v9559_v26 }
0x1411   : > { %v3526_v25 = vmul.f32 0.25, %v3510_v24  ;;  %v8492_v61 = vpack.c.bf16 %v3510_v24, %v3507_v20  ;;  %v3263_v29 = vmul.u32 2, %v3247_v39  ;;  %v8535_v20 = vadd.s32 %v3262_v50, %v3254_v49 }
0x1412   : > { %v8494_v42 = vpack.c.bf16 %v3528_v22, %v3527_v59  ;;  %vm3284_vm2 = vcmp.eq.s32.totalorder %v8539_v10, %v8529_v32  ;;  %v8559_v22 = vadd.s32 %v3267_v48, %v3259_v53  ;;  %v8596_v49 = vadd.s32 %v3266_v57, %v3258_v7 }
0x1413   : > { %v8496_v15 = vpack.c.bf16 %v3526_v25, %v3525_v3  ;;  %3545 = vrot.lane.b32.xlu1 %v8492_v61, %s5983_s8  ;;  %v8527_v23 = vadd.s32 %v3263_v29, %v3255_v28  ;;  %vm3282_vm3 = vcmp.eq.s32.totalorder %v8535_v20, %v8529_v32  ;;  %v3257_v3 = vand.u32 1, %v9561_v60 }
0x1414   : > { %v3265_v25 = vmul.u32 2, %v3249_v6  ;;  %vm3287_vm0 = vcmp.eq.s32.totalorder %v8559_v22, %v8529_v32  ;;  %v3260_v28 = vand.u32 1, %v9563_v21  ;;  %v3268_v29 = vmul.u32 2, %v3252_v19 }
0x1415   : > { %vm3283_vm12 = vcmp.eq.s32.totalorder %v8527_v23, %v8529_v32  ;;  %vm3286_vm11 = vcmp.eq.s32.totalorder %v8596_v49, %v8529_v32 }
0x1416   : > { %v8591_v41 = vadd.s32 %v3268_v29, %v3260_v28 }
0x1417   : > { %3547 = vrot.lane.b32.xlu1 %v8490_v56, %s5983_s8 }
0x1418   : > { %vm3288_vm1 = vcmp.eq.s32.totalorder %v8591_v41, %v8529_v32 }
0x147b   : > { %v3544_v36 = vpop.permute.xlu1 %3543 }
0x147c   : > { %v3542_v54 = vpop.permute.xlu0 %3541  ;;  %v3565_v11 = vsel %vm1576_vm4, %v3544_v36, 0 }
0x147d   : > { %v3562_v0 = vsel %vm1576_vm4, %v3542_v54, 0  ;;  %5503 = vmatprep.subr.msk.bf16.mxu1 %vm1576_vm4, %v3542_v54 }
0x147e   : > { %5384 = vmatpush3.bf16.xpose.msra.mxu1 %v3562_v0 }
0x147f   : > { %5504 = vmatprep.subr.msk.bf16.mxu1 %vm1576_vm4, %v3544_v36 }
0x1485   : > { %v3546_v40 = vpop.permute.xlu1 %3545 }
0x1486   : > { %5386 = vmatpush3.bf16.xpose.msra.mxu1 %v3565_v11  ;;  %v3568_v35 = vsel %vm1576_vm4, %v3546_v40, 0 }
0x1487   : > { %5505 = vmatprep.subr.msk.bf16.mxu1 %vm1576_vm4, %v3546_v40  ;;  %v8569_v40 = vadd.s32 %v3265_v25, %v3257_v3 }
0x1489   : > { %v3548_v55 = vpop.permute.xlu1 %3547  ;;  %vm3285_vm13 = vcmp.eq.s32.totalorder %v8569_v40, %v8529_v32 }
0x148a   : > { %v3571_v51 = vsel %vm1576_vm4, %v3548_v55, 0 }
0x148e   : > { %5388 = vmatpush3.bf16.xpose.msra.mxu1 %v3568_v35 }
0x148f   : > { %5506 = vmatprep.subr.msk.bf16.mxu1 %vm1576_vm4, %v3548_v55 }
0x1496   : > { %5390 = vmatpush3.bf16.xpose.msra.mxu1 %v3571_v51 }
0x149d   : > { %5392 = vmatmul.mubr.msk.bf16.vlgmr.msra.gmra.mrb[52].mxu1 %vm1576_vm4, %v8480_v47 }
0x149e   : > { %5395 = vmatprep.mubr.msk.bf16.mxu1 %vm1576_vm4, %v8496_v15 }
0x14a5   : > { %5396 = vmatmul.mubr.msk.bf16.gmra.mrb[56].mxu1 %vm1576_vm4, %v8494_v42 }
0x1570   : > { %v5393_v14 = vpop.f32.mrb[52].mxu1 }
0x1571   : > { %v3640_v9 = vsel %vm3283_vm12, %v5393_v14, -1e+30  ;;  %v3607_v34 = vpop.f32.mrb[53].mxu1 }
0x1572   : > { %v3652_v2 = vsel %vm1458_vm9, %v3640_v9, -inf  ;;  %v5394_v24 = vpop.f32.mrb[54].mxu1  ;;  %v3638_v59 = vsel %vm3281_vm6, %v3607_v34, -1e+30 }
0x1573   : > { %3653 = vmax.xlane.f32.xlu0 %v3652_v2  ;;  %v3610_v26 = vpop.f32.mrb[55].mxu1  ;;  %v3646_v0 = vsel %vm1458_vm9, %v3638_v59, -inf  ;;  %v3641_v36 = vsel %vm3284_vm2, %v5394_v24, -1e+30 }
0x1574   : > { %v3639_v46 = vsel %vm3282_vm3, %v3610_v26, -1e+30  ;;  %v3655_v60 = vsel %vm1458_vm9, %v3641_v36, -inf }
0x1575   : > { %v3649_v54 = vsel %vm1458_vm9, %v3639_v46, -inf }
0x1576   : > { %3650 = vmax.xlane.f32.xlu1 %v3649_v54 }
0x1577   : > { %3647 = vmax.xlane.f32.xlu0 %v3646_v0 }
0x1578   : > { %v5397_v11 = vpop.f32.mrb[56].mxu1 }
0x1579   : > { %v3623_v35 = vpop.f32.mrb[57].mxu1  ;;  %v3644_v51 = vsel %vm3287_vm0, %v5397_v11, -1e+30 }
0x157a   : > { %v5398_v55 = vpop.f32.mrb[58].mxu1  ;;  %v3664_v12 = vsel %vm1458_vm9, %v3644_v51, -inf  ;;  %v3642_v1 = vsel %vm3285_vm13, %v3623_v35, -1e+30 }
0x157b   : > { %3656 = vmax.xlane.f32.xlu0 %v3655_v60  ;;  %v3626_v39 = vpop.f32.mrb[59].mxu1  ;;  %v3658_v13 = vsel %vm1458_vm9, %v3642_v1, -inf  ;;  %v8601_v50 = vsel %vm3288_vm1, %v5398_v55, -1e+30 }
0x157c   : > { %v3667_v30 = vsel %vm1458_vm9, %v8601_v50, -inf  ;;  %v8610_v21 = vsel %vm3286_vm11, %v3626_v39, -1e+30 }
0x157d   : > { %v3661_v37 = vsel %vm1458_vm9, %v8610_v21, -inf }
0x157f   : > { %3665 = vmax.xlane.f32.xlu0 %v3664_v12 }
0x1583   : > { %3659 = vmax.xlane.f32.xlu0 %v3658_v13 }
0x1587   : > { %3740 = vrot.lane.b32.xlu1 %v8476_v16, %s5984_s9 }
0x158b   : > { %3742 = vrot.lane.b32.xlu1 %v8492_v61, %s5984_s9 }
0x1599   : > { %3738 = vrot.lane.b32.xlu0 %v8478_v38, %s5984_s9 }
0x15af   : > { %3668 = vmax.xlane.f32.xlu1 %v3667_v30 }
0x15b3   : > { %3662 = vmax.xlane.f32.xlu1 %v3661_v37 }
0x15c4   : > { %3744 = vrot.lane.b32.xlu1 %v8490_v56, %s5984_s9  ;;  %s5048_s9 = sshll.u32 %s6031_s16, 4  ;;  %s4824_s16 = scalar_lea.sflag [#allocation3], %s162_s6 }
0x15c5   : > { %s9017_s19 = scalar_lea.hbm %s9062_s3, %s5048_s9 }
0x1600   : > { %v3654_v52 = vpop.xlane.xlu0 %3653 }
0x1601   : > { %v3672_v17 = vsub.f32 %v3640_v9, %v3654_v52 }
0x1603   : > { %v3682_v14 = vmul.f32 1.442695, %v3672_v17  ;;  %v3651_v53 = vpop.xlane.xlu1 %3650 }
0x1604   : > { %v3648_v48 = vpop.xlane.xlu0 %3647  ;;  %v3671_v34 = vsub.f32 %v3639_v46, %v3651_v53 }
0x1605   : > { %5818 = vpow2.f32 %v3682_v14  ;;  %v3670_v6 = vsub.f32 %v3638_v59, %v3648_v48 }
0x1606   : > { %v3680_v3 = vmul.f32 1.442695, %v3671_v34 }
0x1607   : > { %v3678_v2 = vmul.f32 1.442695, %v3670_v6 }
0x1608   : > { %v3657_v24 = vpop.xlane.xlu0 %3656 }
0x1609   : > { %5820 = vpow2.f32 %v3678_v2  ;;  %v3673_v26 = vsub.f32 %v3641_v36, %v3657_v24  ;;  %v3741_v36 = vpop.permute.xlu1 %3740 }
0x160b   : > { %v3684_v25 = vmul.f32 1.442695, %v3673_v26 }
0x160c   : > { %v3666_v54 = vpop.xlane.xlu0 %3665 }
0x160d   : > { %5822 = vpow2.f32 %v3684_v25  ;;  %v3676_v0 = vsub.f32 %v3644_v51, %v3666_v54 }
0x160e   : > { %5824 = vpow2.f32 %v3680_v3 }
0x160f   : > { %v8616_v11 = vpop.eup %5818  ;;  %v3690_v35 = vmul.f32 1.442695, %v3676_v0 }
0x1610   : > { %v3660_v9 = vpop.xlane.xlu0 %3659  ;;  %v3700_v60 = vsel %vm1458_vm9, %v8616_v11, 0.0 }
0x1611   : > { %5826 = vpow2.f32 %v3690_v35  ;;  %v3674_v59 = vsub.f32 %v3642_v1, %v3660_v9  ;;  %3701 = vadd.xlane.f32.xlu0 %v3700_v60  ;;  %v3743_v1 = vpop.permute.xlu1 %3742 }
0x1613   : > { %v8620_v46 = vpop.eup %5820  ;;  %v3686_v55 = vmul.f32 1.442695, %v3674_v59 }
0x1614   : > { %v3739_v39 = vpop.permute.xlu0 %3738  ;;  %v3694_v12 = vsel %vm1458_vm9, %v8620_v46, 0.0 }
0x1615   : > { %5828 = vpow2.f32 %v3686_v55  ;;  %3695 = vadd.xlane.f32.xlu0 %v3694_v12  ;;  %5399 = vmatprep.subr.bf16.mxu0 %v3739_v39 }
0x1616   : > { %5400 = vmatpush3.bf16.msra.mxu0 %v3739_v39 }
0x1617   : > { %v5823_v51 = vpop.eup %5822  ;;  %5401 = vmatprep.subr.bf16.mxu0 %v3741_v36 }
0x1618   : > { %v3703_v13 = vsel %vm1458_vm9, %v5823_v51, 0.0  ;;  %v5825_v19 = vpop.eup %5824 }
0x1619   : > { %3704 = vadd.xlane.f32.xlu1 %v3703_v13  ;;  %v3697_v18 = vsel %vm1458_vm9, %v5825_v19, 0.0 }
0x161a   : > { %5402 = vmatpush3.bf16.msra.mxu0 %v3741_v36 }
0x161b   : > { %v8625_v28 = vpop.eup %5826  ;;  %5403 = vmatprep.subr.bf16.mxu0 %v3743_v1 }
0x161c   : > { %v3712_v29 = vsel %vm1458_vm9, %v8625_v28, 0.0 }
0x161d   : > { %3713 = vadd.xlane.f32.xlu0 %v3712_v29  ;;  %3698 = vadd.xlane.f32.xlu1 %v3697_v18 }
0x161e   : > { %5404 = vmatpush3.bf16.msra.mxu0 %v3743_v1 }
0x161f   : > { %v8630_v44 = vpop.eup %5828 }
0x1620   : > { %v3706_v33 = vsel %vm1458_vm9, %v8630_v44, 0.0 }
0x1621   : > { %3707 = vadd.xlane.f32.xlu0 %v3706_v33 }
0x162e   : > { %3841 = vrot.lane.b32.xlu1 %v8476_v16, %s5985_s10 }
0x1632   : > { %3843 = vrot.lane.b32.xlu1 %v8492_v61, %s5985_s10 }
0x163c   : > { %v3669_v7 = vpop.xlane.xlu1 %3668 }
0x163d   : > { %v3677_v57 = vsub.f32 %v8601_v50, %v3669_v7 }
0x163f   : > { %v3692_v30 = vmul.f32 1.442695, %v3677_v57 }
0x1640   : > { %v3663_v37 = vpop.xlane.xlu1 %3662 }
0x1641   : > { %5830 = vpow2.f32 %v3692_v30  ;;  %v3675_v52 = vsub.f32 %v8610_v21, %v3663_v37 }
0x1643   : > { %v3688_v17 = vmul.f32 1.442695, %v3675_v52 }
0x1644   : > { %v3745_v14 = vpop.permute.xlu1 %3744 }
0x1645   : > { %5405 = vmatprep.subr.bf16.mxu0 %v3745_v14  ;;  %5832 = vpow2.f32 %v3688_v17 }
0x1646   : > { %5406 = vmatpush3.bf16.msra.mxu0 %v3745_v14 }
0x164b   : > { %v5831_v53 = vpop.eup %5830 }
0x164c   : > { %v3715_v48 = vsel %vm1458_vm9, %v5831_v53, 0.0 }
0x164d   : > { %3716 = vadd.xlane.f32.xlu0 %v3715_v48 }
0x164f   : > { %v5833_v6 = vpop.eup %5832 }
0x1650   : > { %v3709_v34 = vsel %vm1458_vm9, %v5833_v6, 0.0 }
0x1656   : > { %3710 = vadd.xlane.f32.xlu1 %v3709_v34 }
0x1663   : > { %3839 = vrot.lane.b32.xlu0 %v8478_v38, %s5985_s10 }
0x1667   : > { %3831 = vrot.lane.b32.xlu0 %v8484_v43, %s5986_s11  ;;  %3845 = vrot.lane.b32.xlu1 %v8490_v56, %s5985_s10  ;;  %s163_s10 = scalar_lea.vmem [#allocation2], %s162_s6 }
0x166b   : > { %3835 = vrot.lane.b32.xlu0 %v8496_v15, %s5986_s11  ;;  %3833 = vrot.lane.b32.xlu1 %v8480_v47, %s5986_s11 }
0x166f   : > { %3837 = vrot.lane.b32.xlu1 %v8494_v42, %s5986_s11  ;;  %s4836_s11 = sshll.u32 %s163_s10, 4  ;;  %s9019_s11 = int_to_ptr.vmem [resolvable:$true] %s4836_s11 }
0x1670   : > { %s5916_s20 = scalar_lea.vmem %s9019_s11, 16  ;;  %p5923_p0 = scmp.lt.s32.totalorder %s9019_s11, %s5921_s25 }
0x1671   : > { %p5917_p11 = scmp.ne.s32.totalorder %s9019_s11, %s5916_s20  ;;  %p5924_p1 = scmp.lt.s32.totalorder %s5922_s27, %s5916_s20 }
0x1673   : > { %p5918_p12 = pnand %p5917_p11, %p6048_p5  ;;  %p5925_p2 = por %p5924_p1, %p5923_p0 }
0x1675   : > { %p5919_p13 = pneg %p5918_p12 }
0x1677   : > { %p5926_p3 = pnand %p5925_p2, %p5919_p13 }
0x169e   : > { %v3702_v50 = vpop.xlane.xlu0 %3701 }
0x16a2   : > { %v3696_v2 = vpop.xlane.xlu0 %3695 }
0x16a6   : > { %v3705_v21 = vpop.xlane.xlu1 %3704 }
0x16a7   : > { %5834 = vrcp.f32 %v3705_v21 }
0x16a8   : > { %5836 = vrcp.f32 %v3696_v2 }
0x16a9   : > { %5838 = vrcp.f32 %v3702_v50 }
0x16aa   : > { %v3699_v24 = vpop.xlane.xlu1 %3698  ;;  %v3714_v9 = vpop.xlane.xlu0 %3713 }
0x16ab   : > { %5840 = vrcp.f32 %v3699_v24 }
0x16ae   : > { %v3708_v60 = vpop.xlane.xlu0 %3707  ;;  %v3842_v59 = vpop.permute.xlu1 %3841 }
0x16b1   : > { %v5835_v43 = vpop.eup %5834 }
0x16b2   : > { %v5837_v26 = vpop.eup %5836  ;;  %v3729_v54 = vmul.f32 %v5835_v43, %v5823_v51  ;;  %v3844_v39 = vpop.permute.xlu1 %3843 }
0x16b3   : > { %v5839_v3 = vpop.eup %5838  ;;  %v3726_v15 = vmul.f32 %v5837_v26, %v8620_v46  ;;  %v3863_v46 = vsel %vm1576_vm4, %v3842_v59, 0  ;;  %v3866_v18 = vsel %vm1576_vm4, %v3844_v39, 0 }
0x16b4   : > { %v3728_v47 = vmul.f32 %v5839_v3, %v8616_v11 }
0x16b5   : > { %v5841_v25 = vpop.eup %5840 }
0x16b6   : > { %v3727_v0 = vmul.f32 %v5841_v25, %v5825_v19  ;;  %v3735_v42 = vpack.c.bf16 %v3729_v54, %v3728_v47 }
0x16b8   : > { %v3734_v35 = vpack.c.bf16 %v3727_v0, %v3726_v15 }
0x16ba   : > { %5407 = vmatprep.mubr.msk.bf16.mxu0 %vm1458_vm9, %v3734_v35 }
0x16bb   : > { %5408 = vmatmul.mubr.msk.bf16.vlgmr.msra.gmra.mrb[52].mxu0 %vm1458_vm9, %v3735_v42 }
0x16da   : > { %v3717_v55 = vpop.xlane.xlu0 %3716 }
0x16db   : > { %5842 = vrcp.f32 %v3717_v55 }
0x16dc   : > { %5844 = vrcp.f32 %v3708_v60 }
0x16dd   : > { %5846 = vrcp.f32 %v3714_v9 }
0x16de   : > { %v3840_v36 = vpop.permute.xlu0 %3839 }
0x16df   : > { %v3860_v12 = vsel %vm1576_vm4, %v3840_v36, 0  ;;  %5507 = vmatprep.subr.msk.bf16.mxu0 %vm1576_vm4, %v3840_v36 }
0x16e0   : > { %5416 = vmatpush3.bf16.xpose.msra.mxu0 %v3860_v12 }
0x16e1   : > { %5508 = vmatprep.subr.msk.bf16.mxu0 %vm1576_vm4, %v3842_v59 }
0x16e2   : > { %v3832_v17 = vpop.permute.xlu0 %3831 }
0x16e3   : > { %v3711_v11 = vpop.xlane.xlu1 %3710 }
0x16e4   : > { %5848 = vrcp.f32 %v3711_v11 }
0x16e5   : > { %v5843_v51 = vpop.eup %5842 }
0x16e6   : > { %v5845_v13 = vpop.eup %5844  ;;  %v3733_v29 = vmul.f32 %v5843_v51, %v5831_v53  ;;  %v3836_v53 = vpop.permute.xlu0 %3835 }
0x16e7   : > { %v5847_v19 = vpop.eup %5846  ;;  %v3730_v33 = vmul.f32 %v5845_v13, %v8630_v44  ;;  %v3846_v57 = vpop.permute.xlu1 %3845 }
0x16e8   : > { %5418 = vmatpush3.bf16.xpose.msra.mxu0 %v3863_v46  ;;  %v3732_v30 = vmul.f32 %v5847_v19, %v8625_v28  ;;  %v3869_v14 = vsel %vm1576_vm4, %v3846_v57, 0 }
0x16e9   : > { %5509 = vmatprep.subr.msk.bf16.mxu0 %vm1576_vm4, %v3844_v39 }
0x16ea   : > { %v3737_v52 = vpack.c.bf16 %v3733_v29, %v3732_v30 }
0x16eb   : > { %v3834_v44 = vpop.permute.xlu1 %3833 }
0x16ee   : > { %v5849_v1 = vpop.eup %5848 }
0x16ef   : > { %v3731_v7 = vmul.f32 %v5849_v1, %v5833_v6  ;;  %v3838_v28 = vpop.permute.xlu1 %3837 }
0x16f0   : > { %5420 = vmatpush3.bf16.xpose.msra.mxu0 %v3866_v18 }
0x16f1   : > { %5510 = vmatprep.subr.msk.bf16.mxu0 %vm1576_vm4, %v3846_v57  ;;  %v3736_v37 = vpack.c.bf16 %v3731_v7, %v3730_v33 }
0x16f3   : > { %5411 = vmatprep.mubr.msk.bf16.mxu0 %vm1458_vm9, %v3736_v37 }
0x16f4   : > { %5412 = vmatmul.mubr.msk.bf16.gmra.mrb[56].mxu0 %vm1458_vm9, %v3737_v52 }
0x16f5   : > { %5423 = vmatprep.mubr.msk.bf16.mxu0 %vm1576_vm4, %v3832_v17 }
0x16f8   : > { %5422 = vmatpush3.bf16.xpose.msra.mxu0 %v3869_v14 }
0x16ff   : > { %5424 = vmatmul.mubr.msk.bf16.vlgmr.msra.gmra.mrb[60].mxu0 %vm1576_vm4, %v3834_v44 }
0x1700   : > { %5427 = vmatprep.mubr.msk.bf16.mxu0 %vm1576_vm4, %v3836_v53 }
0x1707   : > { %5428 = vmatmul.mubr.msk.bf16.gmra.mrb[64].mxu0 %vm1576_vm4, %v3838_v28 }
0x178e   : > { %v8674_v48 = vpop.f32.mrb[52].mxu0 }
0x178f   : > { %v8676_v6 = vpop.f32.mrb[53].mxu0 }
0x1790   : > { %v8678_v34 = vpop.f32.mrb[54].mxu0 }
0x1791   : > { %v8680_v50 = vpop.f32.mrb[55].mxu0 }
0x17c7   : > { %v8682_v21 = vpop.f32.mrb[56].mxu0 }
0x17c8   : > { %v8684_v2 = vpop.f32.mrb[57].mxu0 }
0x17c9   : > { %v8686_v24 = vpop.f32.mrb[58].mxu0 }
0x17ca   : > { %v8688_v43 = vpop.f32.mrb[59].mxu0 }
0x17d2   : > { %v5425_v26 = vpop.f32.mrb[60].mxu0 }
0x17d3   : > { %v3905_v3 = vpop.f32.mrb[61].mxu0  ;;  %v3938_v47 = vsel %vm3283_vm12, %v5425_v26, -1e+30 }
0x17d4   : > { %v3936_v25 = vsel %vm3281_vm6, %v3905_v3, -1e+30  ;;  %v5426_v54 = vpop.f32.mrb[62].mxu0  ;;  %v3950_v9 = vsel %vm1458_vm9, %v3938_v47, -inf }
0x17d5   : > { %v3944_v15 = vsel %vm1458_vm9, %v3936_v25, -inf  ;;  %v3908_v0 = vpop.f32.mrb[63].mxu0  ;;  %v3939_v45 = vsel %vm3284_vm2, %v5426_v54, -1e+30 }
0x17d6   : > { %v3937_v35 = vsel %vm3282_vm3, %v3908_v0, -1e+30  ;;  %3945 = vmax.xlane.f32.xlu0 %v3944_v15  ;;  %v3953_v23 = vsel %vm1458_vm9, %v3939_v45, -inf }
0x17d7   : > { %v3947_v42 = vsel %vm1458_vm9, %v3937_v35, -inf }
0x17d8   : > { %3948 = vmax.xlane.f32.xlu1 %v3947_v42 }
0x17da   : > { %3951 = vmax.xlane.f32.xlu0 %v3950_v9  ;;  %v5429_v60 = vpop.f32.mrb[64].mxu0 }
0x17db   : > { %v3921_v59 = vpop.f32.mrb[65].mxu0  ;;  %v3942_v46 = vsel %vm3287_vm0, %v5429_v60, -1e+30 }
0x17dc   : > { %v5430_v55 = vpop.f32.mrb[66].mxu0  ;;  %v3940_v20 = vsel %vm3285_vm13, %v3921_v59, -1e+30  ;;  %v3962_v49 = vsel %vm1458_vm9, %v3942_v46, -inf }
0x17dd   : > { %v3924_v36 = vpop.f32.mrb[67].mxu0  ;;  %v3943_v10 = vsel %vm3288_vm1, %v5430_v55, -1e+30  ;;  %v3956_v11 = vsel %vm1458_vm9, %v3940_v20, -inf }
0x17de   : > { %v3941_v39 = vsel %vm3286_vm11, %v3924_v36, -1e+30  ;;  %3954 = vmax.xlane.f32.xlu0 %v3953_v23  ;;  %v3965_v40 = vsel %vm1458_vm9, %v3943_v10, -inf }
0x17df   : > { %v3959_v12 = vsel %vm1458_vm9, %v3941_v39, -inf }
0x17e0   : > { %3960 = vmax.xlane.f32.xlu1 %v3959_v12 }
0x17e2   : > { %3957 = vmax.xlane.f32.xlu0 %v3956_v11 }
0x17e4   : > { %3966 = vmax.xlane.f32.xlu1 %v3965_v40 }
0x17e6   : > { %3963 = vmax.xlane.f32.xlu0 %v3962_v49 }
0x1863   : > { %v3946_v51 = vpop.xlane.xlu0 %3945 }
0x1864   : > { %v3968_v13 = vsub.f32 %v3936_v25, %v3946_v51 }
0x1865   : > { %v3949_v19 = vpop.xlane.xlu1 %3948 }
0x1866   : > { %v3976_v29 = vmul.f32 1.442695, %v3968_v13  ;;  %v3969_v18 = vsub.f32 %v3937_v35, %v3949_v19 }
0x1867   : > { %v3952_v1 = vpop.xlane.xlu0 %3951 }
0x1868   : > { %v3970_v41 = vsub.f32 %v3938_v47, %v3952_v1  ;;  %v3978_v32 = vmul.f32 1.442695, %v3969_v18 }
0x186a   : > { %v3980_v33 = vmul.f32 1.442695, %v3970_v41 }
0x186b   : > { %v3955_v7 = vpop.xlane.xlu0 %3954 }
0x186c   : > { %5850 = vpow2.f32 %v3980_v33  ;;  %v3971_v57 = vsub.f32 %v3939_v45, %v3955_v7 }
0x186d   : > { %5852 = vpow2.f32 %v3976_v29  ;;  %v3961_v45 = vpop.xlane.xlu1 %3960 }
0x186e   : > { %v3982_v22 = vmul.f32 1.442695, %v3971_v57  ;;  %v3973_v55 = vsub.f32 %v3941_v39, %v3961_v45 }
0x186f   : > { %v3958_v30 = vpop.xlane.xlu0 %3957 }
0x1870   : > { %5854 = vpow2.f32 %v3982_v22  ;;  %v3972_v37 = vsub.f32 %v3940_v20, %v3958_v30  ;;  %v3986_v36 = vmul.f32 1.442695, %v3973_v55 }
0x1871   : > { %5856 = vpow2.f32 %v3978_v32  ;;  %v3967_v60 = vpop.xlane.xlu1 %3966 }
0x1872   : > { %v3984_v44 = vmul.f32 1.442695, %v3972_v37  ;;  %v3975_v59 = vsub.f32 %v3943_v10, %v3967_v60 }
0x1873   : > { %v3964_v52 = vpop.xlane.xlu0 %3963 }
0x1874   : > { %v3974_v17 = vsub.f32 %v3942_v46, %v3964_v52  ;;  %v3990_v23 = vmul.f32 1.442695, %v3975_v59 }
0x1876   : > { %v8722_v14 = vpop.eup %5850  ;;  %v3988_v53 = vmul.f32 1.442695, %v3974_v17 }
0x1877   : > { %v3998_v28 = vsel %vm1458_vm9, %v8722_v14, 0.0  ;;  %v5853_v26 = vpop.eup %5852 }
0x1878   : > { %5858 = vpow2.f32 %v3988_v53  ;;  %3999 = vadd.xlane.f32.xlu0 %v3998_v28  ;;  %v3992_v25 = vsel %vm1458_vm9, %v5853_v26, 0.0 }
0x1879   : > { %5860 = vpow2.f32 %v3984_v44 }
0x187a   : > { %v8726_v3 = vpop.eup %5854  ;;  %5862 = vpow2.f32 %v3990_v23 }
0x187b   : > { %v4001_v54 = vsel %vm1458_vm9, %v8726_v3, 0.0  ;;  %v5857_v15 = vpop.eup %5856  ;;  %5864 = vpow2.f32 %v3986_v36 }
0x187c   : > { %3993 = vadd.xlane.f32.xlu0 %v3992_v25  ;;  %4002 = vadd.xlane.f32.xlu1 %v4001_v54  ;;  %v3995_v0 = vsel %vm1458_vm9, %v5857_v15, 0.0 }
0x1880   : > { %3996 = vadd.xlane.f32.xlu1 %v3995_v0  ;;  %v5625_v0 = vld [vmem:[%s9060_s1 + $0xd0] sm:$0xff]  }
0x1882   : > { %v8732_v47 = vpop.eup %5858 }
0x1883   : > { %v4010_v35 = vsel %vm1458_vm9, %v8732_v47, 0.0  ;;  %v8736_v42 = vpop.eup %5860 }
0x1884   : > { %4011 = vadd.xlane.f32.xlu0 %v4010_v35  ;;  %v4004_v9 = vsel %vm1458_vm9, %v8736_v42, 0.0  ;;  %v5863_v20 = vpop.eup %5862 }
0x1885   : > { %v4013_v12 = vsel %vm1458_vm9, %v5863_v20, 0.0  ;;  %v5865_v11 = vpop.eup %5864 }
0x1888   : > { %4005 = vadd.xlane.f32.xlu0 %v4004_v9 }
0x1891   : > { %4038 = vrot.lane.b32.xlu1 %v8476_v16, %s5987_s17  ;;  %v4007_v16 = vsel %vm1458_vm9, %v5865_v11, 0.0 }
0x1895   : > { %4040 = vrot.lane.b32.xlu1 %v8492_v61, %s5987_s17 }
0x189e   : > { %4036 = vrot.lane.b32.xlu0 %v8478_v38, %s5987_s17 }
0x18b9   : > { %4014 = vadd.xlane.f32.xlu1 %v4013_v12 }
0x18bd   : > { %4008 = vadd.xlane.f32.xlu1 %v4007_v16 }
0x18ce   : > { %4042 = vrot.lane.b32.xlu1 %v8490_v56, %s5987_s17 }
0x1905   : > { %v4000_v61 = vpop.xlane.xlu0 %3999 }
0x1909   : > { %v3994_v38 = vpop.xlane.xlu0 %3993  ;;  %v4003_v46 = vpop.xlane.xlu1 %4002 }
0x190a   : > { %5866 = vrcp.f32 %v3994_v38 }
0x190d   : > { %v3997_v39 = vpop.xlane.xlu1 %3996 }
0x190e   : > { %5868 = vrcp.f32 %v3997_v39 }
0x190f   : > { %5870 = vrcp.f32 %v4003_v46 }
0x1910   : > { %5872 = vrcp.f32 %v4000_v61 }
0x1911   : > { %v4012_v10 = vpop.xlane.xlu0 %4011  ;;  %v4039_v13 = vpop.permute.xlu1 %4038 }
0x1914   : > { %v5867_v49 = vpop.eup %5866 }
0x1915   : > { %v4006_v40 = vpop.xlane.xlu0 %4005  ;;  %v4024_v1 = vmul.f32 %v5867_v49, %v5853_v26  ;;  %v4041_v56 = vpop.permute.xlu1 %4040 }
0x1918   : > { %v5869_v51 = vpop.eup %5868 }
0x1919   : > { %v4037_v19 = vpop.permute.xlu0 %4036  ;;  %v4025_v41 = vmul.f32 %v5869_v51, %v5857_v15  ;;  %v5871_v33 = vpop.eup %5870 }
0x191a   : > { %5431 = vmatprep.subr.bf16.mxu1 %v4037_v19  ;;  %v5873_v57 = vpop.eup %5872  ;;  %v4027_v32 = vmul.f32 %v5871_v33, %v8726_v3 }
0x191b   : > { %5432 = vmatpush3.bf16.msra.mxu1 %v4037_v19  ;;  %v4032_v29 = vpack.c.bf16 %v4025_v41, %v4024_v1  ;;  %v4026_v30 = vmul.f32 %v5873_v57, %v8722_v14  ;;  %v5624_v14 = vld [vmem:[%s9060_s1 + $0xc8] sm:$0xff]  }
0x191c   : > { %5433 = vmatprep.subr.bf16.mxu1 %v4039_v13 }
0x191d   : > { %5439 = vmatprep.mubr.msk.bf16.mxu1 %vm1458_vm9, %v4032_v29  ;;  %v4033_v37 = vpack.c.bf16 %v4027_v32, %v4026_v30 }
0x191f   : > { %5434 = vmatpush3.bf16.msra.mxu1 %v4039_v13 }
0x1920   : > { %5435 = vmatprep.subr.bf16.mxu1 %v4041_v56 }
0x1923   : > { %5436 = vmatpush3.bf16.msra.mxu1 %v4041_v56 }
0x1946   : > { %v4015_v18 = vpop.xlane.xlu1 %4014 }
0x1947   : > { %5874 = vrcp.f32 %v4015_v18 }
0x1948   : > { %5876 = vrcp.f32 %v4006_v40 }
0x1949   : > { %5878 = vrcp.f32 %v4012_v10 }
0x194a   : > { %v4009_v7 = vpop.xlane.xlu1 %4008 }
0x194b   : > { %5880 = vrcp.f32 %v4009_v7 }
0x194e   : > { %v4043_v22 = vpop.permute.xlu1 %4042 }
0x194f   : > { %5437 = vmatprep.subr.bf16.mxu1 %v4043_v22 }
0x1950   : > { %5438 = vmatpush3.bf16.msra.mxu1 %v4043_v22 }
0x1951   : > { %v5875_v52 = vpop.eup %5874  ;;  %5447 = vmatprep.subr.bf16.mxu1 %v5624_v14 }
0x1952   : > { %v5877_v17 = vpop.eup %5876  ;;  %v4031_v28 = vmul.f32 %v5875_v52, %v5863_v20 }
0x1953   : > { %5440 = vmatmul.mubr.msk.bf16.vlgmr.msra.gmra.mrb[60].mxu1 %vm1458_vm9, %v4033_v37  ;;  %v5879_v44 = vpop.eup %5878  ;;  %v4028_v26 = vmul.f32 %v5877_v17, %v8736_v42 }
0x1954   : > { %v4030_v54 = vmul.f32 %v5879_v44, %v8732_v47  ;;  %5448 = vmatpush3.bf16.msra.mxu1 %v5624_v14 }
0x1955   : > { %v5881_v53 = vpop.eup %5880  ;;  %5449 = vmatprep.subr.bf16.mxu1 %v5625_v0 }
0x1956   : > { %v4029_v25 = vmul.f32 %v5881_v53, %v5865_v11  ;;  %v4035_v3 = vpack.c.bf16 %v4031_v28, %v4030_v54 }
0x1958   : > { %v4034_v15 = vpack.c.bf16 %v4029_v25, %v4028_v26  ;;  %5450 = vmatpush3.bf16.msra.mxu1 %v5625_v0 }
0x195a   : > { %5443 = vmatprep.mubr.msk.bf16.mxu1 %vm1458_vm9, %v4034_v15 }
0x195b   : > { %5444 = vmatmul.mubr.msk.bf16.gmra.mrb[64].mxu1 %vm1458_vm9, %v4035_v3 }
0x1a26   : > { %v5441_v35 = vpop.f32.mrb[60].mxu1 }
0x1a27   : > { %v4094_v47 = vpop.f32.mrb[61].mxu1 }
0x1a28   : > { %v5442_v42 = vpop.f32.mrb[62].mxu1 }
0x1a29   : > { %v5584_v9 = vpack.i.bf16 %v5442_v42, %v5441_v35  ;;  %v4097_v45 = vpop.f32.mrb[63].mxu1 }
0x1a2a   : > { %v5579_v60 = vpack.i.bf16 %v4097_v45, %v4094_v47 }
0x1a2b   : > { %5585 = vrot.lane.b32.xlu1 %v5584_v9, %s5988_s26 }
0x1a2c   : > { %5580 = vrot.lane.b32.xlu0 %v5579_v60, %s5988_s26 }
0x1a2e   : > { %v5445_v59 = vpop.f32.mrb[64].mxu1 }
0x1a2f   : > { %v4110_v55 = vpop.f32.mrb[65].mxu1 }
0x1a30   : > { %v5446_v23 = vpop.f32.mrb[66].mxu1 }
0x1a31   : > { %v5594_v36 = vpack.i.bf16 %v5446_v23, %v5445_v59  ;;  %v4113_v20 = vpop.f32.mrb[67].mxu1 }
0x1a32   : > { %v5589_v12 = vpack.i.bf16 %v4113_v20, %v4110_v55 }
0x1a33   : > { %5595 = vrot.lane.b32.xlu1 %v5594_v36, %s5988_s26 }
0x1a34   : > { %5590 = vrot.lane.b32.xlu0 %v5589_v12, %s5988_s26 }
0x1a9d   : > { %v5586_v11 = vpop.permute.xlu1 %5585 }
0x1a9e   : > { %v5588_v16 = vunpack.i.h.bf16 %v5586_v11  ;;  %v5587_v61 = vunpack.i.l.bf16 %v5586_v11  ;;  %v5581_v38 = vpop.permute.xlu0 %5580 }
0x1a9f   : > { %v5583_v46 = vunpack.i.h.bf16 %v5581_v38  ;;  %v5582_v39 = vunpack.i.l.bf16 %v5581_v38 }
0x1aa0   : > { %v4160_v10 = vsel %vm1576_vm4, %v8678_v34, %v5588_v16  ;;  %v4159_v40 = vsel %vm1576_vm4, %v8674_v48, %v5587_v61 }
0x1aa1   : > { %v4170_v49 = vpack.c.bf16 %v4160_v10, %v4159_v40  ;;  %v4158_v51 = vsel %vm1576_vm4, %v8680_v50, %v5583_v46  ;;  %v4157_v13 = vsel %vm1576_vm4, %v8676_v6, %v5582_v39 }
0x1aa2   : > { %v4169_v19 = vpack.c.bf16 %v4158_v51, %v4157_v13 }
0x1aa4   : > { %5451 = vmatprep.mubr.msk.bf16.mxu1 %vm9600_vm5, %v4169_v19 }
0x1aa5   : > { %5452 = vmatmul.mubr.msk.bf16.vlgmr.msra.gmra.mrb[68].mxu1 %vm9610_vm10, %v4170_v49  ;;  %v5596_v1 = vpop.permute.xlu1 %5595 }
0x1aa6   : > { %v5598_v41 = vunpack.i.h.bf16 %v5596_v1  ;;  %v5597_v29 = vunpack.i.l.bf16 %v5596_v1  ;;  %v5591_v56 = vpop.permute.xlu0 %5590 }
0x1aa7   : > { %v5593_v34 = vunpack.i.h.bf16 %v5591_v56  ;;  %v5592_v18 = vunpack.i.l.bf16 %v5591_v56 }
0x1aa8   : > { %v4164_v48 = vsel %vm1576_vm4, %v8686_v24, %v5598_v41  ;;  %v4163_v50 = vsel %vm1576_vm4, %v8682_v21, %v5597_v29  ;;  %v5026_v24 = vld [vmem:[%s9061_s2 + $0x20] ss:$0 sm:$0xff] }
0x1aa9   : > { %v4172_v33 = vpack.c.bf16 %v4164_v48, %v4163_v50  ;;  %v4162_v6 = vsel %vm1576_vm4, %v8688_v43, %v5593_v34  ;;  %v4161_v7 = vsel %vm1576_vm4, %v8684_v2, %v5592_v18  ;;  %vm9613_vm4 = vmmov %vm9600_vm5 }
0x1aaa   : > { %v4171_v57 = vpack.c.bf16 %v4162_v6, %v4161_v7  ;;  %vm9614_vm14 = vmmov %vm9613_vm4 }
0x1aab   : > { %vm9615_vm8 = vmmov %vm9613_vm4 }
0x1aac   : > { %5455 = vmatprep.mubr.msk.bf16.mxu1 %vm9611_vm7, %v4171_v57  ;;  %vm9616_vm12 = vmmov %vm9613_vm4 }
0x1aad   : > { %5456 = vmatmul.mubr.msk.bf16.gmra.mrb[72].mxu1 %vm9612_vm15, %v4172_v33  ;;  %vm9617_vm6 = vmmov %vm9613_vm4 }
0x1aae   : > { %vm9618_vm3 = vmmov %vm9613_vm4 }
0x1aaf   : > { %vm9619_vm2 = vmmov %vm9618_vm3 }
0x1ab0   : > { %vm9620_vm0 = vmmov %vm9619_vm2 }
0x1ab1   : > { %vm9621_vm13 = vmmov %vm9620_vm0 }
0x1ab2   : > { %vm9622_vm1 = vmmov %vm9620_vm0 }
0x1ab3   : > { %vm9623_vm11 = vmmov %vm9620_vm0 }
0x1ab4   : > { %vm9624_vm5 = vmmov %vm9620_vm0 }
0x1ab5   : > { %vm9625_vm10 = vmmov %vm9620_vm0 }
0x1ab6   : > { %vm9626_vm7 = vmmov %vm9620_vm0 }
0x1ab7   : > { %vm9627_vm15 = vmmov %vm9620_vm0 }
0x1b78   : > { %v5453_v32 = vpop.f32.mrb[68].mxu1 }
0x1b79   : > { %v4231_v22 = vpop.f32.mrb[69].mxu1  ;;  %v4264_v21 = vadd.f32 %v5453_v32, %v8367_v58 }
0x1b7a   : > { %v4262_v30 = vadd.f32 %v4231_v22, %v8363_v27  ;;  %v5454_v37 = vpop.f32.mrb[70].mxu1 }
0x1b7b   : > { %v4234_v43 = vpop.f32.mrb[71].mxu1  ;;  %v8796_v17 = vadd.f32 %v5026_v24, %v4264_v21  ;;  %v4265_v44 = vadd.f32 %v5454_v37, %v8373_v63 }
0x1b7c   : > { %v8793_v52 = vadd.f32 %v5026_v24, %v4262_v30  ;;  %v4263_v2 = vadd.f32 %v4234_v43, %v8369_v5 }
0x1b7d   : > { %v8805_v25 = vadd.f32 %v5026_v24, %v4265_v44  ;;  %v4291_v63 = vsel %vm9615_vm8, %v8796_v17, 0.0  ;;  %vm9631_vm8 = vmmov %vm9620_vm0 }
0x1b7e   : > { %v8799_v53 = vadd.f32 %v5026_v24, %v4263_v2  ;;  %v4285_v28 = vsel %vm9613_vm4, %v8793_v52, 0.0  ;;  %vm9628_vm4 = vmmov %vm9620_vm0 }
0x1b7f   : > { %4286 = vadd.xlane.f32.xlu0 %v4285_v28  ;;  %v4294_v42 = vsel %vm9616_vm12, %v8805_v25, 0.0  ;;  %v5626_v28 = vld [vmem:[%s9060_s1 + $0xd8] sm:$0xff]   ;;  %vm9632_vm12 = vmmov %vm9620_vm0 }
0x1b80   : > { %v5457_v26 = vpop.f32.mrb[72].mxu1  ;;  %v4288_v27 = vsel %vm9614_vm14, %v8799_v53, 0.0  ;;  %5459 = vmatprep.subr.bf16.mxu0 %v5626_v28  ;;  %vm9630_vm14 = vmmov %vm9620_vm0 }
0x1b81   : > { %4289 = vadd.xlane.f32.xlu1 %v4288_v27  ;;  %v4247_v58 = vpop.f32.mrb[73].mxu1  ;;  %v4268_v0 = vadd.f32 %v5457_v26, %v8387_v62  ;;  %5460 = vmatpush3.bf16.msra.mxu0 %v5626_v28  ;;  %v5627_v26 = vld [vmem:[%s9060_s1 + $0xe0] sm:$0xff]   ;;  %v9629_v27 = vmov 0.0  }
0x1b82   : > { %v4266_v5 = vadd.f32 %v4247_v58, %v8383_v4  ;;  %v5458_v54 = vpop.f32.mrb[74].mxu1  ;;  %5461 = vmatprep.subr.bf16.mxu0 %v5627_v26 }
0x1b83   : > { %4292 = vadd.xlane.f32.xlu0 %v4291_v63  ;;  %v4250_v15 = vpop.f32.mrb[75].mxu1  ;;  %v4269_v3 = vadd.f32 %v5458_v54, %v8393_v8  ;;  %v8823_v45 = vadd.f32 %v5026_v24, %v4268_v0 }
0x1b84   : > { %v4267_v14 = vadd.f32 %v4250_v15, %v8389_v31  ;;  %v8813_v35 = vadd.f32 %v5026_v24, %v4266_v5 }
0x1b85   : > { %v8819_v4 = vadd.f32 %v5026_v24, %v4269_v3  ;;  %v4303_v8 = vsel %vm9620_vm0, %v8823_v45, 0.0  ;;  %5462 = vmatpush3.bf16.msra.mxu0 %v5627_v26 }
0x1b86   : > { %v8815_v47 = vadd.f32 %v5026_v24, %v4267_v14  ;;  %v4297_v31 = vsel %vm9618_vm3, %v8813_v35, 0.0  ;;  %5487 = vmatprep.subr.bf16.mxu0 %v9629_v27  ;;  %vm9634_vm3 = vmmov 0  }
0x1b87   : > { %4295 = vadd.xlane.f32.xlu0 %v4294_v42  ;;  %v4306_v62 = vsel %vm9619_vm2, %v8819_v4, 0.0  ;;  %vm9636_vm2 = vmmov %vm9620_vm0 }
0x1b88   : > { %v4300_v9 = vsel %vm9617_vm6, %v8815_v47, 0.0  ;;  %vm9633_vm6 = vmmov %vm9620_vm0 }
0x1b89   : > { %4301 = vadd.xlane.f32.xlu1 %v4300_v9 }
0x1b8b   : > { %4298 = vadd.xlane.f32.xlu0 %v4297_v31 }
0x1b8d   : > { %4307 = vadd.xlane.f32.xlu1 %v4306_v62 }
0x1b8f   : > { %4304 = vadd.xlane.f32.xlu0 %v4303_v8 }
0x1c0c   : > { %v4287_v60 = vpop.xlane.xlu0 %4286 }
0x1c0d   : > { %v4309_v59 = vmul.f32 0.03125, %v4287_v60 }
0x1c0e   : > { %v4290_v55 = vpop.xlane.xlu1 %4289 }
0x1c0f   : > { %v8832_v23 = vsub.f32 %v8793_v52, %v4309_v59  ;;  %v4310_v36 = vmul.f32 0.03125, %v4290_v55 }
0x1c10   : > { %v4293_v20 = vpop.xlane.xlu0 %4292 }
0x1c11   : > { %v8835_v12 = vsub.f32 %v8799_v53, %v4310_v36  ;;  %v4311_v11 = vmul.f32 0.03125, %v4293_v20  ;;  %v4325_v16 = vmul.f32 %v8832_v23, %v8832_v23  ;;  %v5027_v20 = vld [vmem:[%s9061_s2 + $0x21] ss:$0 sm:$0xff] }
0x1c13   : > { %v8840_v61 = vsub.f32 %v8796_v17, %v4311_v11  ;;  %v4333_v38 = vsel %vm9621_vm13, %v4325_v16, 0.0  ;;  %v4326_v46 = vmul.f32 %v8835_v12, %v8835_v12  ;;  %vm9637_vm13 = vmmov %vm9620_vm0 }
0x1c14   : > { %v4296_v39 = vpop.xlane.xlu0 %4295  ;;  %4334 = vadd.xlane.f32.xlu0 %v4333_v38 }
0x1c15   : > { %v4312_v10 = vmul.f32 0.03125, %v4296_v39  ;;  %v4336_v40 = vsel %vm9622_vm1, %v4326_v46, 0.0  ;;  %v4327_v49 = vmul.f32 %v8840_v61, %v8840_v61  ;;  %vm9638_vm1 = vmmov %vm9620_vm0 }
0x1c16   : > { %4337 = vadd.xlane.f32.xlu1 %v4336_v40  ;;  %v4302_v51 = vpop.xlane.xlu1 %4301 }
0x1c17   : > { %v8849_v13 = vsub.f32 %v8805_v25, %v4312_v10  ;;  %v4314_v19 = vmul.f32 0.03125, %v4302_v51  ;;  %v4339_v1 = vsel %vm9623_vm11, %v4327_v49, 0.0  ;;  %vm9639_vm11 = vmmov %vm9620_vm0 }
0x1c18   : > { %4340 = vadd.xlane.f32.xlu0 %v4339_v1  ;;  %v4299_v41 = vpop.xlane.xlu0 %4298 }
0x1c19   : > { %v8853_v29 = vsub.f32 %v8815_v47, %v4314_v19  ;;  %v4313_v56 = vmul.f32 0.03125, %v4299_v41  ;;  %v4328_v34 = vmul.f32 %v8849_v13, %v8849_v13  ;;  %v5028_v41 = vld [vmem:[%s9061_s2 + $0x22] ss:$0 sm:$0xff] }
0x1c1a   : > { %v4308_v18 = vpop.xlane.xlu1 %4307 }
0x1c1b   : > { %v8858_v48 = vsub.f32 %v8813_v35, %v4313_v56  ;;  %v4316_v50 = vmul.f32 0.03125, %v4308_v18  ;;  %v4342_v33 = vsel %vm9624_vm5, %v4328_v34, 0.0  ;;  %v4330_v6 = vmul.f32 %v8853_v29, %v8853_v29  ;;  %vm9640_vm5 = vmmov %vm9620_vm0 }
0x1c1c   : > { %v4305_v7 = vpop.xlane.xlu0 %4304  ;;  %4343 = vadd.xlane.f32.xlu1 %v4342_v33 }
0x1c1d   : > { %v8864_v57 = vsub.f32 %v8819_v4, %v4316_v50  ;;  %v4315_v32 = vmul.f32 0.03125, %v4305_v7  ;;  %v4329_v24 = vmul.f32 %v8858_v48, %v8858_v48  ;;  %v4348_v30 = vsel %vm9626_vm7, %v4330_v6, 0.0  ;;  %vm9642_vm7 = vmmov %vm9620_vm0 }
0x1c1f   : > { %v8869_v22 = vsub.f32 %v8823_v45, %v4315_v32  ;;  %v4345_v21 = vsel %vm9625_vm10, %v4329_v24, 0.0  ;;  %v4332_v37 = vmul.f32 %v8864_v57, %v8864_v57  ;;  %vm9641_vm10 = vmmov %vm9620_vm0 }
0x1c20   : > { %4346 = vadd.xlane.f32.xlu0 %v4345_v21  ;;  %4349 = vadd.xlane.f32.xlu1 %v4348_v30 }
0x1c21   : > { %v4331_v43 = vmul.f32 %v8869_v22, %v8869_v22  ;;  %v4354_v44 = vsel %vm9628_vm4, %v4332_v37, 0.0  ;;  %vm9644_vm4 = vmmov %vm9620_vm0 }
0x1c23   : > { %v4351_v2 = vsel %vm9627_vm15, %v4331_v43, 0.0  ;;  %vm9643_vm15 = vmmov %vm9620_vm0 }
0x1c24   : > { %4352 = vadd.xlane.f32.xlu0 %v4351_v2  ;;  %4355 = vadd.xlane.f32.xlu1 %v4354_v44 }
0x1ca1   : > { %v4335_v58 = vpop.xlane.xlu0 %4334 }
0x1ca2   : > { %v4357_v5 = vmul.f32 0.03125, %v4335_v58 }
0x1ca3   : > { %v4338_v54 = vpop.xlane.xlu1 %4337 }
0x1ca4   : > { %v4365_v63 = vadd.f32 1e-05, %v4357_v5  ;;  %v4358_v15 = vmul.f32 0.03125, %v4338_v54 }
0x1ca5   : > { %v4341_v3 = vpop.xlane.xlu0 %4340 }
0x1ca6   : > { %5882 = vrsqrt.f32 %v4365_v63  ;;  %v4366_v14 = vadd.f32 1e-05, %v4358_v15  ;;  %v4359_v0 = vmul.f32 0.03125, %v4341_v3 }
0x1ca8   : > { %5884 = vrsqrt.f32 %v4366_v14  ;;  %v4367_v42 = vadd.f32 1e-05, %v4359_v0 }
0x1ca9   : > { %v4344_v9 = vpop.xlane.xlu1 %4343 }
0x1caa   : > { %5886 = vrsqrt.f32 %v4367_v42  ;;  %v4360_v31 = vmul.f32 0.03125, %v4344_v9  ;;  %v5630_v9 = vld [vmem:[%s9060_s1 + $0xf8] sm:$0xff]  }
0x1cac   : > { %v4368_v62 = vadd.f32 1e-05, %v4360_v31  ;;  %v5631_v31 = vld [vmem:[%s9060_s1 + $0x100] sm:$0xff]  }
0x1cad   : > { %v4347_v8 = vpop.xlane.xlu0 %4346  ;;  %v4350_v60 = vpop.xlane.xlu1 %4349 }
0x1cae   : > { %5888 = vrsqrt.f32 %v4368_v62  ;;  %v4361_v59 = vmul.f32 0.03125, %v4347_v8  ;;  %v4362_v55 = vmul.f32 0.03125, %v4350_v60  ;;  %v5029_v62 = vld [vmem:[%s9061_s2 + $0x23] ss:$0 sm:$0xff] }
0x1cb0   : > { %v5883_v36 = vpop.eup %5882  ;;  %v4369_v11 = vadd.f32 1e-05, %v4361_v59  ;;  %v4370_v16 = vadd.f32 1e-05, %v4362_v55 }
0x1cb1   : > { %v4381_v38 = vmul.f32 %v5883_v36, %v8832_v23  ;;  %v4353_v46 = vpop.xlane.xlu0 %4352  ;;  %v4356_v39 = vpop.xlane.xlu1 %4355 }
0x1cb2   : > { %v5885_v10 = vpop.eup %5884  ;;  %5890 = vrsqrt.f32 %v4369_v11  ;;  %v4363_v40 = vmul.f32 0.03125, %v4353_v46  ;;  %v4364_v49 = vmul.f32 0.03125, %v4356_v39 }
0x1cb3   : > { %v4382_v51 = vmul.f32 %v5885_v10, %v8835_v12  ;;  %5892 = vrsqrt.f32 %v4370_v16  ;;  %v4393_v19 = vmul.f32 %v5027_v20, %v4381_v38 }
0x1cb4   : > { %v5887_v1 = vpop.eup %5886  ;;  %v4371_v56 = vadd.f32 1e-05, %v4363_v40  ;;  %v4372_v34 = vadd.f32 1e-05, %v4364_v49 }
0x1cb5   : > { %v4383_v18 = vmul.f32 %v5887_v1, %v8840_v61  ;;  %v4394_v23 = vmul.f32 %v5027_v20, %v4382_v51  ;;  %v4405_v50 = vadd.f32 %v5028_v41, %v4393_v19 }
0x1cb6   : > { %5894 = vrsqrt.f32 %v4371_v56 }
0x1cb7   : > { %5896 = vrsqrt.f32 %v4372_v34  ;;  %v4406_v33 = vadd.f32 %v5028_v41, %v4394_v23  ;;  %v4395_v7 = vmul.f32 %v5027_v20, %v4383_v18 }
0x1cb8   : > { %v5889_v6 = vpop.eup %5888 }
0x1cb9   : > { %v4384_v12 = vmul.f32 %v5889_v6, %v8849_v13  ;;  %v4417_v32 = vpack.c.bf16 %v4406_v33, %v4405_v50  ;;  %v4407_v37 = vadd.f32 %v5028_v41, %v4395_v7 }
0x1cbb   : > { %v4396_v24 = vmul.f32 %v5027_v20, %v4384_v12  ;;  %5463 = vmatprep.mubr.msk.bf16.mxu0 %vm9630_vm14, %v4417_v32  ;;  %vm4821_vm14 = vcmask 73728  }
0x1cbc   : > { %v5891_v21 = vpop.eup %5890 }
0x1cbd   : > { %v5893_v30 = vpop.eup %5892  ;;  %v4408_v43 = vadd.f32 %v5028_v41, %v4396_v24  ;;  %v4385_v2 = vmul.f32 %v5891_v21, %v8858_v48 }
0x1cbe   : > { %v4386_v61 = vmul.f32 %v5893_v30, %v8853_v29 }
0x1cbf   : > { %v4418_v44 = vpack.c.bf16 %v4408_v43, %v4407_v37  ;;  %v4397_v28 = vmul.f32 %v5027_v20, %v4385_v2 }
0x1cc0   : > { %v5895_v26 = vpop.eup %5894  ;;  %v4398_v58 = vmul.f32 %v5027_v20, %v4386_v61 }
0x1cc1   : > { %v5897_v5 = vpop.eup %5896  ;;  %v4387_v54 = vmul.f32 %v5895_v26, %v8869_v22  ;;  %5464 = vmatmul.mubr.msk.bf16.vlgmr.msra.gmra.mrb[68].mxu0 %vm9631_vm8, %v4418_v44  ;;  %v4409_v13 = vadd.f32 %v5028_v41, %v4397_v28  ;;  %v5628_v22 = vld [vmem:[%s9060_s1 + $0xe8] sm:$0xff]  }
0x1cc2   : > { %v4388_v63 = vmul.f32 %v5897_v5, %v8864_v57  ;;  %v4410_v15 = vadd.f32 %v5028_v41, %v4398_v58  ;;  %5471 = vmatprep.subr.bf16.mxu1 %v5628_v22  ;;  %v5629_v57 = vld [vmem:[%s9060_s1 + $0xf0] sm:$0xff]  }
0x1cc3   : > { %v4399_v3 = vmul.f32 %v5027_v20, %v4387_v54  ;;  %5472 = vmatpush3.bf16.msra.mxu1 %v5628_v22 }
0x1cc4   : > { %v4419_v14 = vpack.c.bf16 %v4410_v15, %v4409_v13  ;;  %v4400_v0 = vmul.f32 %v5027_v20, %v4388_v63  ;;  %5473 = vmatprep.subr.bf16.mxu1 %v5629_v57 }
0x1cc5   : > { %v4411_v42 = vadd.f32 %v5028_v41, %v4399_v3 }
0x1cc6   : > { %5467 = vmatprep.mubr.msk.bf16.mxu0 %vm9632_vm12, %v4419_v14  ;;  %v4412_v29 = vadd.f32 %v5028_v41, %v4400_v0 }
0x1cc7   : > { %5474 = vmatpush3.bf16.msra.mxu1 %v5629_v57 }
0x1cc8   : > { %v4420_v48 = vpack.c.bf16 %v4412_v29, %v4411_v42  ;;  %5475 = vmatprep.subr.bf16.mxu1 %v5630_v9 }
0x1cca   : > { %5468 = vmatmul.mubr.msk.bf16.gmra.mrb[72].mxu0 %vm9633_vm6, %v4420_v48 }
0x1ccb   : > { %5491 = vmatprep.mubr.msk.bf16.mxu0 %vm9634_vm3, %v9629_v27  ;;  %5476 = vmatpush3.bf16.msra.mxu1 %v5630_v9 }
0x1ccc   : > { %5477 = vmatprep.subr.bf16.mxu1 %v5631_v31 }
0x1ccf   : > { %5478 = vmatpush3.bf16.msra.mxu1 %v5631_v31 }
0x1d94   : > { %v5465_v8 = vpop.f32.mrb[68].mxu0 }
0x1d95   : > { %v8921_v60 = vadd.f32 %v5465_v8, %v5029_v62  ;;  %v4484_v59 = vpop.f32.mrb[69].mxu0 }
0x1d96   : > { %v8923_v55 = vadd.f32 %v5029_v62, %v4484_v59  ;;  %v5466_v36 = vpop.f32.mrb[70].mxu0 }
0x1d97   : > { %v4517_v20 = vmul.f32 %v8921_v60, %v8921_v60  ;;  %v8927_v11 = vadd.f32 %v5466_v36, %v5029_v62  ;;  %v4487_v16 = vpop.f32.mrb[71].mxu0 }
0x1d98   : > { %v4515_v38 = vmul.f32 %v8923_v55, %v8923_v55  ;;  %v8931_v46 = vadd.f32 %v5029_v62, %v4487_v16 }
0x1d99   : > { %v4525_v39 = vmul.f32 %v4517_v20, %v8921_v60  ;;  %v4518_v10 = vmul.f32 %v8927_v11, %v8927_v11 }
0x1d9a   : > { %v4523_v40 = vmul.f32 %v4515_v38, %v8923_v55  ;;  %v4516_v49 = vmul.f32 %v8931_v46, %v8931_v46 }
0x1d9b   : > { %v4533_v51 = vmul.f32 0.044715, %v4525_v39  ;;  %v4526_v19 = vmul.f32 %v4518_v10, %v8927_v11 }
0x1d9c   : > { %v4531_v1 = vmul.f32 0.044715, %v4523_v40  ;;  %v4524_v41 = vmul.f32 %v4516_v49, %v8931_v46 }
0x1d9d   : > { %v4541_v56 = vadd.f32 %v4533_v51, %v8921_v60  ;;  %v4534_v34 = vmul.f32 0.044715, %v4526_v19  ;;  %v5469_v18 = vpop.f32.mrb[72].mxu0 }
0x1d9e   : > { %v4539_v23 = vadd.f32 %v4531_v1, %v8923_v55  ;;  %v4532_v50 = vmul.f32 0.044715, %v4524_v41  ;;  %v8943_v33 = vadd.f32 %v5469_v18, %v5029_v62  ;;  %v4500_v6 = vpop.f32.mrb[73].mxu0 }
0x1d9f   : > { %v4549_v7 = vmul.f32 0.7978846, %v4541_v56  ;;  %v4542_v12 = vadd.f32 %v4534_v34, %v8927_v11  ;;  %v8946_v32 = vadd.f32 %v5029_v62, %v4500_v6  ;;  %v5470_v24 = vpop.f32.mrb[74].mxu0 }
0x1da0   : > { %v4547_v21 = vmul.f32 0.7978846, %v4539_v23  ;;  %v4540_v30 = vadd.f32 %v4532_v50, %v8931_v46  ;;  %v4521_v37 = vmul.f32 %v8943_v33, %v8943_v33  ;;  %v8951_v43 = vadd.f32 %v5470_v24, %v5029_v62  ;;  %v4503_v2 = vpop.f32.mrb[75].mxu0 }
0x1da1   : > { %5898 = vtanh.f32 %v4549_v7  ;;  %v4550_v61 = vmul.f32 0.7978846, %v4542_v12  ;;  %v4519_v44 = vmul.f32 %v8946_v32, %v8946_v32  ;;  %v4504_v28 = vadd.f32 %v5029_v62, %v4503_v2 }
0x1da2   : > { %5900 = vtanh.f32 %v4547_v21  ;;  %v4548_v26 = vmul.f32 0.7978846, %v4540_v30  ;;  %v4529_v58 = vmul.f32 %v4521_v37, %v8943_v33  ;;  %v4522_v5 = vmul.f32 %v8951_v43, %v8951_v43 }
0x1da3   : > { %5902 = vtanh.f32 %v4550_v61  ;;  %v4527_v54 = vmul.f32 %v4519_v44, %v8946_v32  ;;  %v4520_v13 = vmul.f32 %v4504_v28, %v4504_v28 }
0x1da4   : > { %5904 = vtanh.f32 %v4548_v26  ;;  %v4537_v63 = vmul.f32 0.044715, %v4529_v58  ;;  %v4530_v15 = vmul.f32 %v4522_v5, %v8951_v43 }
0x1da5   : > { %v4535_v3 = vmul.f32 0.044715, %v4527_v54  ;;  %v4528_v14 = vmul.f32 %v4520_v13, %v4504_v28 }
0x1da6   : > { %v4545_v0 = vadd.f32 %v4537_v63, %v8943_v33  ;;  %v4538_v42 = vmul.f32 0.044715, %v4530_v15  ;;  %v5044_v63 = vld [vmem:[%s9061_s2 + $0x24] ss:$0 sm:$0xff] }
0x1da7   : > { %v4543_v29 = vadd.f32 %v4535_v3, %v8946_v32  ;;  %v4536_v48 = vmul.f32 0.044715, %v4528_v14 }
0x1da8   : > { %v4553_v22 = vmul.f32 0.7978846, %v4545_v0  ;;  %v4546_v57 = vadd.f32 %v4538_v42, %v8951_v43 }
0x1da9   : > { %v4551_v9 = vmul.f32 0.7978846, %v4543_v29  ;;  %v4544_v31 = vadd.f32 %v4536_v48, %v4504_v28 }
0x1daa   : > { %5906 = vtanh.f32 %v4553_v22  ;;  %v4554_v62 = vmul.f32 0.7978846, %v4546_v57 }
0x1dab   : > { %v5899_v8 = vpop.eup %5898  ;;  %5908 = vtanh.f32 %v4551_v9  ;;  %v4552_v59 = vmul.f32 0.7978846, %v4544_v31 }
0x1dac   : > { %v5901_v36 = vpop.eup %5900  ;;  %v4565_v20 = vadd.f32 1.0, %v5899_v8  ;;  %5910 = vtanh.f32 %v4554_v62 }
0x1dad   : > { %v5903_v16 = vpop.eup %5902  ;;  %v4563_v38 = vadd.f32 1.0, %v5901_v36  ;;  %5912 = vtanh.f32 %v4552_v59 }
0x1dae   : > { %v5905_v39 = vpop.eup %5904  ;;  %v4573_v10 = vmul.f32 0.5, %v4565_v20  ;;  %v4566_v40 = vadd.f32 1.0, %v5903_v16 }
0x1daf   : > { %v4571_v49 = vmul.f32 0.5, %v4563_v38  ;;  %v4564_v51 = vadd.f32 1.0, %v5905_v39 }
0x1db0   : > { %v4574_v19 = vmul.f32 0.5, %v4566_v40  ;;  %v4581_v41 = vmul.f32 %v4573_v10, %v8921_v60 }
0x1db1   : > { %v4572_v1 = vmul.f32 0.5, %v4564_v51  ;;  %v4579_v34 = vmul.f32 %v4571_v49, %v8923_v55 }
0x1db2   : > { %v4582_v56 = vmul.f32 %v4574_v19, %v8927_v11 }
0x1db3   : > { %v4580_v18 = vmul.f32 %v4572_v1, %v8931_v46 }
0x1db4   : > { %v5907_v23 = vpop.eup %5906  ;;  %v4596_v50 = vpack.c.bf16 %v4582_v56, %v4581_v41 }
0x1db5   : > { %v5909_v6 = vpop.eup %5908  ;;  %v4569_v7 = vadd.f32 1.0, %v5907_v23  ;;  %v4595_v12 = vpack.c.bf16 %v4580_v18, %v4579_v34 }
0x1db6   : > { %v5911_v24 = vpop.eup %5910  ;;  %v4567_v21 = vadd.f32 1.0, %v5909_v6 }
0x1db7   : > { %v5913_v30 = vpop.eup %5912  ;;  %v4577_v37 = vmul.f32 0.5, %v4569_v7  ;;  %v4570_v2 = vadd.f32 1.0, %v5911_v24  ;;  %5479 = vmatprep.mubr.msk.bf16.mxu1 %vm1458_vm9, %v4595_v12 }
0x1db8   : > { %v4575_v61 = vmul.f32 0.5, %v4567_v21  ;;  %v4568_v60 = vadd.f32 1.0, %v5913_v30  ;;  %5480 = vmatmul.mubr.msk.bf16.vlgmr.msra.gmra.mrb[76].mxu1 %vm1458_vm9, %v4596_v50 }
0x1db9   : > { %v4578_v11 = vmul.f32 0.5, %v4570_v2  ;;  %v4585_v46 = vmul.f32 %v4577_v37, %v8943_v33 }
0x1dba   : > { %v4576_v55 = vmul.f32 0.5, %v4568_v60  ;;  %v4583_v26 = vmul.f32 %v4575_v61, %v8946_v32  ;;  %v5632_v61 = vld [vmem:[%s9060_s1 + $0x108] sm:$0xff]   ;;  %v5633_v60 = vld [vmem:[%s9060_s1 + $0x110] sm:$0xff]  }
0x1dbb   : > { %v4586_v44 = vmul.f32 %v4578_v11, %v8951_v43  ;;  %5488 = vmatpush3.bf16.msra.mxu0 %v5632_v61 }
0x1dbc   : > { %v4584_v58 = vmul.f32 %v4576_v55, %v4504_v28  ;;  %5489 = vmatprep.subr.bf16.mxu0 %v9629_v27  ;;  %v4765_v27 = vld [vmem:[%s9061_s2 + $0x27] sm:$0x1] }
0x1dbd   : > { %v4598_v5 = vpack.c.bf16 %v4586_v44, %v4585_v46 }
0x1dbe   : > { %v4597_v54 = vpack.c.bf16 %v4584_v58, %v4583_v26  ;;  %v4743_v26 = vld [vmem:[%s9061_s2 + $0x25] sm:$0x1] }
0x1dbf   : > { %5490 = vmatpush3.bf16.msra.mxu0 %v5633_v60 }
0x1dc0   : > { %5483 = vmatprep.mubr.msk.bf16.mxu1 %vm1458_vm9, %v4597_v54 }
0x1dc1   : > { %5484 = vmatmul.mubr.msk.bf16.gmra.mrb[80].mxu1 %vm1458_vm9, %v4598_v5  ;;  %vm9635_vm9 = vmmov %vm9620_vm0  ;;  %v4744_v5 = vld [vmem:[%s9061_s2 + $0x26] sm:$0x1] }
0x1e8b   : > { %v5481_v13 = vpop.f32.mrb[76].mxu1 }
0x1e8c   : > { %v4669_v15 = vpop.f32.mrb[77].mxu1  ;;  %v4702_v3 = vadd.f32 %v5481_v13, %v8796_v17 }
0x1e8d   : > { %v4700_v33 = vadd.f32 %v4669_v15, %v8793_v52  ;;  %v5482_v43 = vpop.f32.mrb[78].mxu1 }
0x1e8e   : > { %v4672_v14 = vpop.f32.mrb[79].mxu1  ;;  %v4703_v28 = vadd.f32 %v5482_v43, %v8805_v25  ;;  %v4715_v42 = vadd.f32 %v5044_v63, %v4702_v3 }
0x1e8f   : > { %v4713_v32 = vadd.f32 %v5044_v63, %v4700_v33  ;;  %v4701_v0 = vadd.f32 %v4672_v14, %v8799_v53 }
0x1e90   : > { %v4716_v22 = vadd.f32 %v5044_v63, %v4703_v28  ;;  %v4724_v17 = vsel %vm9620_vm0, %v4715_v42, 0.0 }
0x1e91   : > { %v4714_v29 = vadd.f32 %v5044_v63, %v4701_v0  ;;  %v4721_v48 = vsel %vm9635_vm9, %v4713_v32, 0.0 }
0x1e92   : > { %v4726_v53 = vsel %vm9637_vm13, %v4716_v22, 0.0 }
0x1e93   : > { %v4722_v57 = vsel %vm9636_vm2, %v4714_v29, 0.0 }
0x1e94   : > { %v4723_v9 = vadd.f32 %v4722_v57, %v4721_v48  ;;  %v5485_v31 = vpop.f32.mrb[80].mxu1 }
0x1e95   : > { %v4685_v62 = vpop.f32.mrb[81].mxu1  ;;  %v4706_v8 = vadd.f32 %v5485_v31, %v8823_v45 }
0x1e96   : > { %v4725_v52 = vadd.f32 %v4724_v17, %v4723_v9  ;;  %v4704_v59 = vadd.f32 %v4685_v62, %v8813_v35  ;;  %v5486_v25 = vpop.f32.mrb[82].mxu1 }
0x1e97   : > { %v4688_v36 = vpop.f32.mrb[83].mxu1  ;;  %v4707_v38 = vadd.f32 %v5486_v25, %v8819_v4  ;;  %v4719_v10 = vadd.f32 %v5044_v63, %v4706_v8 }
0x1e98   : > { %v4717_v20 = vadd.f32 %v5044_v63, %v4704_v59  ;;  %v4727_v16 = vadd.f32 %v4726_v53, %v4725_v52  ;;  %v4705_v39 = vadd.f32 %v4688_v36, %v8815_v47 }
0x1e99   : > { %v4720_v19 = vadd.f32 %v5044_v63, %v4707_v38  ;;  %v4732_v35 = vsel %vm9640_vm5, %v4719_v10, 0.0 }
0x1e9a   : > { %v4728_v40 = vsel %vm9638_vm1, %v4717_v20, 0.0  ;;  %v4718_v49 = vadd.f32 %v5044_v63, %v4705_v39 }
0x1e9b   : > { %v4729_v51 = vadd.f32 %v4728_v40, %v4727_v16  ;;  %v4734_v56 = vsel %vm9641_vm10, %v4720_v19, 0.0 }
0x1e9c   : > { %v4730_v45 = vsel %vm9639_vm11, %v4718_v49, 0.0 }
0x1e9d   : > { %v4731_v1 = vadd.f32 %v4730_v45, %v4729_v51 }
0x1e9f   : > { %v4733_v41 = vadd.f32 %v4732_v35, %v4731_v1 }
0x1ea1   : > { %v4735_v34 = vadd.f32 %v4734_v56, %v4733_v41 }
0x1ea3   : > { %v4736_v18 = vrot.slane %v4735_v34, 4 }
0x1ea5   : > { %v4737_v23 = vadd.f32 %v4736_v18, %v4735_v34 }
0x1ea7   : > { %v4738_v4 = vrot.slane %v4737_v23, 2 }
0x1ea9   : > { %v4739_v50 = vadd.f32 %v4738_v4, %v4737_v23 }
0x1eab   : > { %v4740_v47 = vrot.slane %v4739_v50, 1 }
0x1ead   : > { %v4741_v6 = vadd.f32 %v4740_v47, %v4739_v50 }
0x1eaf   : > { %v4742_v7 = vmul.f32 0.015625, %v4741_v6 }
0x1eb1   : > { %v4745_v12 = vsel %vm9642_vm7, %v4742_v7, 0.0 }
0x1eb2   : > { %4746 = vadd.xlane.f32.xlu0 %v4745_v12 }
0x1f3f   : > { %v4747_v24 = vpop.xlane.xlu0 %4746 }
0x1f40   : > { %v4748_v21 = vmul.f32 0.03125, %v4747_v24 }
0x1f42   : > { %v4749_v30 = vsub.f32 %v4742_v7, %v4748_v21 }
0x1f44   : > { %v4750_v37 = vmul.f32 %v4749_v30, %v4749_v30 }
0x1f46   : > { %v4751_v2 = vsel %vm9643_vm15, %v4750_v37, 0.0 }
0x1f47   : > { %4752 = vadd.xlane.f32.xlu1 %v4751_v2 }
0x1fd4   : > { %v4753_v11 = vpop.xlane.xlu1 %4752 }
0x1fd5   : > { %v4754_v55 = vmul.f32 0.03125, %v4753_v11 }
0x1fd7   : > { %v4755_v46 = vadd.f32 1e-05, %v4754_v55 }
0x1fd9   : > { %5914 = vrsqrt.f32 %v4755_v46 }
0x1fe3   : > { %v5915_v44 = vpop.eup %5914 }
0x1fe4   : > { %v4757_v58 = vmul.f32 %v5915_v44, %v4749_v30 }
0x1fe6   : > { %v4758_v54 = vmul.f32 %v4757_v58, %v4743_v26 }
0x1fe8   : > { %v4759_v13 = vadd.f32 %v4758_v54, %v4744_v5 }
0x1fea   : > { %v4764_v63 = vpack.c.bf16 %v4759_v13, %v4759_v13 }
0x1fec   : > { %5492 = vmatmul.mubr.msk.bf16.vlgmr.msra.gmra.mrb[76].mxu0 %vm9644_vm4, %v4764_v63 }
0x20bf   : > { %v4815_v15 = vpop.f32.mrb[76].mxu0 }
0x20c0   : > { %v4816_v3 = vadd.f32 %v4815_v15, %v4765_v27  ;;  %v5493_v33 = vpop.f32.mrb[77].mxu0 }
0x20c1   : > { %v4818_v43 = vpop.f32.mrb[78].mxu0 }
0x20c2   : > { %v5494_v14 = vpop.f32.mrb[79].mxu0  ;;  %4822 = vst.msk [vmem:[%s163_s10] sm:$0x1] %vm4821_vm14, %v4816_v3 }
0x20c3   : > { %5929 = shalt.err (!%p5926_p3)
}
0x20c4   : > { %s5930_s28 = scalar_lea.hbm %s9017_s19, 16  ;;  %s5934_s4 = scalar_lea.hbm %s9062_s3, 32 }
0x20c5   : > { %p5931_p4 = scmp.ne.s32.totalorder %s9017_s19, %s5930_s28  ;;  %p5935_p9 = scmp.lt.u32.totalorder %s9017_s19, %s9062_s3 }
0x20c6   : > { %p5936_p10 = scmp.lt.u32.totalorder %s5934_s4, %s5930_s28  ;;  %p5938_p12 = scmp.lt.u32.totalorder %s5930_s28, %s9017_s19 }
0x20c7   : > { %p5932_p7 = pnand %p5931_p4, %p6048_p5 }
0x20c8   : > { %p5937_p11 = por %p5936_p10, %p5935_p9 }
0x20c9   : > { %p5933_p8 = pneg %p5932_p7 }
0x20ca   : > { %p5939_p13 = por %p5938_p12, %p5937_p11 }
0x20cc   : > { %p5940_p0 = pnand %p5939_p13, %p5933_p8 }
0x20ce   : > { %5943 = shalt.err (!%p5940_p0)
}
0x20cf   : > { %5511 = dma.vmem_to_hbm [thread:$0]  (%p6048_p5), %s9019_s11, 16, %s9017_s19, %s4824_s16  }
0x20d0 PF: > { %p5517_p1 = scmp.ge.s32.totalorder %s5978_s15, 2  ;;  %s4848_s7 = sand.u32 1, %s5966_s12  }
0x20d1   : > { %s4849_s8 = scalar_lea.sflag [#allocation3], %s4848_s7 }
0x20d2   : > { %p5514_p2 = pnand %p5517_p1, %p6052_p6 }
0x20d4   : > { %5961 = dma.done.wait (!%p5514_p2), %s4849_s8, 16  }
0x20d5   : > { %5963 = vsyncadd (!%p5514_p2), %s4849_s8, 4294967280  ;;  %p13_p3 = scmp.ge.s32.totalorder %s6035_s18, 4   ;;  %s9645_s12 = smov %s5970_s13 }
0x20d6   : > { %s9646_s13 = smov %s5974_s14  ;;  %s9647_s14 = smov %s6046_s21 }
0x20d7   : > { %s9648_s15 = smov %s6035_s18  ;;  %15 = sbr.rel (!%p13_p3) target bundleno = 3 (0x3), region = 67 }
0x20de   :  { %4853 = vsyncpa [#allocation3], 1 }
0x20df   :  { %4855 = vsyncpa [#allocation3 + $0x1], 1 }

</bundles_post_ra>
